<compile_context>
chip_gen: v6e
topology: v6e:2x2x1
jax: 0.10.0
libtpu: 0.0.40
codegen_flags: <defaults>
</compile_context>

<pallas_src>
import math
from functools import partial

import jax
import jax.numpy as jnp
from jax.experimental import pallas as pl
from jax.experimental.pallas import tpu as pltpu

_LN_EPS = 1e-5
_NEG_INF = -1e9          # finite mask value -> no NaN on fully-masked rows
_VMEM_LIMIT = 32 * 1024 * 1024


# ----------------------------------------------------------------------------
# Shared helpers (used both inside kernels and in the pure-JAX reference)
# ----------------------------------------------------------------------------
def _layer_norm(x, gamma, beta, eps=_LN_EPS):
    mean = jnp.mean(x, axis=-1, keepdims=True)
    var = jnp.mean(jnp.square(x - mean), axis=-1, keepdims=True)
    return (x - mean) * jax.lax.rsqrt(var + eps) * gamma + beta


def _embed_and_biases(params, enc_tokens, dec_tokens, enc_mask, dec_mask):
    """Embeddings + positional encoding (XLA) and additive key-padding biases.

    Matches the PyTorch module:
      src_key_padding_mask    = ~encoder_self_attention_mask[:, 0, :]
      memory_key_padding_mask = ~encoder_self_attention_mask[:, 0, :]
      tgt_key_padding_mask    = ~decoder_self_attention_mask[:, 0, :]
      tgt_mask                = ~decoder_self_attention_mask
    Biases are additive f32 (0 = keep, -1e9 = masked), kept at (B,1,S)/(B,1,T).
    """
    E = params["pos_enc"].shape[-1]
    S = enc_tokens.shape[1]
    T = dec_tokens.shape[1]
    sqrt_e = math.sqrt(E)
    # TODO(synk): embedding row gather has no clean rectangular BlockSpec; kept in XLA.
    src = (jnp.take(params["enc_emb"], enc_tokens, axis=0) * sqrt_e
           + params["pos_enc"][:S]).astype(jnp.bfloat16)
    tgt = (jnp.take(params["dec_emb"], dec_tokens, axis=0) * sqrt_e
           + params["pos_enc"][:T]).astype(jnp.bfloat16)

    enc_keep = enc_mask[:, 0, :]                                                  # (B,S)
    dec_keep = dec_mask[:, 0, :]                                                  # (B,T)
    bias_src = jnp.where(enc_keep[:, None, :], 0.0, _NEG_INF).astype(jnp.float32)  # (B,1,S)
    bias_tgt_pad = jnp.where(dec_keep[:, None, :], 0.0, _NEG_INF).astype(jnp.float32)  # (B,1,T)
    return src, tgt, bias_src, bias_tgt_pad


def _softmax_heads(q, k, v, bias_b, num_heads, d_k):
    """Unrolled per-head attention on bf16 operands with f32 accumulation.

    Head outputs are collected in a list and concatenated once (lane-dense, no masked
    partial stores).  bias_b is pre-broadcast outside the loop.
    """
    heads = []
    for h in range(num_heads):
        lo, hi = h * d_k, (h + 1) * d_k
        s = jax.lax.dot_general(q[:, lo:hi], k[:, lo:hi],
                                (((1,), (1,)), ((), ())),
                                preferred_element_type=jnp.float32) + bias_b
        s = s - jnp.max(s, axis=-1, keepdims=True)
        p = jnp.exp(s)
        p = p * pl.reciprocal(jnp.sum(p, axis=-1, keepdims=True), approx=True)
        heads.append(jnp.dot(p.astype(jnp.bfloat16), v[:, lo:hi],
                             preferred_element_type=jnp.float32))
    return jnp.concatenate(heads, axis=-1)


# ----------------------------------------------------------------------------
# Pallas kernels
# ----------------------------------------------------------------------------
def _self_attn_block_kernel(x_ref, w_in_ref, b_in_ref, w_out_ref, b_out_ref,
                            bias_ref, g_ref, bt_ref, o_ref, *, num_heads, causal, eps):
    # x: (S,E) bf16 bound ONCE (query == key/value source); bias: (R,S) f32, R in {1,S}.
    S, E = x_ref.shape
    d_k = E // num_heads

    x_b = x_ref[...]
    x_f = x_b.astype(jnp.float32)                       # residual in f32

    # One fused (S,E)x(E,3E) in-projection.  Scale is pre-folded into the q columns.
    qkv = jnp.dot(x_b, w_in_ref[...], preferred_element_type=jnp.float32) + b_in_ref[...]
    q = qkv[:, :E].astype(jnp.bfloat16)
    k = qkv[:, E:2 * E].astype(jnp.bfloat16)
    v = qkv[:, 2 * E:].astype(jnp.bfloat16)

    # Hoisted bias broadcast (JAX does not CSE broadcast_in_dim).
    bias_b = jnp.broadcast_to(bias_ref[...], (S, S)).astype(jnp.float32)
    if causal:
        row = jax.lax.broadcasted_iota(jnp.int32, (S, S), 0)
        col = jax.lax.broadcasted_iota(jnp.int32, (S, S), 1)
        bias_b = bias_b + jnp.where(col <= row, 0.0, _NEG_INF)

    ctx = _softmax_heads(q, k, v, bias_b, num_heads, d_k)
    attn = jnp.dot(ctx.astype(jnp.bfloat16), w_out_ref[...],
                   preferred_element_type=jnp.float32) + b_out_ref[...]

    y = _layer_norm(x_f + attn, g_ref[...], bt_ref[...], eps)
    o_ref[...] = y.astype(o_ref.dtype)


def _cross_attn_block_kernel(xq_ref, mem_ref, w_in_ref, b_in_ref, w_out_ref, b_out_ref,
                             bias_ref, g_ref, bt_ref, o_ref, *, num_heads, eps):
    # xq: (tT,E) bf16 query rows; mem: (S,E) bf16 memory; bias: (1,S) f32 key padding.
    tT, E = xq_ref.shape
    S = mem_ref.shape[0]
    d_k = E // num_heads

    xq_b = xq_ref[...]
    xq_f = xq_b.astype(jnp.float32)
    mem_b = mem_ref[...]

    # Two dots instead of three: q from xq, fused k|v from memory (Ref slices of w_in).
    q = (jnp.dot(xq_b, w_in_ref[:, :E], preferred_element_type=jnp.float32)
         + b_in_ref[:, :E]).astype(jnp.bfloat16)
    kv = jnp.dot(mem_b, w_in_ref[:, E:], preferred_element_type=jnp.float32) + b_in_ref[:, E:]
    k = kv[:, :E].astype(jnp.bfloat16)
    v = kv[:, E:].astype(jnp.bfloat16)

    bias_b = jnp.broadcast_to(bias_ref[...], (tT, S)).astype(jnp.float32)

    ctx = _softmax_heads(q, k, v, bias_b, num_heads, d_k)
    attn = jnp.dot(ctx.astype(jnp.bfloat16), w_out_ref[...],
                   preferred_element_type=jnp.float32) + b_out_ref[...]

    y = _layer_norm(xq_f + attn, g_ref[...], bt_ref[...], eps)
    o_ref[...] = y.astype(o_ref.dtype)


def _ffn_block_kernel(x_ref, w1_ref, b1_ref, w2_ref, b2_ref, g_ref, bt_ref, *rest,
                      eps, final_norm):
    # linear1 -> relu -> linear2 -> residual -> LN (-> optional fused final stack LN)
    if final_norm:
        g2_ref, bt2_ref, o_ref = rest
    else:
        (o_ref,) = rest
    x_b = x_ref[...]
    x_f = x_b.astype(jnp.float32)
    h = jnp.dot(x_b, w1_ref[...], preferred_element_type=jnp.float32) + b1_ref[...]
    h = jnp.maximum(h, 0.0).astype(jnp.bfloat16)
    y = jnp.dot(h, w2_ref[...], preferred_element_type=jnp.float32) + b2_ref[...]
    y = _layer_norm(x_f + y, g_ref[...], bt_ref[...], eps)
    if final_norm:
        y = _layer_norm(y, g2_ref[...], bt2_ref[...], eps)
    o_ref[...] = y.astype(o_ref.dtype)


def _linear_kernel(x_ref, w_ref, b_ref, o_ref):
    o_ref[...] = jnp.dot(x_ref[...], w_ref[...],
                         preferred_element_type=jnp.float32) + b_ref[...]


# ----------------------------------------------------------------------------
# Kernel wrappers
# ----------------------------------------------------------------------------
def pallas_self_attn_block(x, bias, p, gamma, beta, *, num_heads, causal):
    """LayerNorm(x + SelfMHA(x)); x bound once; bf16 in / bf16 out."""
    B, S, E = x.shape
    R = bias.shape[1]
    kernel = partial(_self_attn_block_kernel, num_heads=num_heads, causal=causal, eps=_LN_EPS)
    return pl.pallas_call(
        kernel,
        out_shape=jax.ShapeDtypeStruct((B, S, E), jnp.bfloat16),
        grid=(B,),
        in_specs=[
            pl.BlockSpec((None, S, E), lambda b: (b, 0, 0)),      # x (single binding)
            pl.BlockSpec((E, 3 * E), lambda b: (0, 0)),           # stacked in-proj weight
            pl.BlockSpec((1, 3 * E), lambda b: (0, 0)),           # in-proj bias
            pl.BlockSpec((E, E), lambda b: (0, 0)),               # out-proj weight
            pl.BlockSpec((1, E), lambda b: (0, 0)),               # out-proj bias
            pl.BlockSpec((None, R, S), lambda b: (b, 0, 0)),      # additive mask bias
            pl.BlockSpec((1, E), lambda b: (0, 0)),               # LN gamma
            pl.BlockSpec((1, E), lambda b: (0, 0)),               # LN beta
        ],
        out_specs=pl.BlockSpec((None, S, E), lambda b: (b, 0, 0)),
        compiler_params=pltpu.CompilerParams(
            dimension_semantics=("parallel",), vmem_limit_bytes=_VMEM_LIMIT),
    )(x, p["w_in"], p["b_in"], p["w_out"], p["b_out"], bias, gamma, beta)


def pallas_cross_attn_block(xq, mem, bias, p, gamma, beta, *, num_heads, row_block=256):
    """LayerNorm(xq + MHA(xq, mem, mem)); query rows tiled; bf16 in / bf16 out."""
    B, T, E = xq.shape
    S = mem.shape[1]
    tT = T if T <= row_block else row_block
    nT = pl.cdiv(T, tT)
    kernel = partial(_cross_attn_block_kernel, num_heads=num_heads, eps=_LN_EPS)
    return pl.pallas_call(
        kernel,
        out_shape=jax.ShapeDtypeStruct((B, T, E), jnp.bfloat16),
        grid=(B, nT),
        in_specs=[
            pl.BlockSpec((None, tT, E), lambda b, i: (b, i, 0)),   # query row tile
            pl.BlockSpec((None, S, E), lambda b, i: (b, 0, 0)),    # encoder memory
            pl.BlockSpec((E, 3 * E), lambda b, i: (0, 0)),
            pl.BlockSpec((1, 3 * E), lambda b, i: (0, 0)),
            pl.BlockSpec((E, E), lambda b, i: (0, 0)),
            pl.BlockSpec((1, E), lambda b, i: (0, 0)),
            pl.BlockSpec((None, 1, S), lambda b, i: (b, 0, 0)),    # memory key padding bias
            pl.BlockSpec((1, E), lambda b, i: (0, 0)),
            pl.BlockSpec((1, E), lambda b, i: (0, 0)),
        ],
        out_specs=pl.BlockSpec((None, tT, E), lambda b, i: (b, i, 0)),
        compiler_params=pltpu.CompilerParams(
            dimension_semantics=("parallel", "parallel"), vmem_limit_bytes=_VMEM_LIMIT),
    )(xq, mem, p["w_in"], p["b_in"], p["w_out"], p["b_out"], bias, gamma, beta)


def pallas_ffn_block(x, p, gamma, beta, final_g=None, final_b=None, *, row_block=256):
    """LayerNorm(x + linear2(relu(linear1(x)))) [+ fused final stack LayerNorm]."""
    B, T, E = x.shape
    F = p["w1"].shape[1]
    tT = T if T <= row_block else row_block
    nT = pl.cdiv(T, tT)
    final_norm = final_g is not None
    kernel = partial(_ffn_block_kernel, eps=_LN_EPS, final_norm=final_norm)
    in_specs = [
        pl.BlockSpec((None, tT, E), lambda b, i: (b, i, 0)),
        pl.BlockSpec((E, F), lambda b, i: (0, 0)),
        pl.BlockSpec((1, F), lambda b, i: (0, 0)),
        pl.BlockSpec((F, E), lambda b, i: (0, 0)),
        pl.BlockSpec((1, E), lambda b, i: (0, 0)),
        pl.BlockSpec((1, E), lambda b, i: (0, 0)),
        pl.BlockSpec((1, E), lambda b, i: (0, 0)),
    ]
    args = [x, p["w1"], p["b1"], p["w2"], p["b2"], gamma, beta]
    if final_norm:
        in_specs += [pl.BlockSpec((1, E), lambda b, i: (0, 0)),
                     pl.BlockSpec((1, E), lambda b, i: (0, 0))]
        args += [final_g, final_b]
    return pl.pallas_call(
        kernel,
        out_shape=jax.ShapeDtypeStruct((B, T, E), jnp.bfloat16),
        grid=(B, nT),
        in_specs=in_specs,
        out_specs=pl.BlockSpec((None, tT, E), lambda b, i: (b, i, 0)),
        compiler_params=pltpu.CompilerParams(
            dimension_semantics=("parallel", "parallel"), vmem_limit_bytes=_VMEM_LIMIT),
    )(*args)


def pallas_linear(x2d, w, b, *, tm_max=256, tv_max=512):
    """Tiled vocabulary projection: grid over (M tiles, V tiles)."""
    M, E_in = x2d.shape
    V = w.shape[1]
    tM = M if M <= tm_max else tm_max
    tV = V if V <= tv_max else tv_max
    cost = pl.CostEstimate(
        flops=2 * M * E_in * V, transcendentals=0,
        bytes_accessed=x2d.size * 2 + w.size * 2 + b.size * 4 + M * V * 4)
    return pl.pallas_call(
        _linear_kernel,
        out_shape=jax.ShapeDtypeStruct((M, V), jnp.float32),
        grid=(pl.cdiv(M, tM), pl.cdiv(V, tV)),
        in_specs=[pl.BlockSpec((tM, E_in), lambda m, v: (m, 0)),
                  pl.BlockSpec((E_in, tV), lambda m, v: (0, v)),
                  pl.BlockSpec((1, tV), lambda m, v: (0, v))],
        out_specs=pl.BlockSpec((tM, tV), lambda m, v: (m, v)),
        compiler_params=pltpu.CompilerParams(
            dimension_semantics=("parallel", "parallel"), vmem_limit_bytes=_VMEM_LIMIT),
        cost_estimate=cost,
    )(x2d, w, b)


# ----------------------------------------------------------------------------
# Full transformer forward (jitted)
# ----------------------------------------------------------------------------
@partial(jax.jit, static_argnames=("num_heads", "decoder_mask_is_causal"))
def pallas_transformer_forward(params, enc_tokens, dec_tokens, enc_mask, dec_mask, *,
                               num_heads, decoder_mask_is_causal=True):
    src, tgt, bias_src, bias_tgt_pad = _embed_and_biases(
        params, enc_tokens, dec_tokens, enc_mask, dec_mask)

    # Decoder self-attention mask: if the supplied mask is causal (module's documented
    # tgt_is_causal=True usage), generate the causal part in-kernel and only ship the
    # (B,1,T) key-padding bias; otherwise fall back to the faithful full (B,T,T) bias.
    if decoder_mask_is_causal:
        dec_self_bias, dec_causal = bias_tgt_pad, True
    else:
        dec_keep = dec_mask[:, 0, :]
        keep = jnp.logical_and(dec_mask, dec_keep[:, None, :])
        dec_self_bias = jnp.where(keep, 0.0, _NEG_INF).astype(jnp.float32)
        dec_causal = False

    # Encoder stack; final encoder LayerNorm fused into the last FFN kernel.
    x = src
    n_enc = len(params["encoder_layers"])
    for li, lyr in enumerate(params["encoder_layers"]):
        x = pallas_self_attn_block(x, bias_src, lyr["attn"], lyr["ln1_g"], lyr["ln1_b"],
                                   num_heads=num_heads, causal=False)
        last = li == n_enc - 1
        x = pallas_ffn_block(x, lyr["ffn"], lyr["ln2_g"], lyr["ln2_b"],
                             final_g=params["enc_norm_g"] if last else None,
                             final_b=params["enc_norm_b"] if last else None)
    memory = x

    # Decoder stack; final decoder LayerNorm fused into the last FFN kernel.
    y = tgt
    n_dec = len(params["decoder_layers"])
    for li, lyr in enumerate(params["decoder_layers"]):
        y = pallas_self_attn_block(y, dec_self_bias, lyr["self_attn"],
                                   lyr["ln1_g"], lyr["ln1_b"],
                                   num_heads=num_heads, causal=dec_causal)
        y = pallas_cross_attn_block(y, memory, bias_src, lyr["cross_attn"],
                                    lyr["ln2_g"], lyr["ln2_b"], num_heads=num_heads)
        last = li == n_dec - 1
        y = pallas_ffn_block(y, lyr["ffn"], lyr["ln3_g"], lyr["ln3_b"],
                             final_g=params["dec_norm_g"] if last else None,
                             final_b=params["dec_norm_b"] if last else None)

    B, T, E = y.shape
    V = params["out_w"].shape[1]
    logits = pallas_linear(y.reshape(B * T, E), params["out_w"], params["out_b"])
    return logits.reshape(B, T, V)


# ----------------------------------------------------------------------------
# Parameter init (weights pre-transposed to (in,out), pre-cast to bf16,
# and 1/sqrt(d_k) pre-folded into the q columns of the attention in-projection)
# ----------------------------------------------------------------------------
def init_params(key, *, enc_vocab, dec_vocab, max_tokens, embed_dim, n_layers, num_heads, ff_dim):
    E, F = embed_dim, ff_dim
    keys = iter(jax.random.split(key, 256))
    nk = lambda: next(keys)

    def w(shape, scale):
        return (scale * jax.random.normal(nk(), shape, jnp.float32)).astype(jnp.bfloat16)

    def b(shape, scale=0.02):
        return scale * jax.random.normal(nk(), shape, jnp.float32)

    def ln():
        g = 1.0 + 0.05 * jax.random.normal(nk(), (1, E), jnp.float32)
        beta = 0.05 * jax.random.normal(nk(), (1, E), jnp.float32)
        return g, beta

    q_scale = 1.0 / math.sqrt(E // num_heads)

    def mha():
        w_in = (1.0 / math.sqrt(E)) * jax.random.normal(nk(), (E, 3 * E), jnp.float32)
        b_in = 0.02 * jax.random.normal(nk(), (1, 3 * E), jnp.float32)
        w_in = w_in.at[:, :E].multiply(q_scale)   # fold softmax scale into q projection
        b_in = b_in.at[:, :E].multiply(q_scale)
        return dict(w_in=w_in.astype(jnp.bfloat16), b_in=b_in,
                    w_out=w((E, E), 1.0 / math.sqrt(E)), b_out=b((1, E)))

    def ffn():
        return dict(w1=w((E, F), 1.0 / math.sqrt(E)), b1=b((1, F)),
                    w2=w((F, E), 1.0 / math.sqrt(F)), b2=b((1, E)))

    enc_layers = []
    for _ in range(n_layers):
        g1, bt1 = ln()
        g2, bt2 = ln()
        enc_layers.append(dict(attn=mha(), ln1_g=g1, ln1_b=bt1, ffn=ffn(), ln2_g=g2, ln2_b=bt2))
    dec_layers = []
    for _ in range(n_layers):
        g1, bt1 = ln()
        g2, bt2 = ln()
        g3, bt3 = ln()
        dec_layers.append(dict(self_attn=mha(), ln1_g=g1, ln1_b=bt1,
                               cross_attn=mha(), ln2_g=g2, ln2_b=bt2,
                               ffn=ffn(), ln3_g=g3, ln3_b=bt3))
    enc_ng, enc_nb = ln()
    dec_ng, dec_nb = ln()

    # Sinusoidal positional encoding with scalar = max_tokens (as in the PyTorch module).
    pos = jnp.arange(max_tokens, dtype=jnp.float32)[:, None]
    even = jnp.arange(0, E, 2, dtype=jnp.float32)
    angles = pos / jnp.power(float(max_tokens), even / E)
    pe = jnp.zeros((max_tokens, E), jnp.float32)
    pe = pe.at[:, 0::2].set(jnp.sin(angles))
    pe = pe.at[:, 1::2].set(jnp.cos(angles))

    return dict(
        enc_emb=0.2 * jax.random.normal(nk(), (enc_vocab, E), jnp.float32),
        dec_emb=0.2 * jax.random.normal(nk(), (dec_vocab, E), jnp.float32),
        pos_enc=pe,
        encoder_layers=enc_layers,
        decoder_layers=dec_layers,
        enc_norm_g=enc_ng, enc_norm_b=enc_nb,
        dec_norm_g=dec_ng, dec_norm_b=dec_nb,
        out_w=w((E, dec_vocab), 1.0 / math.sqrt(E)),
        out_b=b((1, dec_vocab)),
    )


# ----------------------------------------------------------------------------
# Pure-JAX reference (same mixed precision, bf16 inter-layer activations),
# used for a silent correctness check.
# ----------------------------------------------------------------------------
def _ref_mha(xq, xkv, bias, p, gamma, beta, num_heads, causal):
    B, T, E = xq.shape
    S = xkv.shape[1]
    d_k = E // num_heads
    bf = jnp.bfloat16
    xq_f = xq.astype(jnp.float32)
    q = jnp.einsum("bte,ef->btf", xq, p["w_in"][:, :E],
                   preferred_element_type=jnp.float32) + p["b_in"][:, :E]
    k = jnp.einsum("bse,ef->bsf", xkv, p["w_in"][:, E:2 * E],
                   preferred_element_type=jnp.float32) + p["b_in"][:, E:2 * E]
    v = jnp.einsum("bse,ef->bsf", xkv, p["w_in"][:, 2 * E:],
                   preferred_element_type=jnp.float32) + p["b_in"][:, 2 * E:]
    qh = q.astype(bf).reshape(B, T, num_heads, d_k)
    kh = k.astype(bf).reshape(B, S, num_heads, d_k)
    vh = v.astype(bf).reshape(B, S, num_heads, d_k)
    s = jnp.einsum("bthd,bshd->bhts", qh, kh, preferred_element_type=jnp.float32)
    s = s + bias[:, None, :, :]
    if causal:
        row = jnp.arange(T)[:, None]
        col = jnp.arange(S)[None, :]
        s = s + jnp.where(col <= row, 0.0, _NEG_INF)[None, None]
    pr = jax.nn.softmax(s, axis=-1)
    ctx = jnp.einsum("bhts,bshd->bthd", pr.astype(bf), vh,
                     preferred_element_type=jnp.float32).reshape(B, T, E)
    out = jnp.einsum("bte,ef->btf", ctx.astype(bf), p["w_out"],
                     preferred_element_type=jnp.float32) + p["b_out"]
    return _layer_norm(xq_f + out, gamma, beta).astype(bf)


def _ref_ffn(x, p, gamma, beta, final_g=None, final_b=None):
    bf = jnp.bfloat16
    x_f = x.astype(jnp.float32)
    h = jnp.einsum("bte,ef->btf", x, p["w1"],
                   preferred_element_type=jnp.float32) + p["b1"]
    h = jnp.maximum(h, 0.0).astype(bf)
    y = jnp.einsum("btf,fe->bte", h, p["w2"],
                   preferred_element_type=jnp.float32) + p["b2"]
    y = _layer_norm(x_f + y, gamma, beta)
    if final_g is not None:
        y = _layer_norm(y, final_g, final_b)
    return y.astype(bf)


def _reference_forward(params, enc_tokens, dec_tokens, enc_mask, dec_mask, *,
                       num_heads, decoder_mask_is_causal=True):
    src, tgt, bias_src, bias_tgt_pad = _embed_and_biases(
        params, enc_tokens, dec_tokens, enc_mask, dec_mask)
    if decoder_mask_is_causal:
        dec_self_bias, dec_causal = bias_tgt_pad, True
    else:
        dec_keep = dec_mask[:, 0, :]
        keep = jnp.logical_and(dec_mask, dec_keep[:, None, :])
        dec_self_bias = jnp.where(keep, 0.0, _NEG_INF).astype(jnp.float32)
        dec_causal = False

    x = src
    n_enc = len(params["encoder_layers"])
    for li, lyr in enumerate(params["encoder_layers"]):
        x = _ref_mha(x, x, bias_src, lyr["attn"], lyr["ln1_g"], lyr["ln1_b"], num_heads, False)
        last = li == n_enc - 1
        x = _ref_ffn(x, lyr["ffn"], lyr["ln2_g"], lyr["ln2_b"],
                     params["enc_norm_g"] if last else None,
                     params["enc_norm_b"] if last else None)
    memory = x
    y = tgt
    n_dec = len(params["decoder_layers"])
    for li, lyr in enumerate(params["decoder_layers"]):
        y = _ref_mha(y, y, dec_self_bias, lyr["self_attn"], lyr["ln1_g"], lyr["ln1_b"],
                     num_heads, dec_causal)
        y = _ref_mha(y, memory, bias_src, lyr["cross_attn"], lyr["ln2_g"], lyr["ln2_b"],
                     num_heads, False)
        last = li == n_dec - 1
        y = _ref_ffn(y, lyr["ffn"], lyr["ln3_g"], lyr["ln3_b"],
                     params["dec_norm_g"] if last else None,
                     params["dec_norm_b"] if last else None)
    logits = jnp.einsum("bte,ev->btv", y, params["out_w"],
                        preferred_element_type=jnp.float32) + params["out_b"]
    return logits


# ----------------------------------------------------------------------------
# Main
# ----------------------------------------------------------------------------
if __name__ == "__main__":
    B, S, T = 2, 8, 8          # batch, encoder seq len, decoder seq len
    E, H, F = 32, 4, 64        # embedding dim, heads, feedforward dim
    N_LAYERS = 2
    ENC_VOCAB, DEC_VOCAB, MAX_TOKENS = 50, 48, 16

    key = jax.random.PRNGKey(0)
    kp, kt1, kt2 = jax.random.split(key, 3)
    params = init_params(kp, enc_vocab=ENC_VOCAB, dec_vocab=DEC_VOCAB,
                         max_tokens=MAX_TOKENS, embed_dim=E, n_layers=N_LAYERS,
                         num_heads=H, ff_dim=F)

    enc_tokens = jax.random.randint(kt1, (B, S), 0, ENC_VOCAB)
    dec_tokens = jax.random.randint(kt2, (B, T), 0, DEC_VOCAB)

    # Encoder mask: key-padding style (batch 1 has its last 2 positions padded out).
    enc_valid = jnp.array([[True] * S, [True] * (S - 2) + [False] * 2])
    enc_mask = jnp.broadcast_to(enc_valid[:, None, :], (B, S, S))
    # Decoder mask: causal (True = allowed), matching the module's tgt_is_causal=True usage.
    # NOTE: the module derives tgt_key_padding_mask from row 0 of this mask, so decoder
    # self-attention effectively attends only to position 0 — replicated faithfully here.
    dec_mask = jnp.broadcast_to(jnp.tril(jnp.ones((T, T), dtype=bool))[None], (B, T, T))

    out = pallas_transformer_forward(params, enc_tokens, dec_tokens, enc_mask, dec_mask,
                                     num_heads=H, decoder_mask_is_causal=True)
    out = jax.block_until_ready(out)
    assert out.shape == (B, T, DEC_VOCAB)

    ref = _reference_forward(params, enc_tokens, dec_tokens, enc_mask, dec_mask,
                             num_heads=H, decoder_mask_is_causal=True)
    max_err = jnp.max(jnp.abs(out - ref))
    if not jnp.allclose(out, ref, atol=5e-2, rtol=5e-2):
        raise AssertionError(f"Pallas transformer output mismatch (max abs err {max_err})")

    print("KERNEL_OK")
</pallas_src>

<mosaic_0001>
module attributes {stable_mosaic.version = 11 : i64} {
  func.func @_ffn_block_kernel(%arg0: i32, %arg1: i32, %arg2: memref<1x8x32xbf16, #tpu.memory_space<vmem>>, %arg3: memref<32x64xbf16, #tpu.memory_space<vmem>>, %arg4: memref<1x64xf32, #tpu.memory_space<vmem>>, %arg5: memref<64x32xbf16, #tpu.memory_space<vmem>>, %arg6: memref<1x32xf32, #tpu.memory_space<vmem>>, %arg7: memref<1x32xf32, #tpu.memory_space<vmem>>, %arg8: memref<1x32xf32, #tpu.memory_space<vmem>>, %arg9: memref<1x8x32xbf16, #tpu.memory_space<vmem>>) attributes {dimension_semantics = [#tpu.dimension_semantics<parallel>, #tpu.dimension_semantics<parallel>], iteration_bounds = array<i64: 2, 1>, scalar_prefetch = 0 : i64, scratch_operands = 0 : i64, tpu.core_type = #tpu.core_type<tc>, window_params = [{transform_indices = @transform_0, window_bounds = array<i64: 1, 8, 32>}, {pipeline_mode = #tpu.pipeline_mode<synchronous>, transform_indices = @transform_1, window_bounds = array<i64: 32, 64>}, {pipeline_mode = #tpu.pipeline_mode<synchronous>, transform_indices = @transform_2, window_bounds = array<i64: 1, 64>}, {pipeline_mode = #tpu.pipeline_mode<synchronous>, transform_indices = @transform_3, window_bounds = array<i64: 64, 32>}, {pipeline_mode = #tpu.pipeline_mode<synchronous>, transform_indices = @transform_4, window_bounds = array<i64: 1, 32>}, {pipeline_mode = #tpu.pipeline_mode<synchronous>, transform_indices = @transform_5, window_bounds = array<i64: 1, 32>}, {pipeline_mode = #tpu.pipeline_mode<synchronous>, transform_indices = @transform_6, window_bounds = array<i64: 1, 32>}, {transform_indices = @transform_7, window_bounds = array<i64: 1, 8, 32>}]} {
    %c0 = arith.constant 0 : index
    %c0_0 = arith.constant 0 : index
    %c0_1 = arith.constant 0 : index
    %0 = vector.load %arg2[%c0, %c0_0, %c0_1] : memref<1x8x32xbf16, #tpu.memory_space<vmem>>, vector<1x8x32xbf16>
    %1 = vector.shape_cast %0 : vector<1x8x32xbf16> to vector<8x32xbf16>
    %2 = arith.extf %1 : vector<8x32xbf16> to vector<8x32xf32>
    %c0_2 = arith.constant 0 : index
    %c0_3 = arith.constant 0 : index
    %3 = vector.load %arg3[%c0_2, %c0_3] : memref<32x64xbf16, #tpu.memory_space<vmem>>, vector<32x64xbf16>
    %cst = arith.constant dense<0.000000e+00> : vector<8x64xf32>
    %4 = tpu.matmul %1, %3, %cst {dimension_numbers = #tpu.dot_dimension_numbers<[1], [0], [0], [1], [0, 0, 1, 1], [], []>} : vector<8x32xbf16>, vector<32x64xbf16>, vector<8x64xf32> -> vector<8x64xf32>
    %c0_4 = arith.constant 0 : index
    %c0_5 = arith.constant 0 : index
    %5 = vector.load %arg4[%c0_4, %c0_5] : memref<1x64xf32, #tpu.memory_space<vmem>>, vector<1x64xf32>
    %6 = vector.broadcast %5 : vector<1x64xf32> to vector<8x64xf32>
    %7 = arith.addf %4, %6 : vector<8x64xf32>
    %cst_6 = arith.constant 0.000000e+00 : f32
    %8 = vector.broadcast %cst_6 : f32 to vector<8x64xf32>
    %9 = arith.maximumf %7, %8 : vector<8x64xf32>
    %10 = arith.truncf %9 : vector<8x64xf32> to vector<8x64xbf16>
    %c0_7 = arith.constant 0 : index
    %c0_8 = arith.constant 0 : index
    %11 = vector.load %arg5[%c0_7, %c0_8] : memref<64x32xbf16, #tpu.memory_space<vmem>>, vector<64x32xbf16>
    %cst_9 = arith.constant dense<0.000000e+00> : vector<8x32xf32>
    %12 = tpu.matmul %10, %11, %cst_9 {dimension_numbers = #tpu.dot_dimension_numbers<[1], [0], [0], [1], [0, 0, 1, 1], [], []>} : vector<8x64xbf16>, vector<64x32xbf16>, vector<8x32xf32> -> vector<8x32xf32>
    %c0_10 = arith.constant 0 : index
    %c0_11 = arith.constant 0 : index
    %13 = vector.load %arg6[%c0_10, %c0_11] : memref<1x32xf32, #tpu.memory_space<vmem>>, vector<1x32xf32>
    %14 = vector.broadcast %13 : vector<1x32xf32> to vector<8x32xf32>
    %15 = arith.addf %12, %14 : vector<8x32xf32>
    %16 = arith.addf %2, %15 : vector<8x32xf32>
    %c0_12 = arith.constant 0 : index
    %c0_13 = arith.constant 0 : index
    %17 = vector.load %arg7[%c0_12, %c0_13] : memref<1x32xf32, #tpu.memory_space<vmem>>, vector<1x32xf32>
    %c0_14 = arith.constant 0 : index
    %c0_15 = arith.constant 0 : index
    %18 = vector.load %arg8[%c0_14, %c0_15] : memref<1x32xf32, #tpu.memory_space<vmem>>, vector<1x32xf32>
    %cst_16 = arith.constant dense<0.000000e+00> : vector<8xf32>
    %19 = vector.multi_reduction <add>, %16, %cst_16 [1] : vector<8x32xf32> to vector<8xf32>
    %20 = vector.shape_cast %19 : vector<8xf32> to vector<8x1xf32>
    %cst_17 = arith.constant 3.200000e+01 : f32
    %21 = vector.broadcast %cst_17 : f32 to vector<8x1xf32>
    %22 = arith.divf %20, %21 : vector<8x1xf32>
    %23 = vector.broadcast %22 : vector<8x1xf32> to vector<8x32xf32>
    %24 = arith.subf %16, %23 : vector<8x32xf32>
    %25 = arith.mulf %24, %24 : vector<8x32xf32>
    %cst_18 = arith.constant dense<0.000000e+00> : vector<8xf32>
    %26 = vector.multi_reduction <add>, %25, %cst_18 [1] : vector<8x32xf32> to vector<8xf32>
    %27 = vector.shape_cast %26 : vector<8xf32> to vector<8x1xf32>
    %cst_19 = arith.constant 3.200000e+01 : f32
    %28 = vector.broadcast %cst_19 : f32 to vector<8x1xf32>
    %29 = arith.divf %27, %28 : vector<8x1xf32>
    %30 = vector.broadcast %22 : vector<8x1xf32> to vector<8x32xf32>
    %31 = arith.subf %16, %30 : vector<8x32xf32>
    %cst_20 = arith.constant 9.99999974E-6 : f32
    %32 = vector.broadcast %cst_20 : f32 to vector<8x1xf32>
    %33 = arith.addf %29, %32 : vector<8x1xf32>
    %34 = math.rsqrt %33 : vector<8x1xf32>
    %35 = vector.broadcast %34 : vector<8x1xf32> to vector<8x32xf32>
    %36 = arith.mulf %31, %35 : vector<8x32xf32>
    %37 = vector.broadcast %17 : vector<1x32xf32> to vector<8x32xf32>
    %38 = arith.mulf %36, %37 : vector<8x32xf32>
    %39 = vector.broadcast %18 : vector<1x32xf32> to vector<8x32xf32>
    %40 = arith.addf %38, %39 : vector<8x32xf32>
    %41 = arith.truncf %40 : vector<8x32xf32> to vector<8x32xbf16>
    %c0_21 = arith.constant 0 : index
    %c0_22 = arith.constant 0 : index
    %c0_23 = arith.constant 0 : index
    %42 = vector.load %arg9[%c0_21, %c0_22, %c0_23] : memref<1x8x32xbf16, #tpu.memory_space<vmem>>, vector<1x8x32xbf16>
    %43 = vector.shape_cast %42 : vector<1x8x32xbf16> to vector<8x32xbf16>
    %44 = vector.shape_cast %41 : vector<8x32xbf16> to vector<1x8x32xbf16>
    tpu.vector_store %arg9[%c0_21, %c0_22, %c0_23], %44 {strides = array<i32>} : memref<1x8x32xbf16, #tpu.memory_space<vmem>>, vector<1x8x32xbf16>,
    return
  }
  func.func @transform_0(%arg0: i32, %arg1: i32) -> (i32, i32, i32) {
    %c0_i32 = arith.constant 0 : i32
    %c0_i32_0 = arith.constant 0 : i32
    return %arg0, %arg1, %c0_i32 : i32, i32, i32
  }
  func.func @transform_1(%arg0: i32, %arg1: i32) -> (i32, i32) {
    %c0_i32 = arith.constant 0 : i32
    %c0_i32_0 = arith.constant 0 : i32
    %c0_i32_1 = arith.constant 0 : i32
    return %c0_i32, %c0_i32_0 : i32, i32
  }
  func.func @transform_2(%arg0: i32, %arg1: i32) -> (i32, i32) {
    %c0_i32 = arith.constant 0 : i32
    %c0_i32_0 = arith.constant 0 : i32
    %c0_i32_1 = arith.constant 0 : i32
    return %c0_i32, %c0_i32_0 : i32, i32
  }
  func.func @transform_3(%arg0: i32, %arg1: i32) -> (i32, i32) {
    %c0_i32 = arith.constant 0 : i32
    %c0_i32_0 = arith.constant 0 : i32
    %c0_i32_1 = arith.constant 0 : i32
    return %c0_i32, %c0_i32_0 : i32, i32
  }
  func.func @transform_4(%arg0: i32, %arg1: i32) -> (i32, i32) {
    %c0_i32 = arith.constant 0 : i32
    %c0_i32_0 = arith.constant 0 : i32
    %c0_i32_1 = arith.constant 0 : i32
    return %c0_i32, %c0_i32_0 : i32, i32
  }
  func.func @transform_5(%arg0: i32, %arg1: i32) -> (i32, i32) {
    %c0_i32 = arith.constant 0 : i32
    %c0_i32_0 = arith.constant 0 : i32
    %c0_i32_1 = arith.constant 0 : i32
    return %c0_i32, %c0_i32_0 : i32, i32
  }
  func.func @transform_6(%arg0: i32, %arg1: i32) -> (i32, i32) {
    %c0_i32 = arith.constant 0 : i32
    %c0_i32_0 = arith.constant 0 : i32
    %c0_i32_1 = arith.constant 0 : i32
    return %c0_i32, %c0_i32_0 : i32, i32
  }
  func.func @transform_7(%arg0: i32, %arg1: i32) -> (i32, i32, i32) {
    %c0_i32 = arith.constant 0 : i32
    %c0_i32_0 = arith.constant 0 : i32
    return %arg0, %arg1, %c0_i32 : i32, i32, i32
  }
}

module attributes {stable_mosaic.version = 11 : i64} {
  func.func @_ffn_block_kernel(%arg0: i32, %arg1: i32, %arg2: memref<1x8x32xbf16, #tpu.memory_space<vmem>>, %arg3: memref<32x64xbf16, #tpu.memory_space<vmem>>, %arg4: memref<1x64xf32, #tpu.memory_space<vmem>>, %arg5: memref<64x32xbf16, #tpu.memory_space<vmem>>, %arg6: memref<1x32xf32, #tpu.memory_space<vmem>>, %arg7: memref<1x32xf32, #tpu.memory_space<vmem>>, %arg8: memref<1x32xf32, #tpu.memory_space<vmem>>, %arg9: memref<1x32xf32, #tpu.memory_space<vmem>>, %arg10: memref<1x32xf32, #tpu.memory_space<vmem>>, %arg11: memref<1x8x32xbf16, #tpu.memory_space<vmem>>) attributes {dimension_semantics = [#tpu.dimension_semantics<parallel>, #tpu.dimension_semantics<parallel>], iteration_bounds = array<i64: 2, 1>, scalar_prefetch = 0 : i64, scratch_operands = 0 : i64, tpu.core_type = #tpu.core_type<tc>, window_params = [{transform_indices = @transform_0, window_bounds = array<i64: 1, 8, 32>}, {pipeline_mode = #tpu.pipeline_mode<synchronous>, transform_indices = @transform_1, window_bounds = array<i64: 32, 64>}, {pipeline_mode = #tpu.pipeline_mode<synchronous>, transform_indices = @transform_2, window_bounds = array<i64: 1, 64>}, {pipeline_mode = #tpu.pipeline_mode<synchronous>, transform_indices = @transform_3, window_bounds = array<i64: 64, 32>}, {pipeline_mode = #tpu.pipeline_mode<synchronous>, transform_indices = @transform_4, window_bounds = array<i64: 1, 32>}, {pipeline_mode = #tpu.pipeline_mode<synchronous>, transform_indices = @transform_5, window_bounds = array<i64: 1, 32>}, {pipeline_mode = #tpu.pipeline_mode<synchronous>, transform_indices = @transform_6, window_bounds = array<i64: 1, 32>}, {pipeline_mode = #tpu.pipeline_mode<synchronous>, transform_indices = @transform_7, window_bounds = array<i64: 1, 32>}, {pipeline_mode = #tpu.pipeline_mode<synchronous>, transform_indices = @transform_8, window_bounds = array<i64: 1, 32>}, {transform_indices = @transform_9, window_bounds = array<i64: 1, 8, 32>}]} {
    %c0 = arith.constant 0 : index
    %c0_0 = arith.constant 0 : index
    %c0_1 = arith.constant 0 : index
    %0 = vector.load %arg2[%c0, %c0_0, %c0_1] : memref<1x8x32xbf16, #tpu.memory_space<vmem>>, vector<1x8x32xbf16>
    %1 = vector.shape_cast %0 : vector<1x8x32xbf16> to vector<8x32xbf16>
    %2 = arith.extf %1 : vector<8x32xbf16> to vector<8x32xf32>
    %c0_2 = arith.constant 0 : index
    %c0_3 = arith.constant 0 : index
    %3 = vector.load %arg3[%c0_2, %c0_3] : memref<32x64xbf16, #tpu.memory_space<vmem>>, vector<32x64xbf16>
    %cst = arith.constant dense<0.000000e+00> : vector<8x64xf32>
    %4 = tpu.matmul %1, %3, %cst {dimension_numbers = #tpu.dot_dimension_numbers<[1], [0], [0], [1], [0, 0, 1, 1], [], []>} : vector<8x32xbf16>, vector<32x64xbf16>, vector<8x64xf32> -> vector<8x64xf32>
    %c0_4 = arith.constant 0 : index
    %c0_5 = arith.constant 0 : index
    %5 = vector.load %arg4[%c0_4, %c0_5] : memref<1x64xf32, #tpu.memory_space<vmem>>, vector<1x64xf32>
    %6 = vector.broadcast %5 : vector<1x64xf32> to vector<8x64xf32>
    %7 = arith.addf %4, %6 : vector<8x64xf32>
    %cst_6 = arith.constant 0.000000e+00 : f32
    %8 = vector.broadcast %cst_6 : f32 to vector<8x64xf32>
    %9 = arith.maximumf %7, %8 : vector<8x64xf32>
    %10 = arith.truncf %9 : vector<8x64xf32> to vector<8x64xbf16>
    %c0_7 = arith.constant 0 : index
    %c0_8 = arith.constant 0 : index
    %11 = vector.load %arg5[%c0_7, %c0_8] : memref<64x32xbf16, #tpu.memory_space<vmem>>, vector<64x32xbf16>
    %cst_9 = arith.constant dense<0.000000e+00> : vector<8x32xf32>
    %12 = tpu.matmul %10, %11, %cst_9 {dimension_numbers = #tpu.dot_dimension_numbers<[1], [0], [0], [1], [0, 0, 1, 1], [], []>} : vector<8x64xbf16>, vector<64x32xbf16>, vector<8x32xf32> -> vector<8x32xf32>
    %c0_10 = arith.constant 0 : index
    %c0_11 = arith.constant 0 : index
    %13 = vector.load %arg6[%c0_10, %c0_11] : memref<1x32xf32, #tpu.memory_space<vmem>>, vector<1x32xf32>
    %14 = vector.broadcast %13 : vector<1x32xf32> to vector<8x32xf32>
    %15 = arith.addf %12, %14 : vector<8x32xf32>
    %16 = arith.addf %2, %15 : vector<8x32xf32>
    %c0_12 = arith.constant 0 : index
    %c0_13 = arith.constant 0 : index
    %17 = vector.load %arg7[%c0_12, %c0_13] : memref<1x32xf32, #tpu.memory_space<vmem>>, vector<1x32xf32>
    %c0_14 = arith.constant 0 : index
    %c0_15 = arith.constant 0 : index
    %18 = vector.load %arg8[%c0_14, %c0_15] : memref<1x32xf32, #tpu.memory_space<vmem>>, vector<1x32xf32>
    %cst_16 = arith.constant dense<0.000000e+00> : vector<8xf32>
    %19 = vector.multi_reduction <add>, %16, %cst_16 [1] : vector<8x32xf32> to vector<8xf32>
    %20 = vector.shape_cast %19 : vector<8xf32> to vector<8x1xf32>
    %cst_17 = arith.constant 3.200000e+01 : f32
    %21 = vector.broadcast %cst_17 : f32 to vector<8x1xf32>
    %22 = arith.divf %20, %21 : vector<8x1xf32>
    %23 = vector.broadcast %22 : vector<8x1xf32> to vector<8x32xf32>
    %24 = arith.subf %16, %23 : vector<8x32xf32>
    %25 = arith.mulf %24, %24 : vector<8x32xf32>
    %cst_18 = arith.constant dense<0.000000e+00> : vector<8xf32>
    %26 = vector.multi_reduction <add>, %25, %cst_18 [1] : vector<8x32xf32> to vector<8xf32>
    %27 = vector.shape_cast %26 : vector<8xf32> to vector<8x1xf32>
    %cst_19 = arith.constant 3.200000e+01 : f32
    %28 = vector.broadcast %cst_19 : f32 to vector<8x1xf32>
    %29 = arith.divf %27, %28 : vector<8x1xf32>
    %30 = vector.broadcast %22 : vector<8x1xf32> to vector<8x32xf32>
    %31 = arith.subf %16, %30 : vector<8x32xf32>
    %cst_20 = arith.constant 9.99999974E-6 : f32
    %32 = vector.broadcast %cst_20 : f32 to vector<8x1xf32>
    %33 = arith.addf %29, %32 : vector<8x1xf32>
    %34 = math.rsqrt %33 : vector<8x1xf32>
    %35 = vector.broadcast %34 : vector<8x1xf32> to vector<8x32xf32>
    %36 = arith.mulf %31, %35 : vector<8x32xf32>
    %37 = vector.broadcast %17 : vector<1x32xf32> to vector<8x32xf32>
    %38 = arith.mulf %36, %37 : vector<8x32xf32>
    %39 = vector.broadcast %18 : vector<1x32xf32> to vector<8x32xf32>
    %40 = arith.addf %38, %39 : vector<8x32xf32>
    %c0_21 = arith.constant 0 : index
    %c0_22 = arith.constant 0 : index
    %41 = vector.load %arg9[%c0_21, %c0_22] : memref<1x32xf32, #tpu.memory_space<vmem>>, vector<1x32xf32>
    %c0_23 = arith.constant 0 : index
    %c0_24 = arith.constant 0 : index
    %42 = vector.load %arg10[%c0_23, %c0_24] : memref<1x32xf32, #tpu.memory_space<vmem>>, vector<1x32xf32>
    %cst_25 = arith.constant dense<0.000000e+00> : vector<8xf32>
    %43 = vector.multi_reduction <add>, %40, %cst_25 [1] : vector<8x32xf32> to vector<8xf32>
    %44 = vector.shape_cast %43 : vector<8xf32> to vector<8x1xf32>
    %cst_26 = arith.constant 3.200000e+01 : f32
    %45 = vector.broadcast %cst_26 : f32 to vector<8x1xf32>
    %46 = arith.divf %44, %45 : vector<8x1xf32>
    %47 = vector.broadcast %46 : vector<8x1xf32> to vector<8x32xf32>
    %48 = arith.subf %40, %47 : vector<8x32xf32>
    %49 = arith.mulf %48, %48 : vector<8x32xf32>
    %cst_27 = arith.constant dense<0.000000e+00> : vector<8xf32>
    %50 = vector.multi_reduction <add>, %49, %cst_27 [1] : vector<8x32xf32> to vector<8xf32>
    %51 = vector.shape_cast %50 : vector<8xf32> to vector<8x1xf32>
    %cst_28 = arith.constant 3.200000e+01 : f32
    %52 = vector.broadcast %cst_28 : f32 to vector<8x1xf32>
    %53 = arith.divf %51, %52 : vector<8x1xf32>
    %54 = vector.broadcast %46 : vector<8x1xf32> to vector<8x32xf32>
    %55 = arith.subf %40, %54 : vector<8x32xf32>
    %cst_29 = arith.constant 9.99999974E-6 : f32
    %56 = vector.broadcast %cst_29 : f32 to vector<8x1xf32>
    %57 = arith.addf %53, %56 : vector<8x1xf32>
    %58 = math.rsqrt %57 : vector<8x1xf32>
    %59 = vector.broadcast %58 : vector<8x1xf32> to vector<8x32xf32>
    %60 = arith.mulf %55, %59 : vector<8x32xf32>
    %61 = vector.broadcast %41 : vector<1x32xf32> to vector<8x32xf32>
    %62 = arith.mulf %60, %61 : vector<8x32xf32>
    %63 = vector.broadcast %42 : vector<1x32xf32> to vector<8x32xf32>
    %64 = arith.addf %62, %63 : vector<8x32xf32>
    %65 = arith.truncf %64 : vector<8x32xf32> to vector<8x32xbf16>
    %c0_30 = arith.constant 0 : index
    %c0_31 = arith.constant 0 : index
    %c0_32 = arith.constant 0 : index
    %66 = vector.load %arg11[%c0_30, %c0_31, %c0_32] : memref<1x8x32xbf16, #tpu.memory_space<vmem>>, vector<1x8x32xbf16>
    %67 = vector.shape_cast %66 : vector<1x8x32xbf16> to vector<8x32xbf16>
    %68 = vector.shape_cast %65 : vector<8x32xbf16> to vector<1x8x32xbf16>
    tpu.vector_store %arg11[%c0_30, %c0_31, %c0_32], %68 {strides = array<i32>} : memref<1x8x32xbf16, #tpu.memory_space<vmem>>, vector<1x8x32xbf16>,
    return
  }
  func.func @transform_0(%arg0: i32, %arg1: i32) -> (i32, i32, i32) {
    %c0_i32 = arith.constant 0 : i32
    %c0_i32_0 = arith.constant 0 : i32
    return %arg0, %arg1, %c0_i32 : i32, i32, i32
  }
  func.func @transform_1(%arg0: i32, %arg1: i32) -> (i32, i32) {
    %c0_i32 = arith.constant 0 : i32
    %c0_i32_0 = arith.constant 0 : i32
    %c0_i32_1 = arith.constant 0 : i32
    return %c0_i32, %c0_i32_0 : i32, i32
  }
  func.func @transform_2(%arg0: i32, %arg1: i32) -> (i32, i32) {
    %c0_i32 = arith.constant 0 : i32
    %c0_i32_0 = arith.constant 0 : i32
    %c0_i32_1 = arith.constant 0 : i32
    return %c0_i32, %c0_i32_0 : i32, i32
  }
  func.func @transform_3(%arg0: i32, %arg1: i32) -> (i32, i32) {
    %c0_i32 = arith.constant 0 : i32
    %c0_i32_0 = arith.constant 0 : i32
    %c0_i32_1 = arith.constant 0 : i32
    return %c0_i32, %c0_i32_0 : i32, i32
  }
  func.func @transform_4(%arg0: i32, %arg1: i32) -> (i32, i32) {
    %c0_i32 = arith.constant 0 : i32
    %c0_i32_0 = arith.constant 0 : i32
    %c0_i32_1 = arith.constant 0 : i32
    return %c0_i32, %c0_i32_0 : i32, i32
  }
  func.func @transform_5(%arg0: i32, %arg1: i32) -> (i32, i32) {
    %c0_i32 = arith.constant 0 : i32
    %c0_i32_0 = arith.constant 0 : i32
    %c0_i32_1 = arith.constant 0 : i32
    return %c0_i32, %c0_i32_0 : i32, i32
  }
  func.func @transform_6(%arg0: i32, %arg1: i32) -> (i32, i32) {
    %c0_i32 = arith.constant 0 : i32
    %c0_i32_0 = arith.constant 0 : i32
    %c0_i32_1 = arith.constant 0 : i32
    return %c0_i32, %c0_i32_0 : i32, i32
  }
  func.func @transform_7(%arg0: i32, %arg1: i32) -> (i32, i32) {
    %c0_i32 = arith.constant 0 : i32
    %c0_i32_0 = arith.constant 0 : i32
    %c0_i32_1 = arith.constant 0 : i32
    return %c0_i32, %c0_i32_0 : i32, i32
  }
  func.func @transform_8(%arg0: i32, %arg1: i32) -> (i32, i32) {
    %c0_i32 = arith.constant 0 : i32
    %c0_i32_0 = arith.constant 0 : i32
    %c0_i32_1 = arith.constant 0 : i32
    return %c0_i32, %c0_i32_0 : i32, i32
  }
  func.func @transform_9(%arg0: i32, %arg1: i32) -> (i32, i32, i32) {
    %c0_i32 = arith.constant 0 : i32
    %c0_i32_0 = arith.constant 0 : i32
    return %arg0, %arg1, %c0_i32 : i32, i32, i32
  }
}

module attributes {stable_mosaic.version = 11 : i64} {
  func.func @_self_attn_block_kernel(%arg0: i32, %arg1: memref<1x8x32xbf16, #tpu.memory_space<vmem>>, %arg2: memref<32x96xbf16, #tpu.memory_space<vmem>>, %arg3: memref<1x96xf32, #tpu.memory_space<vmem>>, %arg4: memref<32x32xbf16, #tpu.memory_space<vmem>>, %arg5: memref<1x32xf32, #tpu.memory_space<vmem>>, %arg6: memref<1x1x8xf32, #tpu.memory_space<vmem>>, %arg7: memref<1x32xf32, #tpu.memory_space<vmem>>, %arg8: memref<1x32xf32, #tpu.memory_space<vmem>>, %arg9: memref<1x8x32xbf16, #tpu.memory_space<vmem>>) attributes {dimension_semantics = [#tpu.dimension_semantics<parallel>], iteration_bounds = array<i64: 2>, scalar_prefetch = 0 : i64, scratch_operands = 0 : i64, tpu.core_type = #tpu.core_type<tc>, window_params = [{transform_indices = @transform_0, window_bounds = array<i64: 1, 8, 32>}, {pipeline_mode = #tpu.pipeline_mode<synchronous>, transform_indices = @transform_1, window_bounds = array<i64: 32, 96>}, {pipeline_mode = #tpu.pipeline_mode<synchronous>, transform_indices = @transform_2, window_bounds = array<i64: 1, 96>}, {pipeline_mode = #tpu.pipeline_mode<synchronous>, transform_indices = @transform_3, window_bounds = array<i64: 32, 32>}, {pipeline_mode = #tpu.pipeline_mode<synchronous>, transform_indices = @transform_4, window_bounds = array<i64: 1, 32>}, {transform_indices = @transform_5, window_bounds = array<i64: 1, 1, 8>}, {pipeline_mode = #tpu.pipeline_mode<synchronous>, transform_indices = @transform_6, window_bounds = array<i64: 1, 32>}, {pipeline_mode = #tpu.pipeline_mode<synchronous>, transform_indices = @transform_7, window_bounds = array<i64: 1, 32>}, {transform_indices = @transform_8, window_bounds = array<i64: 1, 8, 32>}]} {
    %c0 = arith.constant 0 : index
    %c0_0 = arith.constant 0 : index
    %c0_1 = arith.constant 0 : index
    %0 = vector.load %arg1[%c0, %c0_0, %c0_1] : memref<1x8x32xbf16, #tpu.memory_space<vmem>>, vector<1x8x32xbf16>
    %1 = vector.shape_cast %0 : vector<1x8x32xbf16> to vector<8x32xbf16>
    %2 = arith.extf %1 : vector<8x32xbf16> to vector<8x32xf32>
    %c0_2 = arith.constant 0 : index
    %c0_3 = arith.constant 0 : index
    %3 = vector.load %arg2[%c0_2, %c0_3] : memref<32x96xbf16, #tpu.memory_space<vmem>>, vector<32x96xbf16>
    %cst = arith.constant dense<0.000000e+00> : vector<8x96xf32>
    %4 = tpu.matmul %1, %3, %cst {dimension_numbers = #tpu.dot_dimension_numbers<[1], [0], [0], [1], [0, 0, 1, 1], [], []>} : vector<8x32xbf16>, vector<32x96xbf16>, vector<8x96xf32> -> vector<8x96xf32>
    %c0_4 = arith.constant 0 : index
    %c0_5 = arith.constant 0 : index
    %5 = vector.load %arg3[%c0_4, %c0_5] : memref<1x96xf32, #tpu.memory_space<vmem>>, vector<1x96xf32>
    %6 = vector.broadcast %5 : vector<1x96xf32> to vector<8x96xf32>
    %7 = arith.addf %4, %6 : vector<8x96xf32>
    %8 = vector.extract_strided_slice %7 {offsets = [0, 0], sizes = [8, 32], strides = [1, 1]} : vector<8x96xf32> to vector<8x32xf32>
    %9 = arith.truncf %8 : vector<8x32xf32> to vector<8x32xbf16>
    %10 = vector.extract_strided_slice %7 {offsets = [0, 32], sizes = [8, 32], strides = [1, 1]} : vector<8x96xf32> to vector<8x32xf32>
    %11 = arith.truncf %10 : vector<8x32xf32> to vector<8x32xbf16>
    %12 = vector.extract_strided_slice %7 {offsets = [0, 64], sizes = [8, 32], strides = [1, 1]} : vector<8x96xf32> to vector<8x32xf32>
    %13 = arith.truncf %12 : vector<8x32xf32> to vector<8x32xbf16>
    %c0_6 = arith.constant 0 : index
    %c0_7 = arith.constant 0 : index
    %c0_8 = arith.constant 0 : index
    %14 = vector.load %arg6[%c0_6, %c0_7, %c0_8] : memref<1x1x8xf32, #tpu.memory_space<vmem>>, vector<1x1x8xf32>
    %15 = vector.shape_cast %14 : vector<1x1x8xf32> to vector<1x8xf32>
    %16 = vector.shape_cast %15 : vector<1x8xf32> to vector<1x8xf32>
    %17 = vector.broadcast %16 : vector<1x8xf32> to vector<8x8xf32>
    %18 = vector.extract_strided_slice %9 {offsets = [0, 0], sizes = [8, 8], strides = [1, 1]} : vector<8x32xbf16> to vector<8x8xbf16>
    %19 = vector.extract_strided_slice %11 {offsets = [0, 0], sizes = [8, 8], strides = [1, 1]} : vector<8x32xbf16> to vector<8x8xbf16>
    %cst_9 = arith.constant dense<0.000000e+00> : vector<8x8xf32>
    %20 = tpu.matmul %18, %19, %cst_9 {dimension_numbers = #tpu.dot_dimension_numbers<[1], [1], [0], [0], [0, 0, 1, 0], [], []>} : vector<8x8xbf16>, vector<8x8xbf16>, vector<8x8xf32> -> vector<8x8xf32>
    %21 = arith.addf %20, %17 : vector<8x8xf32>
    %cst_10 = arith.constant dense<0xFF800000> : vector<8xf32>
    %22 = vector.multi_reduction <maximumf>, %21, %cst_10 [1] : vector<8x8xf32> to vector<8xf32>
    %23 = vector.shape_cast %22 : vector<8xf32> to vector<8x1xf32>
    %24 = vector.broadcast %23 : vector<8x1xf32> to vector<8x8xf32>
    %25 = arith.subf %21, %24 : vector<8x8xf32>
    %26 = math.exp %25 : vector<8x8xf32>
    %cst_11 = arith.constant dense<0.000000e+00> : vector<8xf32>
    %27 = vector.multi_reduction <add>, %26, %cst_11 [1] : vector<8x8xf32> to vector<8xf32>
    %28 = vector.shape_cast %27 : vector<8xf32> to vector<8x1xf32>
    %29 = tpu.reciprocal %28 {approx = true} : vector<8x1xf32> -> vector<8x1xf32>
    %30 = vector.broadcast %29 : vector<8x1xf32> to vector<8x8xf32>
    %31 = arith.mulf %26, %30 : vector<8x8xf32>
    %32 = arith.truncf %31 : vector<8x8xf32> to vector<8x8xbf16>
    %33 = vector.extract_strided_slice %13 {offsets = [0, 0], sizes = [8, 8], strides = [1, 1]} : vector<8x32xbf16> to vector<8x8xbf16>
    %cst_12 = arith.constant dense<0.000000e+00> : vector<8x8xf32>
    %34 = tpu.matmul %32, %33, %cst_12 {dimension_numbers = #tpu.dot_dimension_numbers<[1], [0], [0], [1], [0, 0, 1, 1], [], []>} : vector<8x8xbf16>, vector<8x8xbf16>, vector<8x8xf32> -> vector<8x8xf32>
    %35 = vector.extract_strided_slice %9 {offsets = [0, 8], sizes = [8, 8], strides = [1, 1]} : vector<8x32xbf16> to vector<8x8xbf16>
    %36 = vector.extract_strided_slice %11 {offsets = [0, 8], sizes = [8, 8], strides = [1, 1]} : vector<8x32xbf16> to vector<8x8xbf16>
    %cst_13 = arith.constant dense<0.000000e+00> : vector<8x8xf32>
    %37 = tpu.matmul %35, %36, %cst_13 {dimension_numbers = #tpu.dot_dimension_numbers<[1], [1], [0], [0], [0, 0, 1, 0], [], []>} : vector<8x8xbf16>, vector<8x8xbf16>, vector<8x8xf32> -> vector<8x8xf32>
    %38 = arith.addf %37, %17 : vector<8x8xf32>
    %cst_14 = arith.constant dense<0xFF800000> : vector<8xf32>
    %39 = vector.multi_reduction <maximumf>, %38, %cst_14 [1] : vector<8x8xf32> to vector<8xf32>
    %40 = vector.shape_cast %39 : vector<8xf32> to vector<8x1xf32>
    %41 = vector.broadcast %40 : vector<8x1xf32> to vector<8x8xf32>
    %42 = arith.subf %38, %41 : vector<8x8xf32>
    %43 = math.exp %42 : vector<8x8xf32>
    %cst_15 = arith.constant dense<0.000000e+00> : vector<8xf32>
    %44 = vector.multi_reduction <add>, %43, %cst_15 [1] : vector<8x8xf32> to vector<8xf32>
    %45 = vector.shape_cast %44 : vector<8xf32> to vector<8x1xf32>
    %46 = tpu.reciprocal %45 {approx = true} : vector<8x1xf32> -> vector<8x1xf32>
    %47 = vector.broadcast %46 : vector<8x1xf32> to vector<8x8xf32>
    %48 = arith.mulf %43, %47 : vector<8x8xf32>
    %49 = arith.truncf %48 : vector<8x8xf32> to vector<8x8xbf16>
    %50 = vector.extract_strided_slice %13 {offsets = [0, 8], sizes = [8, 8], strides = [1, 1]} : vector<8x32xbf16> to vector<8x8xbf16>
    %cst_16 = arith.constant dense<0.000000e+00> : vector<8x8xf32>
    %51 = tpu.matmul %49, %50, %cst_16 {dimension_numbers = #tpu.dot_dimension_numbers<[1], [0], [0], [1], [0, 0, 1, 1], [], []>} : vector<8x8xbf16>, vector<8x8xbf16>, vector<8x8xf32> -> vector<8x8xf32>
    %52 = vector.extract_strided_slice %9 {offsets = [0, 16], sizes = [8, 8], strides = [1, 1]} : vector<8x32xbf16> to vector<8x8xbf16>
    %53 = vector.extract_strided_slice %11 {offsets = [0, 16], sizes = [8, 8], strides = [1, 1]} : vector<8x32xbf16> to vector<8x8xbf16>
    %cst_17 = arith.constant dense<0.000000e+00> : vector<8x8xf32>
    %54 = tpu.matmul %52, %53, %cst_17 {dimension_numbers = #tpu.dot_dimension_numbers<[1], [1], [0], [0], [0, 0, 1, 0], [], []>} : vector<8x8xbf16>, vector<8x8xbf16>, vector<8x8xf32> -> vector<8x8xf32>
    %55 = arith.addf %54, %17 : vector<8x8xf32>
    %cst_18 = arith.constant dense<0xFF800000> : vector<8xf32>
    %56 = vector.multi_reduction <maximumf>, %55, %cst_18 [1] : vector<8x8xf32> to vector<8xf32>
    %57 = vector.shape_cast %56 : vector<8xf32> to vector<8x1xf32>
    %58 = vector.broadcast %57 : vector<8x1xf32> to vector<8x8xf32>
    %59 = arith.subf %55, %58 : vector<8x8xf32>
    %60 = math.exp %59 : vector<8x8xf32>
    %cst_19 = arith.constant dense<0.000000e+00> : vector<8xf32>
    %61 = vector.multi_reduction <add>, %60, %cst_19 [1] : vector<8x8xf32> to vector<8xf32>
    %62 = vector.shape_cast %61 : vector<8xf32> to vector<8x1xf32>
    %63 = tpu.reciprocal %62 {approx = true} : vector<8x1xf32> -> vector<8x1xf32>
    %64 = vector.broadcast %63 : vector<8x1xf32> to vector<8x8xf32>
    %65 = arith.mulf %60, %64 : vector<8x8xf32>
    %66 = arith.truncf %65 : vector<8x8xf32> to vector<8x8xbf16>
    %67 = vector.extract_strided_slice %13 {offsets = [0, 16], sizes = [8, 8], strides = [1, 1]} : vector<8x32xbf16> to vector<8x8xbf16>
    %cst_20 = arith.constant dense<0.000000e+00> : vector<8x8xf32>
    %68 = tpu.matmul %66, %67, %cst_20 {dimension_numbers = #tpu.dot_dimension_numbers<[1], [0], [0], [1], [0, 0, 1, 1], [], []>} : vector<8x8xbf16>, vector<8x8xbf16>, vector<8x8xf32> -> vector<8x8xf32>
    %69 = vector.extract_strided_slice %9 {offsets = [0, 24], sizes = [8, 8], strides = [1, 1]} : vector<8x32xbf16> to vector<8x8xbf16>
    %70 = vector.extract_strided_slice %11 {offsets = [0, 24], sizes = [8, 8], strides = [1, 1]} : vector<8x32xbf16> to vector<8x8xbf16>
    %cst_21 = arith.constant dense<0.000000e+00> : vector<8x8xf32>
    %71 = tpu.matmul %69, %70, %cst_21 {dimension_numbers = #tpu.dot_dimension_numbers<[1], [1], [0], [0], [0, 0, 1, 0], [], []>} : vector<8x8xbf16>, vector<8x8xbf16>, vector<8x8xf32> -> vector<8x8xf32>
    %72 = arith.addf %71, %17 : vector<8x8xf32>
    %cst_22 = arith.constant dense<0xFF800000> : vector<8xf32>
    %73 = vector.multi_reduction <maximumf>, %72, %cst_22 [1] : vector<8x8xf32> to vector<8xf32>
    %74 = vector.shape_cast %73 : vector<8xf32> to vector<8x1xf32>
    %75 = vector.broadcast %74 : vector<8x1xf32> to vector<8x8xf32>
    %76 = arith.subf %72, %75 : vector<8x8xf32>
    %77 = math.exp %76 : vector<8x8xf32>
    %cst_23 = arith.constant dense<0.000000e+00> : vector<8xf32>
    %78 = vector.multi_reduction <add>, %77, %cst_23 [1] : vector<8x8xf32> to vector<8xf32>
    %79 = vector.shape_cast %78 : vector<8xf32> to vector<8x1xf32>
    %80 = tpu.reciprocal %79 {approx = true} : vector<8x1xf32> -> vector<8x1xf32>
    %81 = vector.broadcast %80 : vector<8x1xf32> to vector<8x8xf32>
    %82 = arith.mulf %77, %81 : vector<8x8xf32>
    %83 = arith.truncf %82 : vector<8x8xf32> to vector<8x8xbf16>
    %84 = vector.extract_strided_slice %13 {offsets = [0, 24], sizes = [8, 8], strides = [1, 1]} : vector<8x32xbf16> to vector<8x8xbf16>
    %cst_24 = arith.constant dense<0.000000e+00> : vector<8x8xf32>
    %85 = tpu.matmul %83, %84, %cst_24 {dimension_numbers = #tpu.dot_dimension_numbers<[1], [0], [0], [1], [0, 0, 1, 1], [], []>} : vector<8x8xbf16>, vector<8x8xbf16>, vector<8x8xf32> -> vector<8x8xf32>
    %86 = tpu.concatenate %34, %51, %68, %85 in 1 : vector<8x8xf32>, vector<8x8xf32>, vector<8x8xf32>, vector<8x8xf32> -> vector<8x32xf32>
    %87 = arith.truncf %86 : vector<8x32xf32> to vector<8x32xbf16>
    %c0_25 = arith.constant 0 : index
    %c0_26 = arith.constant 0 : index
    %88 = vector.load %arg4[%c0_25, %c0_26] : memref<32x32xbf16, #tpu.memory_space<vmem>>, vector<32x32xbf16>
    %cst_27 = arith.constant dense<0.000000e+00> : vector<8x32xf32>
    %89 = tpu.matmul %87, %88, %cst_27 {dimension_numbers = #tpu.dot_dimension_numbers<[1], [0], [0], [1], [0, 0, 1, 1], [], []>} : vector<8x32xbf16>, vector<32x32xbf16>, vector<8x32xf32> -> vector<8x32xf32>
    %c0_28 = arith.constant 0 : index
    %c0_29 = arith.constant 0 : index
    %90 = vector.load %arg5[%c0_28, %c0_29] : memref<1x32xf32, #tpu.memory_space<vmem>>, vector<1x32xf32>
    %91 = vector.broadcast %90 : vector<1x32xf32> to vector<8x32xf32>
    %92 = arith.addf %89, %91 : vector<8x32xf32>
    %93 = arith.addf %2, %92 : vector<8x32xf32>
    %c0_30 = arith.constant 0 : index
    %c0_31 = arith.constant 0 : index
    %94 = vector.load %arg7[%c0_30, %c0_31] : memref<1x32xf32, #tpu.memory_space<vmem>>, vector<1x32xf32>
    %c0_32 = arith.constant 0 : index
    %c0_33 = arith.constant 0 : index
    %95 = vector.load %arg8[%c0_32, %c0_33] : memref<1x32xf32, #tpu.memory_space<vmem>>, vector<1x32xf32>
    %cst_34 = arith.constant dense<0.000000e+00> : vector<8xf32>
    %96 = vector.multi_reduction <add>, %93, %cst_34 [1] : vector<8x32xf32> to vector<8xf32>
    %97 = vector.shape_cast %96 : vector<8xf32> to vector<8x1xf32>
    %cst_35 = arith.constant 3.200000e+01 : f32
    %98 = vector.broadcast %cst_35 : f32 to vector<8x1xf32>
    %99 = arith.divf %97, %98 : vector<8x1xf32>
    %100 = vector.broadcast %99 : vector<8x1xf32> to vector<8x32xf32>
    %101 = arith.subf %93, %100 : vector<8x32xf32>
    %102 = arith.mulf %101, %101 : vector<8x32xf32>
    %cst_36 = arith.constant dense<0.000000e+00> : vector<8xf32>
    %103 = vector.multi_reduction <add>, %102, %cst_36 [1] : vector<8x32xf32> to vector<8xf32>
    %104 = vector.shape_cast %103 : vector<8xf32> to vector<8x1xf32>
    %cst_37 = arith.constant 3.200000e+01 : f32
    %105 = vector.broadcast %cst_37 : f32 to vector<8x1xf32>
    %106 = arith.divf %104, %105 : vector<8x1xf32>
    %107 = vector.broadcast %99 : vector<8x1xf32> to vector<8x32xf32>
    %108 = arith.subf %93, %107 : vector<8x32xf32>
    %cst_38 = arith.constant 9.99999974E-6 : f32
    %109 = vector.broadcast %cst_38 : f32 to vector<8x1xf32>
    %110 = arith.addf %106, %109 : vector<8x1xf32>
    %111 = math.rsqrt %110 : vector<8x1xf32>
    %112 = vector.broadcast %111 : vector<8x1xf32> to vector<8x32xf32>
    %113 = arith.mulf %108, %112 : vector<8x32xf32>
    %114 = vector.broadcast %94 : vector<1x32xf32> to vector<8x32xf32>
    %115 = arith.mulf %113, %114 : vector<8x32xf32>
    %116 = vector.broadcast %95 : vector<1x32xf32> to vector<8x32xf32>
    %117 = arith.addf %115, %116 : vector<8x32xf32>
    %118 = arith.truncf %117 : vector<8x32xf32> to vector<8x32xbf16>
    %c0_39 = arith.constant 0 : index
    %c0_40 = arith.constant 0 : index
    %c0_41 = arith.constant 0 : index
    %119 = vector.load %arg9[%c0_39, %c0_40, %c0_41] : memref<1x8x32xbf16, #tpu.memory_space<vmem>>, vector<1x8x32xbf16>
    %120 = vector.shape_cast %119 : vector<1x8x32xbf16> to vector<8x32xbf16>
    %121 = vector.shape_cast %118 : vector<8x32xbf16> to vector<1x8x32xbf16>
    tpu.vector_store %arg9[%c0_39, %c0_40, %c0_41], %121 {strides = array<i32>} : memref<1x8x32xbf16, #tpu.memory_space<vmem>>, vector<1x8x32xbf16>,
    return
  }
  func.func @transform_0(%arg0: i32) -> (i32, i32, i32) {
    %c0_i32 = arith.constant 0 : i32
    %c0_i32_0 = arith.constant 0 : i32
    %c0_i32_1 = arith.constant 0 : i32
    return %arg0, %c0_i32, %c0_i32_0 : i32, i32, i32
  }
  func.func @transform_1(%arg0: i32) -> (i32, i32) {
    %c0_i32 = arith.constant 0 : i32
    %c0_i32_0 = arith.constant 0 : i32
    %c0_i32_1 = arith.constant 0 : i32
    return %c0_i32, %c0_i32_0 : i32, i32
  }
  func.func @transform_2(%arg0: i32) -> (i32, i32) {
    %c0_i32 = arith.constant 0 : i32
    %c0_i32_0 = arith.constant 0 : i32
    %c0_i32_1 = arith.constant 0 : i32
    return %c0_i32, %c0_i32_0 : i32, i32
  }
  func.func @transform_3(%arg0: i32) -> (i32, i32) {
    %c0_i32 = arith.constant 0 : i32
    %c0_i32_0 = arith.constant 0 : i32
    %c0_i32_1 = arith.constant 0 : i32
    return %c0_i32, %c0_i32_0 : i32, i32
  }
  func.func @transform_4(%arg0: i32) -> (i32, i32) {
    %c0_i32 = arith.constant 0 : i32
    %c0_i32_0 = arith.constant 0 : i32
    %c0_i32_1 = arith.constant 0 : i32
    return %c0_i32, %c0_i32_0 : i32, i32
  }
  func.func @transform_5(%arg0: i32) -> (i32, i32, i32) {
    %c0_i32 = arith.constant 0 : i32
    %c0_i32_0 = arith.constant 0 : i32
    %c0_i32_1 = arith.constant 0 : i32
    return %arg0, %c0_i32, %c0_i32_0 : i32, i32, i32
  }
  func.func @transform_6(%arg0: i32) -> (i32, i32) {
    %c0_i32 = arith.constant 0 : i32
    %c0_i32_0 = arith.constant 0 : i32
    %c0_i32_1 = arith.constant 0 : i32
    return %c0_i32, %c0_i32_0 : i32, i32
  }
  func.func @transform_7(%arg0: i32) -> (i32, i32) {
    %c0_i32 = arith.constant 0 : i32
    %c0_i32_0 = arith.constant 0 : i32
    %c0_i32_1 = arith.constant 0 : i32
    return %c0_i32, %c0_i32_0 : i32, i32
  }
  func.func @transform_8(%arg0: i32) -> (i32, i32, i32) {
    %c0_i32 = arith.constant 0 : i32
    %c0_i32_0 = arith.constant 0 : i32
    %c0_i32_1 = arith.constant 0 : i32
    return %arg0, %c0_i32, %c0_i32_0 : i32, i32, i32
  }
}

module attributes {stable_mosaic.version = 11 : i64} {
  func.func @_self_attn_block_kernel(%arg0: i32, %arg1: memref<1x8x32xbf16, #tpu.memory_space<vmem>>, %arg2: memref<32x96xbf16, #tpu.memory_space<vmem>>, %arg3: memref<1x96xf32, #tpu.memory_space<vmem>>, %arg4: memref<32x32xbf16, #tpu.memory_space<vmem>>, %arg5: memref<1x32xf32, #tpu.memory_space<vmem>>, %arg6: memref<1x1x8xf32, #tpu.memory_space<vmem>>, %arg7: memref<1x32xf32, #tpu.memory_space<vmem>>, %arg8: memref<1x32xf32, #tpu.memory_space<vmem>>, %arg9: memref<1x8x32xbf16, #tpu.memory_space<vmem>>) attributes {dimension_semantics = [#tpu.dimension_semantics<parallel>], iteration_bounds = array<i64: 2>, scalar_prefetch = 0 : i64, scratch_operands = 0 : i64, tpu.core_type = #tpu.core_type<tc>, window_params = [{transform_indices = @transform_0, window_bounds = array<i64: 1, 8, 32>}, {pipeline_mode = #tpu.pipeline_mode<synchronous>, transform_indices = @transform_1, window_bounds = array<i64: 32, 96>}, {pipeline_mode = #tpu.pipeline_mode<synchronous>, transform_indices = @transform_2, window_bounds = array<i64: 1, 96>}, {pipeline_mode = #tpu.pipeline_mode<synchronous>, transform_indices = @transform_3, window_bounds = array<i64: 32, 32>}, {pipeline_mode = #tpu.pipeline_mode<synchronous>, transform_indices = @transform_4, window_bounds = array<i64: 1, 32>}, {transform_indices = @transform_5, window_bounds = array<i64: 1, 1, 8>}, {pipeline_mode = #tpu.pipeline_mode<synchronous>, transform_indices = @transform_6, window_bounds = array<i64: 1, 32>}, {pipeline_mode = #tpu.pipeline_mode<synchronous>, transform_indices = @transform_7, window_bounds = array<i64: 1, 32>}, {transform_indices = @transform_8, window_bounds = array<i64: 1, 8, 32>}]} {
    %c0 = arith.constant 0 : index
    %c0_0 = arith.constant 0 : index
    %c0_1 = arith.constant 0 : index
    %0 = vector.load %arg1[%c0, %c0_0, %c0_1] : memref<1x8x32xbf16, #tpu.memory_space<vmem>>, vector<1x8x32xbf16>
    %1 = vector.shape_cast %0 : vector<1x8x32xbf16> to vector<8x32xbf16>
    %2 = arith.extf %1 : vector<8x32xbf16> to vector<8x32xf32>
    %c0_2 = arith.constant 0 : index
    %c0_3 = arith.constant 0 : index
    %3 = vector.load %arg2[%c0_2, %c0_3] : memref<32x96xbf16, #tpu.memory_space<vmem>>, vector<32x96xbf16>
    %cst = arith.constant dense<0.000000e+00> : vector<8x96xf32>
    %4 = tpu.matmul %1, %3, %cst {dimension_numbers = #tpu.dot_dimension_numbers<[1], [0], [0], [1], [0, 0, 1, 1], [], []>} : vector<8x32xbf16>, vector<32x96xbf16>, vector<8x96xf32> -> vector<8x96xf32>
    %c0_4 = arith.constant 0 : index
    %c0_5 = arith.constant 0 : index
    %5 = vector.load %arg3[%c0_4, %c0_5] : memref<1x96xf32, #tpu.memory_space<vmem>>, vector<1x96xf32>
    %6 = vector.broadcast %5 : vector<1x96xf32> to vector<8x96xf32>
    %7 = arith.addf %4, %6 : vector<8x96xf32>
    %8 = vector.extract_strided_slice %7 {offsets = [0, 0], sizes = [8, 32], strides = [1, 1]} : vector<8x96xf32> to vector<8x32xf32>
    %9 = arith.truncf %8 : vector<8x32xf32> to vector<8x32xbf16>
    %10 = vector.extract_strided_slice %7 {offsets = [0, 32], sizes = [8, 32], strides = [1, 1]} : vector<8x96xf32> to vector<8x32xf32>
    %11 = arith.truncf %10 : vector<8x32xf32> to vector<8x32xbf16>
    %12 = vector.extract_strided_slice %7 {offsets = [0, 64], sizes = [8, 32], strides = [1, 1]} : vector<8x96xf32> to vector<8x32xf32>
    %13 = arith.truncf %12 : vector<8x32xf32> to vector<8x32xbf16>
    %c0_6 = arith.constant 0 : index
    %c0_7 = arith.constant 0 : index
    %c0_8 = arith.constant 0 : index
    %14 = vector.load %arg6[%c0_6, %c0_7, %c0_8] : memref<1x1x8xf32, #tpu.memory_space<vmem>>, vector<1x1x8xf32>
    %15 = vector.shape_cast %14 : vector<1x1x8xf32> to vector<1x8xf32>
    %16 = vector.shape_cast %15 : vector<1x8xf32> to vector<1x8xf32>
    %17 = vector.broadcast %16 : vector<1x8xf32> to vector<8x8xf32>
    %18 = tpu.iota {dimensions = array<i32: 0>} : vector<8x8xi32>
    %19 = tpu.iota {dimensions = array<i32: 1>} : vector<8x8xi32>
    %20 = arith.cmpi sle, %19, %18 : vector<8x8xi32>
    %cst_9 = arith.constant 0.000000e+00 : f32
    %cst_10 = arith.constant -1.000000e+09 : f32
    %21 = vector.broadcast %cst_9 : f32 to vector<8x8xf32>
    %22 = vector.broadcast %cst_10 : f32 to vector<8x8xf32>
    %23 = arith.select %20, %21, %22 : vector<8x8xi1>, vector<8x8xf32>
    %24 = arith.addf %17, %23 : vector<8x8xf32>
    %25 = vector.extract_strided_slice %9 {offsets = [0, 0], sizes = [8, 8], strides = [1, 1]} : vector<8x32xbf16> to vector<8x8xbf16>
    %26 = vector.extract_strided_slice %11 {offsets = [0, 0], sizes = [8, 8], strides = [1, 1]} : vector<8x32xbf16> to vector<8x8xbf16>
    %cst_11 = arith.constant dense<0.000000e+00> : vector<8x8xf32>
    %27 = tpu.matmul %25, %26, %cst_11 {dimension_numbers = #tpu.dot_dimension_numbers<[1], [1], [0], [0], [0, 0, 1, 0], [], []>} : vector<8x8xbf16>, vector<8x8xbf16>, vector<8x8xf32> -> vector<8x8xf32>
    %28 = arith.addf %27, %24 : vector<8x8xf32>
    %cst_12 = arith.constant dense<0xFF800000> : vector<8xf32>
    %29 = vector.multi_reduction <maximumf>, %28, %cst_12 [1] : vector<8x8xf32> to vector<8xf32>
    %30 = vector.shape_cast %29 : vector<8xf32> to vector<8x1xf32>
    %31 = vector.broadcast %30 : vector<8x1xf32> to vector<8x8xf32>
    %32 = arith.subf %28, %31 : vector<8x8xf32>
    %33 = math.exp %32 : vector<8x8xf32>
    %cst_13 = arith.constant dense<0.000000e+00> : vector<8xf32>
    %34 = vector.multi_reduction <add>, %33, %cst_13 [1] : vector<8x8xf32> to vector<8xf32>
    %35 = vector.shape_cast %34 : vector<8xf32> to vector<8x1xf32>
    %36 = tpu.reciprocal %35 {approx = true} : vector<8x1xf32> -> vector<8x1xf32>
    %37 = vector.broadcast %36 : vector<8x1xf32> to vector<8x8xf32>
    %38 = arith.mulf %33, %37 : vector<8x8xf32>
    %39 = arith.truncf %38 : vector<8x8xf32> to vector<8x8xbf16>
    %40 = vector.extract_strided_slice %13 {offsets = [0, 0], sizes = [8, 8], strides = [1, 1]} : vector<8x32xbf16> to vector<8x8xbf16>
    %cst_14 = arith.constant dense<0.000000e+00> : vector<8x8xf32>
    %41 = tpu.matmul %39, %40, %cst_14 {dimension_numbers = #tpu.dot_dimension_numbers<[1], [0], [0], [1], [0, 0, 1, 1], [], []>} : vector<8x8xbf16>, vector<8x8xbf16>, vector<8x8xf32> -> vector<8x8xf32>
    %42 = vector.extract_strided_slice %9 {offsets = [0, 8], sizes = [8, 8], strides = [1, 1]} : vector<8x32xbf16> to vector<8x8xbf16>
    %43 = vector.extract_strided_slice %11 {offsets = [0, 8], sizes = [8, 8], strides = [1, 1]} : vector<8x32xbf16> to vector<8x8xbf16>
    %cst_15 = arith.constant dense<0.000000e+00> : vector<8x8xf32>
    %44 = tpu.matmul %42, %43, %cst_15 {dimension_numbers = #tpu.dot_dimension_numbers<[1], [1], [0], [0], [0, 0, 1, 0], [], []>} : vector<8x8xbf16>, vector<8x8xbf16>, vector<8x8xf32> -> vector<8x8xf32>
    %45 = arith.addf %44, %24 : vector<8x8xf32>
    %cst_16 = arith.constant dense<0xFF800000> : vector<8xf32>
    %46 = vector.multi_reduction <maximumf>, %45, %cst_16 [1] : vector<8x8xf32> to vector<8xf32>
    %47 = vector.shape_cast %46 : vector<8xf32> to vector<8x1xf32>
    %48 = vector.broadcast %47 : vector<8x1xf32> to vector<8x8xf32>
    %49 = arith.subf %45, %48 : vector<8x8xf32>
    %50 = math.exp %49 : vector<8x8xf32>
    %cst_17 = arith.constant dense<0.000000e+00> : vector<8xf32>
    %51 = vector.multi_reduction <add>, %50, %cst_17 [1] : vector<8x8xf32> to vector<8xf32>
    %52 = vector.shape_cast %51 : vector<8xf32> to vector<8x1xf32>
    %53 = tpu.reciprocal %52 {approx = true} : vector<8x1xf32> -> vector<8x1xf32>
    %54 = vector.broadcast %53 : vector<8x1xf32> to vector<8x8xf32>
    %55 = arith.mulf %50, %54 : vector<8x8xf32>
    %56 = arith.truncf %55 : vector<8x8xf32> to vector<8x8xbf16>
    %57 = vector.extract_strided_slice %13 {offsets = [0, 8], sizes = [8, 8], strides = [1, 1]} : vector<8x32xbf16> to vector<8x8xbf16>
    %cst_18 = arith.constant dense<0.000000e+00> : vector<8x8xf32>
    %58 = tpu.matmul %56, %57, %cst_18 {dimension_numbers = #tpu.dot_dimension_numbers<[1], [0], [0], [1], [0, 0, 1, 1], [], []>} : vector<8x8xbf16>, vector<8x8xbf16>, vector<8x8xf32> -> vector<8x8xf32>
    %59 = vector.extract_strided_slice %9 {offsets = [0, 16], sizes = [8, 8], strides = [1, 1]} : vector<8x32xbf16> to vector<8x8xbf16>
    %60 = vector.extract_strided_slice %11 {offsets = [0, 16], sizes = [8, 8], strides = [1, 1]} : vector<8x32xbf16> to vector<8x8xbf16>
    %cst_19 = arith.constant dense<0.000000e+00> : vector<8x8xf32>
    %61 = tpu.matmul %59, %60, %cst_19 {dimension_numbers = #tpu.dot_dimension_numbers<[1], [1], [0], [0], [0, 0, 1, 0], [], []>} : vector<8x8xbf16>, vector<8x8xbf16>, vector<8x8xf32> -> vector<8x8xf32>
    %62 = arith.addf %61, %24 : vector<8x8xf32>
    %cst_20 = arith.constant dense<0xFF800000> : vector<8xf32>
    %63 = vector.multi_reduction <maximumf>, %62, %cst_20 [1] : vector<8x8xf32> to vector<8xf32>
    %64 = vector.shape_cast %63 : vector<8xf32> to vector<8x1xf32>
    %65 = vector.broadcast %64 : vector<8x1xf32> to vector<8x8xf32>
    %66 = arith.subf %62, %65 : vector<8x8xf32>
    %67 = math.exp %66 : vector<8x8xf32>
    %cst_21 = arith.constant dense<0.000000e+00> : vector<8xf32>
    %68 = vector.multi_reduction <add>, %67, %cst_21 [1] : vector<8x8xf32> to vector<8xf32>
    %69 = vector.shape_cast %68 : vector<8xf32> to vector<8x1xf32>
    %70 = tpu.reciprocal %69 {approx = true} : vector<8x1xf32> -> vector<8x1xf32>
    %71 = vector.broadcast %70 : vector<8x1xf32> to vector<8x8xf32>
    %72 = arith.mulf %67, %71 : vector<8x8xf32>
    %73 = arith.truncf %72 : vector<8x8xf32> to vector<8x8xbf16>
    %74 = vector.extract_strided_slice %13 {offsets = [0, 16], sizes = [8, 8], strides = [1, 1]} : vector<8x32xbf16> to vector<8x8xbf16>
    %cst_22 = arith.constant dense<0.000000e+00> : vector<8x8xf32>
    %75 = tpu.matmul %73, %74, %cst_22 {dimension_numbers = #tpu.dot_dimension_numbers<[1], [0], [0], [1], [0, 0, 1, 1], [], []>} : vector<8x8xbf16>, vector<8x8xbf16>, vector<8x8xf32> -> vector<8x8xf32>
    %76 = vector.extract_strided_slice %9 {offsets = [0, 24], sizes = [8, 8], strides = [1, 1]} : vector<8x32xbf16> to vector<8x8xbf16>
    %77 = vector.extract_strided_slice %11 {offsets = [0, 24], sizes = [8, 8], strides = [1, 1]} : vector<8x32xbf16> to vector<8x8xbf16>
    %cst_23 = arith.constant dense<0.000000e+00> : vector<8x8xf32>
    %78 = tpu.matmul %76, %77, %cst_23 {dimension_numbers = #tpu.dot_dimension_numbers<[1], [1], [0], [0], [0, 0, 1, 0], [], []>} : vector<8x8xbf16>, vector<8x8xbf16>, vector<8x8xf32> -> vector<8x8xf32>
    %79 = arith.addf %78, %24 : vector<8x8xf32>
    %cst_24 = arith.constant dense<0xFF800000> : vector<8xf32>
    %80 = vector.multi_reduction <maximumf>, %79, %cst_24 [1] : vector<8x8xf32> to vector<8xf32>
    %81 = vector.shape_cast %80 : vector<8xf32> to vector<8x1xf32>
    %82 = vector.broadcast %81 : vector<8x1xf32> to vector<8x8xf32>
    %83 = arith.subf %79, %82 : vector<8x8xf32>
    %84 = math.exp %83 : vector<8x8xf32>
    %cst_25 = arith.constant dense<0.000000e+00> : vector<8xf32>
    %85 = vector.multi_reduction <add>, %84, %cst_25 [1] : vector<8x8xf32> to vector<8xf32>
    %86 = vector.shape_cast %85 : vector<8xf32> to vector<8x1xf32>
    %87 = tpu.reciprocal %86 {approx = true} : vector<8x1xf32> -> vector<8x1xf32>
    %88 = vector.broadcast %87 : vector<8x1xf32> to vector<8x8xf32>
    %89 = arith.mulf %84, %88 : vector<8x8xf32>
    %90 = arith.truncf %89 : vector<8x8xf32> to vector<8x8xbf16>
    %91 = vector.extract_strided_slice %13 {offsets = [0, 24], sizes = [8, 8], strides = [1, 1]} : vector<8x32xbf16> to vector<8x8xbf16>
    %cst_26 = arith.constant dense<0.000000e+00> : vector<8x8xf32>
    %92 = tpu.matmul %90, %91, %cst_26 {dimension_numbers = #tpu.dot_dimension_numbers<[1], [0], [0], [1], [0, 0, 1, 1], [], []>} : vector<8x8xbf16>, vector<8x8xbf16>, vector<8x8xf32> -> vector<8x8xf32>
    %93 = tpu.concatenate %41, %58, %75, %92 in 1 : vector<8x8xf32>, vector<8x8xf32>, vector<8x8xf32>, vector<8x8xf32> -> vector<8x32xf32>
    %94 = arith.truncf %93 : vector<8x32xf32> to vector<8x32xbf16>
    %c0_27 = arith.constant 0 : index
    %c0_28 = arith.constant 0 : index
    %95 = vector.load %arg4[%c0_27, %c0_28] : memref<32x32xbf16, #tpu.memory_space<vmem>>, vector<32x32xbf16>
    %cst_29 = arith.constant dense<0.000000e+00> : vector<8x32xf32>
    %96 = tpu.matmul %94, %95, %cst_29 {dimension_numbers = #tpu.dot_dimension_numbers<[1], [0], [0], [1], [0, 0, 1, 1], [], []>} : vector<8x32xbf16>, vector<32x32xbf16>, vector<8x32xf32> -> vector<8x32xf32>
    %c0_30 = arith.constant 0 : index
    %c0_31 = arith.constant 0 : index
    %97 = vector.load %arg5[%c0_30, %c0_31] : memref<1x32xf32, #tpu.memory_space<vmem>>, vector<1x32xf32>
    %98 = vector.broadcast %97 : vector<1x32xf32> to vector<8x32xf32>
    %99 = arith.addf %96, %98 : vector<8x32xf32>
    %100 = arith.addf %2, %99 : vector<8x32xf32>
    %c0_32 = arith.constant 0 : index
    %c0_33 = arith.constant 0 : index
    %101 = vector.load %arg7[%c0_32, %c0_33] : memref<1x32xf32, #tpu.memory_space<vmem>>, vector<1x32xf32>
    %c0_34 = arith.constant 0 : index
    %c0_35 = arith.constant 0 : index
    %102 = vector.load %arg8[%c0_34, %c0_35] : memref<1x32xf32, #tpu.memory_space<vmem>>, vector<1x32xf32>
    %cst_36 = arith.constant dense<0.000000e+00> : vector<8xf32>
    %103 = vector.multi_reduction <add>, %100, %cst_36 [1] : vector<8x32xf32> to vector<8xf32>
    %104 = vector.shape_cast %103 : vector<8xf32> to vector<8x1xf32>
    %cst_37 = arith.constant 3.200000e+01 : f32
    %105 = vector.broadcast %cst_37 : f32 to vector<8x1xf32>
    %106 = arith.divf %104, %105 : vector<8x1xf32>
    %107 = vector.broadcast %106 : vector<8x1xf32> to vector<8x32xf32>
    %108 = arith.subf %100, %107 : vector<8x32xf32>
    %109 = arith.mulf %108, %108 : vector<8x32xf32>
    %cst_38 = arith.constant dense<0.000000e+00> : vector<8xf32>
    %110 = vector.multi_reduction <add>, %109, %cst_38 [1] : vector<8x32xf32> to vector<8xf32>
    %111 = vector.shape_cast %110 : vector<8xf32> to vector<8x1xf32>
    %cst_39 = arith.constant 3.200000e+01 : f32
    %112 = vector.broadcast %cst_39 : f32 to vector<8x1xf32>
    %113 = arith.divf %111, %112 : vector<8x1xf32>
    %114 = vector.broadcast %106 : vector<8x1xf32> to vector<8x32xf32>
    %115 = arith.subf %100, %114 : vector<8x32xf32>
    %cst_40 = arith.constant 9.99999974E-6 : f32
    %116 = vector.broadcast %cst_40 : f32 to vector<8x1xf32>
    %117 = arith.addf %113, %116 : vector<8x1xf32>
    %118 = math.rsqrt %117 : vector<8x1xf32>
    %119 = vector.broadcast %118 : vector<8x1xf32> to vector<8x32xf32>
    %120 = arith.mulf %115, %119 : vector<8x32xf32>
    %121 = vector.broadcast %101 : vector<1x32xf32> to vector<8x32xf32>
    %122 = arith.mulf %120, %121 : vector<8x32xf32>
    %123 = vector.broadcast %102 : vector<1x32xf32> to vector<8x32xf32>
    %124 = arith.addf %122, %123 : vector<8x32xf32>
    %125 = arith.truncf %124 : vector<8x32xf32> to vector<8x32xbf16>
    %c0_41 = arith.constant 0 : index
    %c0_42 = arith.constant 0 : index
    %c0_43 = arith.constant 0 : index
    %126 = vector.load %arg9[%c0_41, %c0_42, %c0_43] : memref<1x8x32xbf16, #tpu.memory_space<vmem>>, vector<1x8x32xbf16>
    %127 = vector.shape_cast %126 : vector<1x8x32xbf16> to vector<8x32xbf16>
    %128 = vector.shape_cast %125 : vector<8x32xbf16> to vector<1x8x32xbf16>
    tpu.vector_store %arg9[%c0_41, %c0_42, %c0_43], %128 {strides = array<i32>} : memref<1x8x32xbf16, #tpu.memory_space<vmem>>, vector<1x8x32xbf16>,
    return
  }
  func.func @transform_0(%arg0: i32) -> (i32, i32, i32) {
    %c0_i32 = arith.constant 0 : i32
    %c0_i32_0 = arith.constant 0 : i32
    %c0_i32_1 = arith.constant 0 : i32
    return %arg0, %c0_i32, %c0_i32_0 : i32, i32, i32
  }
  func.func @transform_1(%arg0: i32) -> (i32, i32) {
    %c0_i32 = arith.constant 0 : i32
    %c0_i32_0 = arith.constant 0 : i32
    %c0_i32_1 = arith.constant 0 : i32
    return %c0_i32, %c0_i32_0 : i32, i32
  }
  func.func @transform_2(%arg0: i32) -> (i32, i32) {
    %c0_i32 = arith.constant 0 : i32
    %c0_i32_0 = arith.constant 0 : i32
    %c0_i32_1 = arith.constant 0 : i32
    return %c0_i32, %c0_i32_0 : i32, i32
  }
  func.func @transform_3(%arg0: i32) -> (i32, i32) {
    %c0_i32 = arith.constant 0 : i32
    %c0_i32_0 = arith.constant 0 : i32
    %c0_i32_1 = arith.constant 0 : i32
    return %c0_i32, %c0_i32_0 : i32, i32
  }
  func.func @transform_4(%arg0: i32) -> (i32, i32) {
    %c0_i32 = arith.constant 0 : i32
    %c0_i32_0 = arith.constant 0 : i32
    %c0_i32_1 = arith.constant 0 : i32
    return %c0_i32, %c0_i32_0 : i32, i32
  }
  func.func @transform_5(%arg0: i32) -> (i32, i32, i32) {
    %c0_i32 = arith.constant 0 : i32
    %c0_i32_0 = arith.constant 0 : i32
    %c0_i32_1 = arith.constant 0 : i32
    return %arg0, %c0_i32, %c0_i32_0 : i32, i32, i32
  }
  func.func @transform_6(%arg0: i32) -> (i32, i32) {
    %c0_i32 = arith.constant 0 : i32
    %c0_i32_0 = arith.constant 0 : i32
    %c0_i32_1 = arith.constant 0 : i32
    return %c0_i32, %c0_i32_0 : i32, i32
  }
  func.func @transform_7(%arg0: i32) -> (i32, i32) {
    %c0_i32 = arith.constant 0 : i32
    %c0_i32_0 = arith.constant 0 : i32
    %c0_i32_1 = arith.constant 0 : i32
    return %c0_i32, %c0_i32_0 : i32, i32
  }
  func.func @transform_8(%arg0: i32) -> (i32, i32, i32) {
    %c0_i32 = arith.constant 0 : i32
    %c0_i32_0 = arith.constant 0 : i32
    %c0_i32_1 = arith.constant 0 : i32
    return %arg0, %c0_i32, %c0_i32_0 : i32, i32, i32
  }
}

module attributes {stable_mosaic.version = 11 : i64} {
  func.func @_linear_kernel(%arg0: i32, %arg1: i32, %arg2: memref<16x32xbf16, #tpu.memory_space<vmem>>, %arg3: memref<32x48xbf16, #tpu.memory_space<vmem>>, %arg4: memref<1x48xf32, #tpu.memory_space<vmem>>, %arg5: memref<16x48xf32, #tpu.memory_space<vmem>>) attributes {dimension_semantics = [#tpu.dimension_semantics<parallel>, #tpu.dimension_semantics<parallel>], iteration_bounds = array<i64: 1, 1>, scalar_prefetch = 0 : i64, scratch_operands = 0 : i64, tpu.core_type = #tpu.core_type<tc>, window_params = [{transform_indices = @transform_0, window_bounds = array<i64: 16, 32>}, {transform_indices = @transform_1, window_bounds = array<i64: 32, 48>}, {transform_indices = @transform_2, window_bounds = array<i64: 1, 48>}, {transform_indices = @transform_3, window_bounds = array<i64: 16, 48>}]} {
    %c0 = arith.constant 0 : index
    %c0_0 = arith.constant 0 : index
    %0 = vector.load %arg2[%c0, %c0_0] : memref<16x32xbf16, #tpu.memory_space<vmem>>, vector<16x32xbf16>
    %c0_1 = arith.constant 0 : index
    %c0_2 = arith.constant 0 : index
    %1 = vector.load %arg3[%c0_1, %c0_2] : memref<32x48xbf16, #tpu.memory_space<vmem>>, vector<32x48xbf16>
    %cst = arith.constant dense<0.000000e+00> : vector<16x48xf32>
    %2 = tpu.matmul %0, %1, %cst {dimension_numbers = #tpu.dot_dimension_numbers<[1], [0], [0], [1], [0, 0, 1, 1], [], []>} : vector<16x32xbf16>, vector<32x48xbf16>, vector<16x48xf32> -> vector<16x48xf32>
    %c0_3 = arith.constant 0 : index
    %c0_4 = arith.constant 0 : index
    %3 = vector.load %arg4[%c0_3, %c0_4] : memref<1x48xf32, #tpu.memory_space<vmem>>, vector<1x48xf32>
    %4 = vector.broadcast %3 : vector<1x48xf32> to vector<16x48xf32>
    %5 = arith.addf %2, %4 : vector<16x48xf32>
    %c0_5 = arith.constant 0 : index
    %c0_6 = arith.constant 0 : index
    %6 = vector.load %arg5[%c0_5, %c0_6] : memref<16x48xf32, #tpu.memory_space<vmem>>, vector<16x48xf32>
    tpu.vector_store %arg5[%c0_5, %c0_6], %5 {strides = array<i32>} : memref<16x48xf32, #tpu.memory_space<vmem>>, vector<16x48xf32>,
    return
  }
  func.func @transform_0(%arg0: i32, %arg1: i32) -> (i32, i32) {
    %c0_i32 = arith.constant 0 : i32
    %c0_i32_0 = arith.constant 0 : i32
    return %arg0, %c0_i32 : i32, i32
  }
  func.func @transform_1(%arg0: i32, %arg1: i32) -> (i32, i32) {
    %c0_i32 = arith.constant 0 : i32
    %c0_i32_0 = arith.constant 0 : i32
    return %c0_i32, %arg1 : i32, i32
  }
  func.func @transform_2(%arg0: i32, %arg1: i32) -> (i32, i32) {
    %c0_i32 = arith.constant 0 : i32
    %c0_i32_0 = arith.constant 0 : i32
    return %c0_i32, %arg1 : i32, i32
  }
  func.func @transform_3(%arg0: i32, %arg1: i32) -> (i32, i32) {
    %c0_i32 = arith.constant 0 : i32
    return %arg0, %arg1 : i32, i32
  }
}

module attributes {stable_mosaic.version = 11 : i64} {
  func.func @_cross_attn_block_kernel(%arg0: i32, %arg1: i32, %arg2: memref<1x8x32xbf16, #tpu.memory_space<vmem>>, %arg3: memref<1x8x32xbf16, #tpu.memory_space<vmem>>, %arg4: memref<32x96xbf16, #tpu.memory_space<vmem>>, %arg5: memref<1x96xf32, #tpu.memory_space<vmem>>, %arg6: memref<32x32xbf16, #tpu.memory_space<vmem>>, %arg7: memref<1x32xf32, #tpu.memory_space<vmem>>, %arg8: memref<1x1x8xf32, #tpu.memory_space<vmem>>, %arg9: memref<1x32xf32, #tpu.memory_space<vmem>>, %arg10: memref<1x32xf32, #tpu.memory_space<vmem>>, %arg11: memref<1x8x32xbf16, #tpu.memory_space<vmem>>) attributes {dimension_semantics = [#tpu.dimension_semantics<parallel>, #tpu.dimension_semantics<parallel>], iteration_bounds = array<i64: 2, 1>, scalar_prefetch = 0 : i64, scratch_operands = 0 : i64, tpu.core_type = #tpu.core_type<tc>, window_params = [{transform_indices = @transform_0, window_bounds = array<i64: 1, 8, 32>}, {transform_indices = @transform_1, window_bounds = array<i64: 1, 8, 32>}, {pipeline_mode = #tpu.pipeline_mode<synchronous>, transform_indices = @transform_2, window_bounds = array<i64: 32, 96>}, {pipeline_mode = #tpu.pipeline_mode<synchronous>, transform_indices = @transform_3, window_bounds = array<i64: 1, 96>}, {pipeline_mode = #tpu.pipeline_mode<synchronous>, transform_indices = @transform_4, window_bounds = array<i64: 32, 32>}, {pipeline_mode = #tpu.pipeline_mode<synchronous>, transform_indices = @transform_5, window_bounds = array<i64: 1, 32>}, {transform_indices = @transform_6, window_bounds = array<i64: 1, 1, 8>}, {pipeline_mode = #tpu.pipeline_mode<synchronous>, transform_indices = @transform_7, window_bounds = array<i64: 1, 32>}, {pipeline_mode = #tpu.pipeline_mode<synchronous>, transform_indices = @transform_8, window_bounds = array<i64: 1, 32>}, {transform_indices = @transform_9, window_bounds = array<i64: 1, 8, 32>}]} {
    %c0 = arith.constant 0 : index
    %c0_0 = arith.constant 0 : index
    %c0_1 = arith.constant 0 : index
    %0 = vector.load %arg2[%c0, %c0_0, %c0_1] : memref<1x8x32xbf16, #tpu.memory_space<vmem>>, vector<1x8x32xbf16>
    %1 = vector.shape_cast %0 : vector<1x8x32xbf16> to vector<8x32xbf16>
    %2 = arith.extf %1 : vector<8x32xbf16> to vector<8x32xf32>
    %c0_2 = arith.constant 0 : index
    %c0_3 = arith.constant 0 : index
    %c0_4 = arith.constant 0 : index
    %3 = vector.load %arg3[%c0_2, %c0_3, %c0_4] : memref<1x8x32xbf16, #tpu.memory_space<vmem>>, vector<1x8x32xbf16>
    %4 = vector.shape_cast %3 : vector<1x8x32xbf16> to vector<8x32xbf16>
    %c0_5 = arith.constant 0 : index
    %c0_6 = arith.constant 0 : index
    %5 = vector.load %arg4[%c0_5, %c0_6] : memref<32x96xbf16, #tpu.memory_space<vmem>>, vector<32x32xbf16>
    %cst = arith.constant dense<0.000000e+00> : vector<8x32xf32>
    %6 = tpu.matmul %1, %5, %cst {dimension_numbers = #tpu.dot_dimension_numbers<[1], [0], [0], [1], [0, 0, 1, 1], [], []>} : vector<8x32xbf16>, vector<32x32xbf16>, vector<8x32xf32> -> vector<8x32xf32>
    %c0_7 = arith.constant 0 : index
    %c0_8 = arith.constant 0 : index
    %7 = vector.load %arg5[%c0_7, %c0_8] : memref<1x96xf32, #tpu.memory_space<vmem>>, vector<1x32xf32>
    %8 = vector.broadcast %7 : vector<1x32xf32> to vector<8x32xf32>
    %9 = arith.addf %6, %8 : vector<8x32xf32>
    %10 = arith.truncf %9 : vector<8x32xf32> to vector<8x32xbf16>
    %c0_9 = arith.constant 0 : index
    %c32 = arith.constant 32 : index
    %11 = vector.load %arg4[%c0_9, %c32] : memref<32x96xbf16, #tpu.memory_space<vmem>>, vector<32x64xbf16>
    %cst_10 = arith.constant dense<0.000000e+00> : vector<8x64xf32>
    %12 = tpu.matmul %4, %11, %cst_10 {dimension_numbers = #tpu.dot_dimension_numbers<[1], [0], [0], [1], [0, 0, 1, 1], [], []>} : vector<8x32xbf16>, vector<32x64xbf16>, vector<8x64xf32> -> vector<8x64xf32>
    %c0_11 = arith.constant 0 : index
    %c32_12 = arith.constant 32 : index
    %13 = vector.load %arg5[%c0_11, %c32_12] : memref<1x96xf32, #tpu.memory_space<vmem>>, vector<1x64xf32>
    %14 = vector.broadcast %13 : vector<1x64xf32> to vector<8x64xf32>
    %15 = arith.addf %12, %14 : vector<8x64xf32>
    %16 = vector.extract_strided_slice %15 {offsets = [0, 0], sizes = [8, 32], strides = [1, 1]} : vector<8x64xf32> to vector<8x32xf32>
    %17 = arith.truncf %16 : vector<8x32xf32> to vector<8x32xbf16>
    %18 = vector.extract_strided_slice %15 {offsets = [0, 32], sizes = [8, 32], strides = [1, 1]} : vector<8x64xf32> to vector<8x32xf32>
    %19 = arith.truncf %18 : vector<8x32xf32> to vector<8x32xbf16>
    %c0_13 = arith.constant 0 : index
    %c0_14 = arith.constant 0 : index
    %c0_15 = arith.constant 0 : index
    %20 = vector.load %arg8[%c0_13, %c0_14, %c0_15] : memref<1x1x8xf32, #tpu.memory_space<vmem>>, vector<1x1x8xf32>
    %21 = vector.shape_cast %20 : vector<1x1x8xf32> to vector<1x8xf32>
    %22 = vector.shape_cast %21 : vector<1x8xf32> to vector<1x8xf32>
    %23 = vector.broadcast %22 : vector<1x8xf32> to vector<8x8xf32>
    %24 = vector.extract_strided_slice %10 {offsets = [0, 0], sizes = [8, 8], strides = [1, 1]} : vector<8x32xbf16> to vector<8x8xbf16>
    %25 = vector.extract_strided_slice %17 {offsets = [0, 0], sizes = [8, 8], strides = [1, 1]} : vector<8x32xbf16> to vector<8x8xbf16>
    %cst_16 = arith.constant dense<0.000000e+00> : vector<8x8xf32>
    %26 = tpu.matmul %24, %25, %cst_16 {dimension_numbers = #tpu.dot_dimension_numbers<[1], [1], [0], [0], [0, 0, 1, 0], [], []>} : vector<8x8xbf16>, vector<8x8xbf16>, vector<8x8xf32> -> vector<8x8xf32>
    %27 = arith.addf %26, %23 : vector<8x8xf32>
    %cst_17 = arith.constant dense<0xFF800000> : vector<8xf32>
    %28 = vector.multi_reduction <maximumf>, %27, %cst_17 [1] : vector<8x8xf32> to vector<8xf32>
    %29 = vector.shape_cast %28 : vector<8xf32> to vector<8x1xf32>
    %30 = vector.broadcast %29 : vector<8x1xf32> to vector<8x8xf32>
    %31 = arith.subf %27, %30 : vector<8x8xf32>
    %32 = math.exp %31 : vector<8x8xf32>
    %cst_18 = arith.constant dense<0.000000e+00> : vector<8xf32>
    %33 = vector.multi_reduction <add>, %32, %cst_18 [1] : vector<8x8xf32> to vector<8xf32>
    %34 = vector.shape_cast %33 : vector<8xf32> to vector<8x1xf32>
    %35 = tpu.reciprocal %34 {approx = true} : vector<8x1xf32> -> vector<8x1xf32>
    %36 = vector.broadcast %35 : vector<8x1xf32> to vector<8x8xf32>
    %37 = arith.mulf %32, %36 : vector<8x8xf32>
    %38 = arith.truncf %37 : vector<8x8xf32> to vector<8x8xbf16>
    %39 = vector.extract_strided_slice %19 {offsets = [0, 0], sizes = [8, 8], strides = [1, 1]} : vector<8x32xbf16> to vector<8x8xbf16>
    %cst_19 = arith.constant dense<0.000000e+00> : vector<8x8xf32>
    %40 = tpu.matmul %38, %39, %cst_19 {dimension_numbers = #tpu.dot_dimension_numbers<[1], [0], [0], [1], [0, 0, 1, 1], [], []>} : vector<8x8xbf16>, vector<8x8xbf16>, vector<8x8xf32> -> vector<8x8xf32>
    %41 = vector.extract_strided_slice %10 {offsets = [0, 8], sizes = [8, 8], strides = [1, 1]} : vector<8x32xbf16> to vector<8x8xbf16>
    %42 = vector.extract_strided_slice %17 {offsets = [0, 8], sizes = [8, 8], strides = [1, 1]} : vector<8x32xbf16> to vector<8x8xbf16>
    %cst_20 = arith.constant dense<0.000000e+00> : vector<8x8xf32>
    %43 = tpu.matmul %41, %42, %cst_20 {dimension_numbers = #tpu.dot_dimension_numbers<[1], [1], [0], [0], [0, 0, 1, 0], [], []>} : vector<8x8xbf16>, vector<8x8xbf16>, vector<8x8xf32> -> vector<8x8xf32>
    %44 = arith.addf %43, %23 : vector<8x8xf32>
    %cst_21 = arith.constant dense<0xFF800000> : vector<8xf32>
    %45 = vector.multi_reduction <maximumf>, %44, %cst_21 [1] : vector<8x8xf32> to vector<8xf32>
    %46 = vector.shape_cast %45 : vector<8xf32> to vector<8x1xf32>
    %47 = vector.broadcast %46 : vector<8x1xf32> to vector<8x8xf32>
    %48 = arith.subf %44, %47 : vector<8x8xf32>
    %49 = math.exp %48 : vector<8x8xf32>
    %cst_22 = arith.constant dense<0.000000e+00> : vector<8xf32>
    %50 = vector.multi_reduction <add>, %49, %cst_22 [1] : vector<8x8xf32> to vector<8xf32>
    %51 = vector.shape_cast %50 : vector<8xf32> to vector<8x1xf32>
    %52 = tpu.reciprocal %51 {approx = true} : vector<8x1xf32> -> vector<8x1xf32>
    %53 = vector.broadcast %52 : vector<8x1xf32> to vector<8x8xf32>
    %54 = arith.mulf %49, %53 : vector<8x8xf32>
    %55 = arith.truncf %54 : vector<8x8xf32> to vector<8x8xbf16>
    %56 = vector.extract_strided_slice %19 {offsets = [0, 8], sizes = [8, 8], strides = [1, 1]} : vector<8x32xbf16> to vector<8x8xbf16>
    %cst_23 = arith.constant dense<0.000000e+00> : vector<8x8xf32>
    %57 = tpu.matmul %55, %56, %cst_23 {dimension_numbers = #tpu.dot_dimension_numbers<[1], [0], [0], [1], [0, 0, 1, 1], [], []>} : vector<8x8xbf16>, vector<8x8xbf16>, vector<8x8xf32> -> vector<8x8xf32>
    %58 = vector.extract_strided_slice %10 {offsets = [0, 16], sizes = [8, 8], strides = [1, 1]} : vector<8x32xbf16> to vector<8x8xbf16>
    %59 = vector.extract_strided_slice %17 {offsets = [0, 16], sizes = [8, 8], strides = [1, 1]} : vector<8x32xbf16> to vector<8x8xbf16>
    %cst_24 = arith.constant dense<0.000000e+00> : vector<8x8xf32>
    %60 = tpu.matmul %58, %59, %cst_24 {dimension_numbers = #tpu.dot_dimension_numbers<[1], [1], [0], [0], [0, 0, 1, 0], [], []>} : vector<8x8xbf16>, vector<8x8xbf16>, vector<8x8xf32> -> vector<8x8xf32>
    %61 = arith.addf %60, %23 : vector<8x8xf32>
    %cst_25 = arith.constant dense<0xFF800000> : vector<8xf32>
    %62 = vector.multi_reduction <maximumf>, %61, %cst_25 [1] : vector<8x8xf32> to vector<8xf32>
    %63 = vector.shape_cast %62 : vector<8xf32> to vector<8x1xf32>
    %64 = vector.broadcast %63 : vector<8x1xf32> to vector<8x8xf32>
    %65 = arith.subf %61, %64 : vector<8x8xf32>
    %66 = math.exp %65 : vector<8x8xf32>
    %cst_26 = arith.constant dense<0.000000e+00> : vector<8xf32>
    %67 = vector.multi_reduction <add>, %66, %cst_26 [1] : vector<8x8xf32> to vector<8xf32>
    %68 = vector.shape_cast %67 : vector<8xf32> to vector<8x1xf32>
    %69 = tpu.reciprocal %68 {approx = true} : vector<8x1xf32> -> vector<8x1xf32>
    %70 = vector.broadcast %69 : vector<8x1xf32> to vector<8x8xf32>
    %71 = arith.mulf %66, %70 : vector<8x8xf32>
    %72 = arith.truncf %71 : vector<8x8xf32> to vector<8x8xbf16>
    %73 = vector.extract_strided_slice %19 {offsets = [0, 16], sizes = [8, 8], strides = [1, 1]} : vector<8x32xbf16> to vector<8x8xbf16>
    %cst_27 = arith.constant dense<0.000000e+00> : vector<8x8xf32>
    %74 = tpu.matmul %72, %73, %cst_27 {dimension_numbers = #tpu.dot_dimension_numbers<[1], [0], [0], [1], [0, 0, 1, 1], [], []>} : vector<8x8xbf16>, vector<8x8xbf16>, vector<8x8xf32> -> vector<8x8xf32>
    %75 = vector.extract_strided_slice %10 {offsets = [0, 24], sizes = [8, 8], strides = [1, 1]} : vector<8x32xbf16> to vector<8x8xbf16>
    %76 = vector.extract_strided_slice %17 {offsets = [0, 24], sizes = [8, 8], strides = [1, 1]} : vector<8x32xbf16> to vector<8x8xbf16>
    %cst_28 = arith.constant dense<0.000000e+00> : vector<8x8xf32>
    %77 = tpu.matmul %75, %76, %cst_28 {dimension_numbers = #tpu.dot_dimension_numbers<[1], [1], [0], [0], [0, 0, 1, 0], [], []>} : vector<8x8xbf16>, vector<8x8xbf16>, vector<8x8xf32> -> vector<8x8xf32>
    %78 = arith.addf %77, %23 : vector<8x8xf32>
    %cst_29 = arith.constant dense<0xFF800000> : vector<8xf32>
    %79 = vector.multi_reduction <maximumf>, %78, %cst_29 [1] : vector<8x8xf32> to vector<8xf32>
    %80 = vector.shape_cast %79 : vector<8xf32> to vector<8x1xf32>
    %81 = vector.broadcast %80 : vector<8x1xf32> to vector<8x8xf32>
    %82 = arith.subf %78, %81 : vector<8x8xf32>
    %83 = math.exp %82 : vector<8x8xf32>
    %cst_30 = arith.constant dense<0.000000e+00> : vector<8xf32>
    %84 = vector.multi_reduction <add>, %83, %cst_30 [1] : vector<8x8xf32> to vector<8xf32>
    %85 = vector.shape_cast %84 : vector<8xf32> to vector<8x1xf32>
    %86 = tpu.reciprocal %85 {approx = true} : vector<8x1xf32> -> vector<8x1xf32>
    %87 = vector.broadcast %86 : vector<8x1xf32> to vector<8x8xf32>
    %88 = arith.mulf %83, %87 : vector<8x8xf32>
    %89 = arith.truncf %88 : vector<8x8xf32> to vector<8x8xbf16>
    %90 = vector.extract_strided_slice %19 {offsets = [0, 24], sizes = [8, 8], strides = [1, 1]} : vector<8x32xbf16> to vector<8x8xbf16>
    %cst_31 = arith.constant dense<0.000000e+00> : vector<8x8xf32>
    %91 = tpu.matmul %89, %90, %cst_31 {dimension_numbers = #tpu.dot_dimension_numbers<[1], [0], [0], [1], [0, 0, 1, 1], [], []>} : vector<8x8xbf16>, vector<8x8xbf16>, vector<8x8xf32> -> vector<8x8xf32>
    %92 = tpu.concatenate %40, %57, %74, %91 in 1 : vector<8x8xf32>, vector<8x8xf32>, vector<8x8xf32>, vector<8x8xf32> -> vector<8x32xf32>
    %93 = arith.truncf %92 : vector<8x32xf32> to vector<8x32xbf16>
    %c0_32 = arith.constant 0 : index
    %c0_33 = arith.constant 0 : index
    %94 = vector.load %arg6[%c0_32, %c0_33] : memref<32x32xbf16, #tpu.memory_space<vmem>>, vector<32x32xbf16>
    %cst_34 = arith.constant dense<0.000000e+00> : vector<8x32xf32>
    %95 = tpu.matmul %93, %94, %cst_34 {dimension_numbers = #tpu.dot_dimension_numbers<[1], [0], [0], [1], [0, 0, 1, 1], [], []>} : vector<8x32xbf16>, vector<32x32xbf16>, vector<8x32xf32> -> vector<8x32xf32>
    %c0_35 = arith.constant 0 : index
    %c0_36 = arith.constant 0 : index
    %96 = vector.load %arg7[%c0_35, %c0_36] : memref<1x32xf32, #tpu.memory_space<vmem>>, vector<1x32xf32>
    %97 = vector.broadcast %96 : vector<1x32xf32> to vector<8x32xf32>
    %98 = arith.addf %95, %97 : vector<8x32xf32>
    %99 = arith.addf %2, %98 : vector<8x32xf32>
    %c0_37 = arith.constant 0 : index
    %c0_38 = arith.constant 0 : index
    %100 = vector.load %arg9[%c0_37, %c0_38] : memref<1x32xf32, #tpu.memory_space<vmem>>, vector<1x32xf32>
    %c0_39 = arith.constant 0 : index
    %c0_40 = arith.constant 0 : index
    %101 = vector.load %arg10[%c0_39, %c0_40] : memref<1x32xf32, #tpu.memory_space<vmem>>, vector<1x32xf32>
    %cst_41 = arith.constant dense<0.000000e+00> : vector<8xf32>
    %102 = vector.multi_reduction <add>, %99, %cst_41 [1] : vector<8x32xf32> to vector<8xf32>
    %103 = vector.shape_cast %102 : vector<8xf32> to vector<8x1xf32>
    %cst_42 = arith.constant 3.200000e+01 : f32
    %104 = vector.broadcast %cst_42 : f32 to vector<8x1xf32>
    %105 = arith.divf %103, %104 : vector<8x1xf32>
    %106 = vector.broadcast %105 : vector<8x1xf32> to vector<8x32xf32>
    %107 = arith.subf %99, %106 : vector<8x32xf32>
    %108 = arith.mulf %107, %107 : vector<8x32xf32>
    %cst_43 = arith.constant dense<0.000000e+00> : vector<8xf32>
    %109 = vector.multi_reduction <add>, %108, %cst_43 [1] : vector<8x32xf32> to vector<8xf32>
    %110 = vector.shape_cast %109 : vector<8xf32> to vector<8x1xf32>
    %cst_44 = arith.constant 3.200000e+01 : f32
    %111 = vector.broadcast %cst_44 : f32 to vector<8x1xf32>
    %112 = arith.divf %110, %111 : vector<8x1xf32>
    %113 = vector.broadcast %105 : vector<8x1xf32> to vector<8x32xf32>
    %114 = arith.subf %99, %113 : vector<8x32xf32>
    %cst_45 = arith.constant 9.99999974E-6 : f32
    %115 = vector.broadcast %cst_45 : f32 to vector<8x1xf32>
    %116 = arith.addf %112, %115 : vector<8x1xf32>
    %117 = math.rsqrt %116 : vector<8x1xf32>
    %118 = vector.broadcast %117 : vector<8x1xf32> to vector<8x32xf32>
    %119 = arith.mulf %114, %118 : vector<8x32xf32>
    %120 = vector.broadcast %100 : vector<1x32xf32> to vector<8x32xf32>
    %121 = arith.mulf %119, %120 : vector<8x32xf32>
    %122 = vector.broadcast %101 : vector<1x32xf32> to vector<8x32xf32>
    %123 = arith.addf %121, %122 : vector<8x32xf32>
    %124 = arith.truncf %123 : vector<8x32xf32> to vector<8x32xbf16>
    %c0_46 = arith.constant 0 : index
    %c0_47 = arith.constant 0 : index
    %c0_48 = arith.constant 0 : index
    %125 = vector.load %arg11[%c0_46, %c0_47, %c0_48] : memref<1x8x32xbf16, #tpu.memory_space<vmem>>, vector<1x8x32xbf16>
    %126 = vector.shape_cast %125 : vector<1x8x32xbf16> to vector<8x32xbf16>
    %127 = vector.shape_cast %124 : vector<8x32xbf16> to vector<1x8x32xbf16>
    tpu.vector_store %arg11[%c0_46, %c0_47, %c0_48], %127 {strides = array<i32>} : memref<1x8x32xbf16, #tpu.memory_space<vmem>>, vector<1x8x32xbf16>,
    return
  }
  func.func @transform_0(%arg0: i32, %arg1: i32) -> (i32, i32, i32) {
    %c0_i32 = arith.constant 0 : i32
    %c0_i32_0 = arith.constant 0 : i32
    return %arg0, %arg1, %c0_i32 : i32, i32, i32
  }
  func.func @transform_1(%arg0: i32, %arg1: i32) -> (i32, i32, i32) {
    %c0_i32 = arith.constant 0 : i32
    %c0_i32_0 = arith.constant 0 : i32
    %c0_i32_1 = arith.constant 0 : i32
    return %arg0, %c0_i32, %c0_i32_0 : i32, i32, i32
  }
  func.func @transform_2(%arg0: i32, %arg1: i32) -> (i32, i32) {
    %c0_i32 = arith.constant 0 : i32
    %c0_i32_0 = arith.constant 0 : i32
    %c0_i32_1 = arith.constant 0 : i32
    return %c0_i32, %c0_i32_0 : i32, i32
  }
  func.func @transform_3(%arg0: i32, %arg1: i32) -> (i32, i32) {
    %c0_i32 = arith.constant 0 : i32
    %c0_i32_0 = arith.constant 0 : i32
    %c0_i32_1 = arith.constant 0 : i32
    return %c0_i32, %c0_i32_0 : i32, i32
  }
  func.func @transform_4(%arg0: i32, %arg1: i32) -> (i32, i32) {
    %c0_i32 = arith.constant 0 : i32
    %c0_i32_0 = arith.constant 0 : i32
    %c0_i32_1 = arith.constant 0 : i32
    return %c0_i32, %c0_i32_0 : i32, i32
  }
  func.func @transform_5(%arg0: i32, %arg1: i32) -> (i32, i32) {
    %c0_i32 = arith.constant 0 : i32
    %c0_i32_0 = arith.constant 0 : i32
    %c0_i32_1 = arith.constant 0 : i32
    return %c0_i32, %c0_i32_0 : i32, i32
  }
  func.func @transform_6(%arg0: i32, %arg1: i32) -> (i32, i32, i32) {
    %c0_i32 = arith.constant 0 : i32
    %c0_i32_0 = arith.constant 0 : i32
    %c0_i32_1 = arith.constant 0 : i32
    return %arg0, %c0_i32, %c0_i32_0 : i32, i32, i32
  }
  func.func @transform_7(%arg0: i32, %arg1: i32) -> (i32, i32) {
    %c0_i32 = arith.constant 0 : i32
    %c0_i32_0 = arith.constant 0 : i32
    %c0_i32_1 = arith.constant 0 : i32
    return %c0_i32, %c0_i32_0 : i32, i32
  }
  func.func @transform_8(%arg0: i32, %arg1: i32) -> (i32, i32) {
    %c0_i32 = arith.constant 0 : i32
    %c0_i32_0 = arith.constant 0 : i32
    %c0_i32_1 = arith.constant 0 : i32
    return %c0_i32, %c0_i32_0 : i32, i32
  }
  func.func @transform_9(%arg0: i32, %arg1: i32) -> (i32, i32, i32) {
    %c0_i32 = arith.constant 0 : i32
    %c0_i32_0 = arith.constant 0 : i32
    return %arg0, %arg1, %c0_i32 : i32, i32, i32
  }
}

</mosaic_0001>

<bundles_post_ra>
// kernel: pallas_transformer_forward.12
= control target key start
LH: loop header
LB: loop body
LE: loop exit
PB: predicated region body
PF: predicated region fallthrough
CT: control target
= control target key end

     0   :  { %s717_s24 = smov 0   ;;  %s719_s25 = smov 0   ;;  %s790_s0 = inlined_call_operand.vmem [shape: bf16[2,8,32], index: 0, kind: input, shape index: {}]   ;;  %s791_s1 = inlined_call_operand.vmem [shape: bf16[32,64], index: 1, kind: input, shape index: {}]   ;;  %s792_s2 = inlined_call_operand.vmem [shape: f32[1,64], index: 2, kind: input, shape index: {}]   ;;  %s793_s3 = inlined_call_operand.vmem [shape: bf16[64,32], index: 3, kind: input, shape index: {}]   ;;  %s794_s4 = inlined_call_operand.vmem [shape: f32[1,32], index: 4, kind: input, shape index: {}]   ;;  %s795_s5 = inlined_call_operand.vmem [shape: f32[1,32], index: 5, kind: input, shape index: {}]   ;;  %s796_s6 = inlined_call_operand.vmem [shape: f32[1,32], index: 6, kind: input, shape index: {}]   ;;  %s797_s7 = inlined_call_operand.vmem [shape: bf16[2,8,32], index: 7, kind: output, shape index: {}]  }
   0x1   :  { %s721_s26 = smov 0  }
   0x2 LB: > { %s29_s27 = sadd.s32 1, %s669_s25  ;;  %p572_p0 = scmp.ge.s32.totalorder %s673_s26, 1  ;;  %s673_s26 = sphi %s721_s26, %s17_s26   ;;  %s669_s25 = sphi %s719_s25, %s799_s25   ;;  %s665_s24 = sphi %s717_s24, %s798_s24  }
   0x3   : > { %p31_p1 = scmp.ge.s32.totalorder %s29_s27, 2  ;;  %p255_p2 = scmp.lt.s32.totalorder %s673_s26, 3 }
   0x5   : > { %s801_s27 = smov (%p31_p1, %s29_s27), 0  ;;  %p256_p3 = pnand %p572_p0, %p255_p2 }
   0x6   : > { %p291_p4 = scmp.lt.s32.totalorder (!%p256_p3), %s665_s24, 1 }
   0x7   : > { %259 = sbr.rel (%p256_p3) target bundleno = 728 (0x2d8), region = 48 }
   0xc   : > { %v643_v0 = vld [vmem:[%s791_s1 + $0x8] sm:$0xff]   ;;  %v675_v1 = vmov 0.0   ;;  %v644_v2 = vld [vmem:[%s791_s1] sm:$0xff]   ;;  %vm676_vm0 = vmmov 0   ;;  %v645_v3 = vld [vmem:[%s793_s3 + $0x18] sm:$0xff]   ;;  %s803_s24 = smov (!%p291_p4, %s665_s24), 1 }
   0xd   : > { %597 = vmatprep.subr.bf16.mxu0 %v675_v1  ;;  %605 = vmatprep.subr.bf16.mxu1 %v675_v1  ;;  %v646_v4 = vld [vmem:[%s793_s3 + $0x10] sm:$0xff]   ;;  %s573_s13 = sshll.u32 %s803_s24, 2  ;;  %vm331_vm1 = vcmask 261120   ;;  %v647_v6 = vld [vmem:[%s793_s3 + $0x8] sm:$0xff]   ;;  %v648_v7 = vld [vmem:[%s793_s3] sm:$0xff]   ;;  %vm416_vm2 = vcmask 523264  }
   0xe   : > { %598 = vmatpush3.bf16.msra.mxu0 %v643_v0  ;;  %601 = vmatprep.mubr.msk.bf16.mxu0 %vm676_vm0, %v675_v1  ;;  %s297_s16 = scalar_lea.vmem %s790_s0, %s573_s13  ;;  %v575_v8 = vld [vmem:[%s792_s2] ss:$0 sm:$0xff]  ;;  %s304_s12 = scalar_lea.vmem %s797_s7, %s573_s13  ;;  %vm492_vm3 = vcmask 257024  }
   0xf   : > { %599 = vmatprep.subr.bf16.mxu0 %v675_v1  ;;  %613 = vmatprep.mubr.msk.bf16.mxu1 %vm676_vm0, %v675_v1  ;;  %v306_v5 = vld [vmem:[%s297_s16] sm:$0xf] }
  0x10   : > { %606 = vmatpush3.bf16.msra.mxu1 %v645_v3  ;;  %v579_v16 = vld [vmem:[%s794_s4] ss:$0 sm:$0xff]  ;;  %v307_v17 = vunpack.c.l.bf16 %v306_v5 }
  0x11   : > { %607 = vmatprep.subr.bf16.mxu1 %v675_v1  ;;  %v585_v34 = vld [vmem:[%s795_s5] ss:$0 sm:$0xff] }
  0x12   : > { %600 = vmatpush3.bf16.msra.mxu0 %v644_v2  ;;  %v586_v36 = vld [vmem:[%s796_s6] ss:$0 sm:$0xff] }
  0x14   : > { %608 = vmatpush3.bf16.msra.mxu1 %v646_v4 }
  0x15   : > { %602 = vmatmul.mubr.msk.bf16.vlgmr.msra.gmra.mxu0 %vm331_vm1, %v306_v5  ;;  %609 = vmatprep.subr.bf16.mxu1 %v675_v1 }
  0x18   : > { %610 = vmatpush3.bf16.msra.mxu1 %v647_v6 }
  0x19   : > { %611 = vmatprep.subr.bf16.mxu1 %v675_v1 }
  0x1c   : > { %612 = vmatpush3.bf16.msra.mxu1 %v648_v7 }
  0xd5   : > { %v369_v9 = vpop.f32.mrf.mxu0 }
  0xd6   : > { %v370_v10 = vadd.f32 %v575_v8, %v369_v9 }
  0xd7   : > { %v603_v11 = vpop.f32.mrf.mxu0 }
  0xd8   : > { %v375_v12 = vmax.f32 %v370_v10, 0.0 }
  0xd9   : > { %v372_v13 = vpop.f32.mrf.mxu0 }
  0xda   : > { %v376_v14 = vpack.c.bf16 %v375_v12, %v375_v12 }
  0xdb   : > { %v604_v15 = vpop.f32.mrf.mxu0 }
  0xdc   : > { %614 = vmatmul.mubr.msk.bf16.vlgmr.msra.gmra.mxu1 %vm416_vm2, %v376_v14 }
 0x19c   : > { %v454_v18 = vpop.f32.mrf.mxu1 }
 0x19d   : > { %v455_v19 = vadd.f32 %v579_v16, %v454_v18 }
 0x19e   : > { %v615_v20 = vpop.f32.mrf.mxu1 }
 0x19f   : > { %v460_v21 = vadd.f32 %v455_v19, %v307_v17 }
 0x1a0   : > { %v457_v22 = vpop.f32.mrf.mxu1 }
 0x1a1   : > { %v463_v23 = vsel %vm331_vm1, %v460_v21, 0.0 }
 0x1a2   : > { %v616_v24 = vpop.f32.mrf.mxu1  ;;  %464 = vadd.xlane.f32.xlu0 %v463_v23 }
 0x22b   : > { %v465_v25 = vpop.xlane.xlu0 %464 }
 0x22c   : > { %v467_v26 = vmul.f32 0.03125, %v465_v25 }
 0x22e   : > { %v468_v27 = vsub.f32 %v460_v21, %v467_v26 }
 0x230   : > { %v469_v28 = vmul.f32 %v468_v27, %v468_v27 }
 0x232   : > { %v470_v29 = vsel %vm331_vm1, %v469_v28, 0.0 }
 0x233   : > { %471 = vadd.xlane.f32.xlu0 %v470_v29 }
 0x2bc   : > { %v472_v30 = vpop.xlane.xlu0 %471 }
 0x2bd   : > { %v473_v31 = vmul.f32 0.03125, %v472_v30 }
 0x2bf   : > { %v474_v32 = vadd.f32 1e-05, %v473_v31 }
 0x2c1   : > { %649 = vrsqrt.f32 %v474_v32 }
 0x2ce   : > { %v650_v33 = vpop.eup %649 }
 0x2cf   : > { %v476_v35 = vmul.f32 %v650_v33, %v468_v27 }
 0x2d1   : > { %v483_v37 = vmul.f32 %v585_v34, %v476_v35 }
 0x2d3   : > { %v490_v38 = vadd.f32 %v586_v36, %v483_v37 }
 0x2d5   : > { %v491_v39 = vpack.c.bf16 %v490_v38, %v490_v38 }
 0x2d7   : > { %493 = vst.msk [vmem:[%s304_s12] sm:$0xf] %vm492_vm3, %v491_v39 }
 0x2d8 PF: > { %s17_s26 = sadd.s32 1, %s673_s26   ;;  %s798_s24 = smov %s669_s25 }
 0x2d9   : > { %p14_p5 = scmp.ge.s32.totalorder %s17_s26, 4   ;;  %s799_s25 = smov %s801_s27 }
 0x2db   :  { %16 = sbr.rel (!%p14_p5) target bundleno = 2 (0x2), region = 78 }

// kernel: pallas_transformer_forward.14
= control target key start
LH: loop header
LB: loop body
LE: loop exit
PB: predicated region body
PF: predicated region fallthrough
CT: control target
= control target key end

     0   :  { %s814_s30 = smov 0   ;;  %s816_s10 = smov 0   ;;  %s895_s0 = inlined_call_operand.vmem [shape: bf16[2,8,32], index: 0, kind: input, shape index: {}]   ;;  %s896_s1 = inlined_call_operand.vmem [shape: bf16[32,64], index: 1, kind: input, shape index: {}]   ;;  %s897_s2 = inlined_call_operand.vmem [shape: f32[1,64], index: 2, kind: input, shape index: {}]   ;;  %s898_s3 = inlined_call_operand.vmem [shape: bf16[64,32], index: 3, kind: input, shape index: {}]   ;;  %s899_s4 = inlined_call_operand.vmem [shape: f32[1,32], index: 4, kind: input, shape index: {}]   ;;  %s900_s5 = inlined_call_operand.vmem [shape: f32[1,32], index: 5, kind: input, shape index: {}]   ;;  %s901_s6 = inlined_call_operand.vmem [shape: f32[1,32], index: 6, kind: input, shape index: {}]   ;;  %s902_s7 = inlined_call_operand.vmem [shape: f32[1,32], index: 7, kind: input, shape index: {}]   ;;  %s903_s8 = inlined_call_operand.vmem [shape: f32[1,32], index: 8, kind: input, shape index: {}]   ;;  %s904_s9 = inlined_call_operand.vmem [shape: bf16[2,8,32], index: 9, kind: output, shape index: {}]  }
   0x1   :  { %s818_s11 = smov 0  }
   0x2 LB: > { %s31_s12 = sadd.s32 1, %s756_s10  ;;  %p655_p0 = scmp.ge.s32.totalorder %s760_s11, 1  ;;  %s760_s11 = sphi %s818_s11, %s19_s11   ;;  %s756_s10 = sphi %s816_s10, %s906_s10   ;;  %s752_s30 = sphi %s814_s30, %s905_s30  }
   0x3   : > { %p33_p1 = scmp.ge.s32.totalorder %s31_s12, 2  ;;  %p305_p2 = scmp.lt.s32.totalorder %s760_s11, 3 }
   0x5   : > { %s908_s12 = smov (%p33_p1, %s31_s12), 0  ;;  %p306_p3 = pnand %p655_p0, %p305_p2 }
   0x6   : > { %p345_p4 = scmp.lt.s32.totalorder (!%p306_p3), %s752_s30, 1 }
   0x7   : > { %309 = sbr.rel (%p306_p3) target bundleno = 1036 (0x40c), region = 56 }
   0xc   : > { %v728_v0 = vld [vmem:[%s896_s1 + $0x8] sm:$0xff]   ;;  %v762_v1 = vmov 0.0   ;;  %v729_v2 = vld [vmem:[%s896_s1] sm:$0xff]   ;;  %vm763_vm0 = vmmov 0   ;;  %v730_v3 = vld [vmem:[%s898_s3 + $0x18] sm:$0xff]   ;;  %s910_s30 = smov (!%p345_p4, %s752_s30), 1 }
   0xd   : > { %682 = vmatprep.subr.bf16.mxu0 %v762_v1  ;;  %690 = vmatprep.subr.bf16.mxu1 %v762_v1  ;;  %v731_v4 = vld [vmem:[%s898_s3 + $0x10] sm:$0xff]   ;;  %s656_s21 = sshll.u32 %s910_s30, 2  ;;  %vm385_vm1 = vcmask 261120   ;;  %v732_v6 = vld [vmem:[%s898_s3 + $0x8] sm:$0xff]   ;;  %v733_v7 = vld [vmem:[%s898_s3] sm:$0xff]   ;;  %vm470_vm2 = vcmask 523264  }
   0xe   : > { %683 = vmatpush3.bf16.msra.mxu0 %v728_v0  ;;  %686 = vmatprep.mubr.msk.bf16.mxu0 %vm763_vm0, %v762_v1  ;;  %s351_s24 = scalar_lea.vmem %s895_s0, %s656_s21  ;;  %v658_v8 = vld [vmem:[%s897_s2] ss:$0 sm:$0xff]  ;;  %s358_s27 = scalar_lea.vmem %s904_s9, %s656_s21  ;;  %vm575_vm3 = vcmask 257024  }
   0xf   : > { %684 = vmatprep.subr.bf16.mxu0 %v762_v1  ;;  %698 = vmatprep.mubr.msk.bf16.mxu1 %vm763_vm0, %v762_v1  ;;  %v360_v5 = vld [vmem:[%s351_s24] sm:$0xf] }
  0x10   : > { %691 = vmatpush3.bf16.msra.mxu1 %v730_v3  ;;  %v662_v16 = vld [vmem:[%s899_s4] ss:$0 sm:$0xff]  ;;  %v361_v17 = vunpack.c.l.bf16 %v360_v5 }
  0x11   : > { %692 = vmatprep.subr.bf16.mxu1 %v762_v1  ;;  %v668_v34 = vld [vmem:[%s900_s5] ss:$0 sm:$0xff] }
  0x12   : > { %685 = vmatpush3.bf16.msra.mxu0 %v729_v2  ;;  %v669_v36 = vld [vmem:[%s901_s6] ss:$0 sm:$0xff] }
  0x13   : > { %v670_v49 = vld [vmem:[%s902_s7] ss:$0 sm:$0xff] }
  0x14   : > { %693 = vmatpush3.bf16.msra.mxu1 %v731_v4  ;;  %v671_v51 = vld [vmem:[%s903_s8] ss:$0 sm:$0xff] }
  0x15   : > { %687 = vmatmul.mubr.msk.bf16.vlgmr.msra.gmra.mxu0 %vm385_vm1, %v360_v5  ;;  %694 = vmatprep.subr.bf16.mxu1 %v762_v1 }
  0x18   : > { %695 = vmatpush3.bf16.msra.mxu1 %v732_v6 }
  0x19   : > { %696 = vmatprep.subr.bf16.mxu1 %v762_v1 }
  0x1c   : > { %697 = vmatpush3.bf16.msra.mxu1 %v733_v7 }
  0xd5   : > { %v423_v9 = vpop.f32.mrf.mxu0 }
  0xd6   : > { %v424_v10 = vadd.f32 %v658_v8, %v423_v9 }
  0xd7   : > { %v688_v11 = vpop.f32.mrf.mxu0 }
  0xd8   : > { %v429_v12 = vmax.f32 %v424_v10, 0.0 }
  0xd9   : > { %v426_v13 = vpop.f32.mrf.mxu0 }
  0xda   : > { %v430_v14 = vpack.c.bf16 %v429_v12, %v429_v12 }
  0xdb   : > { %v689_v15 = vpop.f32.mrf.mxu0 }
  0xdc   : > { %699 = vmatmul.mubr.msk.bf16.vlgmr.msra.gmra.mxu1 %vm470_vm2, %v430_v14 }
 0x19c   : > { %v508_v18 = vpop.f32.mrf.mxu1 }
 0x19d   : > { %v509_v19 = vadd.f32 %v662_v16, %v508_v18 }
 0x19e   : > { %v700_v20 = vpop.f32.mrf.mxu1 }
 0x19f   : > { %v514_v21 = vadd.f32 %v509_v19, %v361_v17 }
 0x1a0   : > { %v511_v22 = vpop.f32.mrf.mxu1 }
 0x1a1   : > { %v517_v23 = vsel %vm385_vm1, %v514_v21, 0.0 }
 0x1a2   : > { %v701_v24 = vpop.f32.mrf.mxu1  ;;  %518 = vadd.xlane.f32.xlu0 %v517_v23 }
 0x22b   : > { %v519_v25 = vpop.xlane.xlu0 %518 }
 0x22c   : > { %v521_v26 = vmul.f32 0.03125, %v519_v25 }
 0x22e   : > { %v522_v27 = vsub.f32 %v514_v21, %v521_v26 }
 0x230   : > { %v523_v28 = vmul.f32 %v522_v27, %v522_v27 }
 0x232   : > { %v524_v29 = vsel %vm385_vm1, %v523_v28, 0.0 }
 0x233   : > { %525 = vadd.xlane.f32.xlu0 %v524_v29 }
 0x2bc   : > { %v526_v30 = vpop.xlane.xlu0 %525 }
 0x2bd   : > { %v527_v31 = vmul.f32 0.03125, %v526_v30 }
 0x2bf   : > { %v528_v32 = vadd.f32 1e-05, %v527_v31 }
 0x2c1   : > { %734 = vrsqrt.f32 %v528_v32 }
 0x2ce   : > { %v735_v33 = vpop.eup %734 }
 0x2cf   : > { %v530_v35 = vmul.f32 %v735_v33, %v522_v27 }
 0x2d1   : > { %v537_v37 = vmul.f32 %v668_v34, %v530_v35 }
 0x2d3   : > { %v544_v38 = vadd.f32 %v669_v36, %v537_v37 }
 0x2d5   : > { %v547_v39 = vsel %vm385_vm1, %v544_v38, 0.0 }
 0x2d6   : > { %548 = vadd.xlane.f32.xlu1 %v547_v39 }
 0x35f   : > { %v549_v40 = vpop.xlane.xlu1 %548 }
 0x360   : > { %v550_v41 = vmul.f32 0.03125, %v549_v40 }
 0x362   : > { %v551_v42 = vsub.f32 %v544_v38, %v550_v41 }
 0x364   : > { %v552_v43 = vmul.f32 %v551_v42, %v551_v42 }
 0x366   : > { %v553_v44 = vsel %vm385_vm1, %v552_v43, 0.0 }
 0x367   : > { %554 = vadd.xlane.f32.xlu1 %v553_v44 }
 0x3f0   : > { %v555_v45 = vpop.xlane.xlu1 %554 }
 0x3f1   : > { %v556_v46 = vmul.f32 0.03125, %v555_v45 }
 0x3f3   : > { %v557_v47 = vadd.f32 1e-05, %v556_v46 }
 0x3f5   : > { %736 = vrsqrt.f32 %v557_v47 }
 0x402   : > { %v737_v48 = vpop.eup %736 }
 0x403   : > { %v559_v50 = vmul.f32 %v737_v48, %v551_v42 }
 0x405   : > { %v566_v52 = vmul.f32 %v670_v49, %v559_v50 }
 0x407   : > { %v573_v53 = vadd.f32 %v671_v51, %v566_v52 }
 0x409   : > { %v574_v54 = vpack.c.bf16 %v573_v53, %v573_v53 }
 0x40b   : > { %576 = vst.msk [vmem:[%s358_s27] sm:$0xf] %vm575_vm3, %v574_v54 }
 0x40c PF: > { %s19_s11 = sadd.s32 1, %s760_s11   ;;  %s905_s30 = smov %s756_s10 }
 0x40d   : > { %p16_p5 = scmp.ge.s32.totalorder %s19_s11, 4   ;;  %s906_s10 = smov %s908_s12 }
 0x40f   :  { %18 = sbr.rel (!%p16_p5) target bundleno = 2 (0x2), region = 86 }

// kernel: pallas_transformer_forward.15
= control target key start
LH: loop header
LB: loop body
LE: loop exit
PB: predicated region body
PF: predicated region fallthrough
CT: control target
= control target key end

     0   :  { %s1252_s27 = smov 0   ;;  %s1383_s0 = inlined_call_operand.vmem [shape: bf16[2,8,32], index: 0, kind: input, shape index: {}]   ;;  %s1384_s1 = inlined_call_operand.vmem [shape: bf16[32,96], index: 1, kind: input, shape index: {}]   ;;  %s1385_s2 = inlined_call_operand.vmem [shape: f32[1,96], index: 2, kind: input, shape index: {}]   ;;  %s1386_s3 = inlined_call_operand.vmem [shape: bf16[32,32], index: 3, kind: input, shape index: {}]   ;;  %s1387_s4 = inlined_call_operand.vmem [shape: f32[1,32], index: 4, kind: input, shape index: {}]   ;;  %s1388_s5 = inlined_call_operand.vmem [shape: f32[2,1,8], index: 5, kind: input, shape index: {}]   ;;  %s1389_s6 = inlined_call_operand.vmem [shape: f32[1,32], index: 6, kind: input, shape index: {}]   ;;  %s1390_s7 = inlined_call_operand.vmem [shape: f32[1,32], index: 7, kind: input, shape index: {}]   ;;  %s1391_s8 = inlined_call_operand.vmem [shape: bf16[2,8,32], index: 8, kind: output, shape index: {}]  }
   0x1 LB: > { %s1021_s28 = sadd.s32 4294967295, %s1188_s27   ;;  %p1025_p0 = scmp.ge.s32.totalorder %s1188_s27, 1  ;;  %s1188_s27 = sphi %s1252_s27, %s18_s27  }
   0x2   : > { %p269_p1 = scmp.lt.s32.totalorder %s1188_s27, 3 }
   0x4   : > { %p270_p2 = pnand %p1025_p0, %p269_p1 }
   0x5   : > { %p304_p3 = scmp.lt.s32.totalorder (!%p270_p2), %s1021_s28, 1  ;;  %s1192_s17 = smov (!%p270_p2), 120  }
   0x6   : > { %273 = sbr.rel (%p270_p2) target bundleno = 1729 (0x6c1), region = 52  ;;  %s1193_s18 = smov (!%p270_p2), 96  }
   0x7   : > { %s1194_s19 = smov (!%p270_p2), 80   ;;  %s1195_s20 = smov (!%p270_p2), 88  }
   0x8   : > { %s1196_s21 = smov (!%p270_p2), 72   ;;  %s1197_s22 = smov (!%p270_p2), 112  }
   0x9   : > { %s1198_s23 = smov (!%p270_p2), 104   ;;  %s1200_s29 = smov (!%p270_p2), 56  }
   0xa   : > { %s1201_s30 = smov (!%p270_p2), 64   ;;  %s1202_s9 = smov (!%p270_p2), 40  }
   0xb   : > { %v1160_v0 = vld [vmem:[%s1384_s1 + $0x8] sm:$0xff]   ;;  %v1190_v1 = vmov 0.0   ;;  %v1161_v2 = vld [vmem:[%s1384_s1] sm:$0xff]   ;;  %vm1191_vm0 = vmmov 0   ;;  %s1393_s28 = smov (!%p304_p3, %s1021_s28), 1  ;;  %vm341_vm1 = vcmask 261120   ;;  %v393_v22 = vlaneseq }
   0xc   : > { %1071 = vmatprep.subr.bf16.mxu0 %v1190_v1  ;;  %1079 = vmatprep.subr.bf16.mxu1 %v1190_v1  ;;  %s1026_s11 = sshll.u32 %s1393_s28, 2  ;;  %v1028_v4 = vld [vmem:[%s1385_s2] ss:$0 sm:$0xff]  ;;  %vm403_vm2 = vcmask 64512   ;;  %s310_s26 = scalar_lea.vmem %s1388_s5, %s1393_s28  ;;  %v1199_v26 = vmov -1e+09  }
   0xd   : > { %1072 = vmatpush3.bf16.msra.mxu0 %v1160_v0  ;;  %1075 = vmatprep.mubr.msk.bf16.mxu0 %vm1191_vm0, %v1190_v1  ;;  %s307_s14 = scalar_lea.vmem %s1383_s0, %s1026_s11  ;;  %v394_v23 = vshrl.u32 %v393_v22, 7  ;;  %v396_v24 = vand.u32 127, %v393_v22  ;;  %v1032_v25 = vld [vmem:[%s310_s26] ss:$0 sm:$0xff]  ;;  %s1203_s10 = smov 48   ;;  %vm467_vm4 = vcmask 1043456  }
   0xe   : > { %1073 = vmatprep.subr.bf16.mxu0 %v1190_v1  ;;  %1081 = vmatprep.mubr.msk.bf16.mxu1 %vm1191_vm0, %v1190_v1  ;;  %v1282_v3 = vld [vmem:[%s307_s14] sm:$0xf]  ;;  %s1204_s12 = smov 8   ;;  %vm854_vm5 = vcmask 130048   ;;  %vm856_vm6 = vcmask 195584   ;;  %vm957_vm7 = vcmask 257024  }
   0xf   : > { %vm397_vm3 = vcmp.le.s32.totalorder %v396_v24, %v394_v23 }
  0x10   : > { %v398_v27 = vsel %vm397_vm3, 0.0, %v1199_v26 }
  0x11   : > { %1074 = vmatpush3.bf16.msra.mxu0 %v1161_v2  ;;  %v399_v28 = vadd.f32 %v1032_v25, %v398_v27 }
  0x12   : > { %1085 = vmatprep.subr.bf16.mxu0 %v1190_v1 }
  0x14   : > { %1076 = vmatmul.mubr.msk.bf16.vlgmr.msra.gmra.mxu0 %vm341_vm1, %v1282_v3 }
  0x15   : > { %1087 = vmatprep.mubr.msk.bf16.mxu0 %vm1191_vm0, %v1190_v1 }
  0xd4   : > { %v379_v5 = vpop.f32.mrf.mxu0 }
  0xd5   : > { %v380_v6 = vadd.f32 %v1028_v4, %v379_v5 }
  0xd6   : > { %v1077_v7 = vpop.f32.mrf.mxu0 }
  0xd7   : > { %v1291_v8 = vpack.c.bf16 %v380_v6, %v380_v6 }
  0xd8   : > { %v382_v9 = vpop.f32.mrf.mxu0 }
  0xd9   : > { %511 = vrot.lane.b32.xlu1 %v1291_v8, %s1192_s17  ;;  %401 = vrot.lane.b32.xlu0 %v1291_v8, %s1193_s18  ;;  %s1205_s17 = smov 16   ;;  %s1206_s18 = smov 24  }
  0xda   : > { %v1078_v10 = vpop.f32.mrf.mxu0 }
  0xdd   : > { %623 = vrot.lane.b32.xlu1 %v1291_v8, %s1194_s19  ;;  %513 = vrot.lane.b32.xlu0 %v1291_v8, %s1195_s20 }
  0xe1   : > { %733 = vrot.lane.b32.xlu1 %v1291_v8, %s1196_s21  ;;  %621 = vrot.lane.b32.xlu0 %v1291_v8, %s1197_s22 }
  0xe5   : > { %731 = vrot.lane.b32.xlu0 %v1291_v8, %s1198_s23 }
 0x14b   : > { %v402_v11 = vpop.permute.xlu0 %401  ;;  %v512_v14 = vpop.permute.xlu1 %511 }
 0x14c   : > { %v408_v12 = vsel %vm403_vm2, %v402_v11, 0 }
 0x14d   : > { %1080 = vmatpush3.bf16.xpose.msra.mxu1 %v408_v12 }
 0x14e   : > { %1091 = vmatprep.subr.bf16.mxu1 %v1190_v1 }
 0x14f   : > { %v514_v13 = vpop.permute.xlu0 %513  ;;  %v624_v16 = vpop.permute.xlu1 %623 }
 0x150   : > { %v519_v15 = vsel %vm403_vm2, %v514_v13, 0  ;;  %v629_v17 = vsel %vm403_vm2, %v624_v16, 0 }
 0x153   : > { %v734_v18 = vpop.permute.xlu1 %733  ;;  %v622_v19 = vpop.permute.xlu0 %621 }
 0x154   : > { %1082 = vmatmul.mubr.msk.bf16.vlgmr.msra.gmra.mxu1 %vm403_vm2, %v1291_v8  ;;  %v739_v20 = vsel %vm403_vm2, %v734_v18, 0 }
 0x155   : > { %1092 = vmatpush3.bf16.xpose.msra.mxu1 %v519_v15  ;;  %1093 = vmatprep.mubr.msk.bf16.mxu1 %vm1191_vm0, %v1190_v1 }
 0x156   : > { %1103 = vmatprep.subr.bf16.mxu1 %v1190_v1 }
 0x157   : > { %v732_v21 = vpop.permute.xlu0 %731 }
 0x15c   : > { %1094 = vmatmul.mubr.msk.bf16.vlgmr.msra.gmra.mxu1 %vm403_vm2, %v512_v14 }
 0x15d   : > { %1104 = vmatpush3.bf16.xpose.msra.mxu1 %v629_v17  ;;  %1105 = vmatprep.mubr.msk.bf16.mxu1 %vm1191_vm0, %v1190_v1 }
 0x15e   : > { %1115 = vmatprep.subr.bf16.mxu1 %v1190_v1 }
 0x164   : > { %1106 = vmatmul.mubr.msk.bf16.vlgmr.msra.gmra.mxu1 %vm403_vm2, %v622_v19 }
 0x165   : > { %1116 = vmatpush3.bf16.xpose.msra.mxu1 %v739_v20  ;;  %1117 = vmatprep.mubr.msk.bf16.mxu1 %vm1191_vm0, %v1190_v1 }
 0x166   : > { %1127 = vmatprep.subr.bf16.mxu1 %v1190_v1 }
 0x16c   : > { %1118 = vmatmul.mubr.msk.bf16.vlgmr.msra.gmra.mxu1 %vm403_vm2, %v732_v21 }
 0x16d   : > { %1131 = vmatprep.mubr.msk.bf16.mxu1 %vm1191_vm0, %v1190_v1 }
 0x214   : > { %v444_v29 = vpop.f32.mrf.mxu1 }
 0x215   : > { %v445_v30 = vadd.f32 %v444_v29, %v399_v28 }
 0x216   : > { %v1083_v31 = vpop.f32.mrf.mxu1 }
 0x217   : > { %v450_v32 = vsel %vm403_vm2, %v445_v30, -inf }
 0x218   : > { %451 = vmax.xlane.f32.xlu1 %v450_v32  ;;  %v447_v33 = vpop.f32.mrf.mxu1 }
 0x21a   : > { %v1084_v34 = vpop.f32.mrf.mxu1 }
 0x21c   : > { %v555_v35 = vpop.f32.mrf.mxu1 }
 0x21d   : > { %v556_v36 = vadd.f32 %v555_v35, %v399_v28 }
 0x21e   : > { %v1095_v37 = vpop.f32.mrf.mxu1 }
 0x21f   : > { %v561_v38 = vsel %vm403_vm2, %v556_v36, -inf }
 0x220   : > { %562 = vmax.xlane.f32.xlu0 %v561_v38  ;;  %v558_v39 = vpop.f32.mrf.mxu1 }
 0x222   : > { %v1096_v40 = vpop.f32.mrf.mxu1 }
 0x224   : > { %v665_v41 = vpop.f32.mrf.mxu1 }
 0x225   : > { %v666_v42 = vadd.f32 %v665_v41, %v399_v28 }
 0x226   : > { %v1107_v43 = vpop.f32.mrf.mxu1 }
 0x227   : > { %v671_v44 = vsel %vm403_vm2, %v666_v42, -inf  ;;  %v1162_v43 = vld [vmem:[%s1386_s3 + $0x8] sm:$0xff]  }
 0x228   : > { %672 = vmax.xlane.f32.xlu0 %v671_v44  ;;  %v668_v45 = vpop.f32.mrf.mxu1  ;;  %1128 = vmatpush3.bf16.msra.mxu1 %v1162_v43  ;;  %v1163_v44 = vld [vmem:[%s1386_s3] sm:$0xff]  }
 0x229   : > { %1129 = vmatprep.subr.bf16.mxu1 %v1190_v1 }
 0x22a   : > { %v1108_v46 = vpop.f32.mrf.mxu1 }
 0x22c   : > { %v775_v47 = vpop.f32.mrf.mxu1  ;;  %1130 = vmatpush3.bf16.msra.mxu1 %v1163_v44 }
 0x22d   : > { %v776_v48 = vadd.f32 %v775_v47, %v399_v28 }
 0x22e   : > { %v1119_v49 = vpop.f32.mrf.mxu1 }
 0x22f   : > { %v781_v50 = vsel %vm403_vm2, %v776_v48, -inf }
 0x230   : > { %782 = vmax.xlane.f32.xlu1 %v781_v50  ;;  %v778_v51 = vpop.f32.mrf.mxu1 }
 0x232   : > { %v1120_v52 = vpop.f32.mrf.mxu1 }
 0x2a1   : > { %v452_v53 = vpop.xlane.xlu1 %451 }
 0x2a2   : > { %v453_v54 = vsub.f32 %v445_v30, %v452_v53 }
 0x2a4   : > { %v454_v55 = vmul.f32 1.442695, %v453_v54 }
 0x2a6   : > { %1164 = vpow2.f32 %v454_v55 }
 0x2a9   : > { %v563_v56 = vpop.xlane.xlu0 %562 }
 0x2aa   : > { %v564_v57 = vsub.f32 %v556_v36, %v563_v56 }
 0x2ac   : > { %v565_v58 = vmul.f32 1.442695, %v564_v57 }
 0x2ae   : > { %1166 = vpow2.f32 %v565_v58 }
 0x2b1   : > { %v673_v59 = vpop.xlane.xlu0 %672 }
 0x2b2   : > { %v674_v60 = vsub.f32 %v666_v42, %v673_v59  ;;  %v1041_v59 = vld [vmem:[%s1387_s4] ss:$0 sm:$0xff] }
 0x2b3   : > { %v1165_v61 = vpop.eup %1164 }
 0x2b4   : > { %v675_v62 = vmul.f32 1.442695, %v674_v60  ;;  %v456_v63 = vsel %vm403_vm2, %v1165_v61, 0.0  ;;  %v317_v60 = vunpack.c.l.bf16 %v1282_v3 }
 0x2b5   : > { %457 = vadd.xlane.f32.xlu0 %v456_v63 }
 0x2b6   : > { %1168 = vpow2.f32 %v675_v62 }
 0x2b9   : > { %v783_v6 = vpop.xlane.xlu1 %782 }
 0x2ba   : > { %v784_v7 = vsub.f32 %v776_v48, %v783_v6 }
 0x2bb   : > { %v1167_v0 = vpop.eup %1166 }
 0x2bc   : > { %v567_v2 = vsel %vm403_vm2, %v1167_v0, 0.0  ;;  %v785_v9 = vmul.f32 1.442695, %v784_v7 }
 0x2bd   : > { %568 = vadd.xlane.f32.xlu1 %v567_v2 }
 0x2be   : > { %1170 = vpow2.f32 %v785_v9 }
 0x2c3   : > { %v1169_v4 = vpop.eup %1168 }
 0x2c4   : > { %v677_v5 = vsel %vm403_vm2, %v1169_v4, 0.0 }
 0x2c5   : > { %678 = vadd.xlane.f32.xlu0 %v677_v5 }
 0x2cb   : > { %v1171_v10 = vpop.eup %1170 }
 0x2cc   : > { %v787_v11 = vsel %vm403_vm2, %v1171_v10, 0.0 }
 0x2ce   : > { %573 = vrot.lane.b32.xlu1 %v1291_v8, %s1200_s29  ;;  %s314_s29 = scalar_lea.vmem %s1391_s8, %s1026_s11 }
 0x2db   : > { %462 = vrot.lane.b32.xlu0 %v1291_v8, %s1201_s30 }
 0x2df   : > { %793 = vrot.lane.b32.xlu0 %v1291_v8, %s1202_s9 }
 0x2f2   : > { %788 = vadd.xlane.f32.xlu1 %v787_v11 }
 0x303   : > { %683 = vrot.lane.b32.xlu1 %v1291_v8, %s1203_s10 }
 0x33e   : > { %v458_v12 = vpop.xlane.xlu0 %457 }
 0x33f   : > { %1172 = vrcp.f32 %v458_v12 }
 0x346   : > { %v569_v13 = vpop.xlane.xlu1 %568 }
 0x347   : > { %1174 = vrcp.f32 %v569_v13 }
 0x34a   : > { %v574_v19 = vpop.permute.xlu1 %573 }
 0x34b   : > { %v579_v22 = vsel %vm467_vm4, %v574_v19, 0 }
 0x34c   : > { %v1173_v14 = vpop.eup %1172 }
 0x34d   : > { %v460_v16 = vmul.f32 %v1173_v14, %v1165_v61 }
 0x34e   : > { %v679_v15 = vpop.xlane.xlu0 %678 }
 0x34f   : > { %v461_v20 = vpack.c.bf16 %v460_v16, %v460_v16  ;;  %1176 = vrcp.f32 %v679_v15  ;;  %v1045_v15 = vld [vmem:[%s1389_s6] ss:$0 sm:$0xff] }
 0x352   : > { %v463_v17 = vpop.permute.xlu0 %462 }
 0x353   : > { %v469_v18 = vsel %vm467_vm4, %v463_v17, 0  ;;  %v1046_v17 = vld [vmem:[%s1390_s7] ss:$0 sm:$0xff] }
 0x354   : > { %1086 = vmatpush3.bf16.msra.mxu0 %v469_v18  ;;  %v1175_v21 = vpop.eup %1174 }
 0x355   : > { %1097 = vmatprep.subr.bf16.mxu0 %v1190_v1  ;;  %v571_v8 = vmul.f32 %v1175_v21, %v1167_v0 }
 0x356   : > { %v794_v29 = vpop.permute.xlu0 %793 }
 0x357   : > { %1088 = vmatmul.mubr.msk.bf16.vlgmr.msra.gmra.mxu0 %vm403_vm2, %v461_v20  ;;  %v572_v23 = vpack.c.bf16 %v571_v8, %v571_v8  ;;  %v799_v31 = vsel %vm467_vm4, %v794_v29, 0 }
 0x358   : > { %1098 = vmatpush3.bf16.msra.mxu0 %v579_v22  ;;  %1099 = vmatprep.mubr.msk.bf16.mxu0 %vm1191_vm0, %v1190_v1 }
 0x359   : > { %1109 = vmatprep.subr.bf16.mxu0 %v1190_v1 }
 0x35c   : > { %v1177_v24 = vpop.eup %1176 }
 0x35d   : > { %v681_v26 = vmul.f32 %v1177_v24, %v1169_v4 }
 0x35f   : > { %1100 = vmatmul.mubr.msk.bf16.vlgmr.msra.gmra.mxu0 %vm403_vm2, %v572_v23  ;;  %v682_v30 = vpack.c.bf16 %v681_v26, %v681_v26 }
 0x360   : > { %1111 = vmatprep.mubr.msk.bf16.mxu0 %vm1191_vm0, %v1190_v1 }
 0x37b   : > { %v789_v25 = vpop.xlane.xlu1 %788 }
 0x37c   : > { %1178 = vrcp.f32 %v789_v25 }
 0x37f   : > { %v684_v27 = vpop.permute.xlu1 %683 }
 0x380   : > { %v689_v28 = vsel %vm467_vm4, %v684_v27, 0 }
 0x381   : > { %1110 = vmatpush3.bf16.msra.mxu0 %v689_v28 }
 0x382   : > { %1121 = vmatprep.subr.bf16.mxu0 %v1190_v1 }
 0x384   : > { %1112 = vmatmul.mubr.msk.bf16.vlgmr.msra.gmra.mxu0 %vm403_vm2, %v682_v30 }
 0x385   : > { %1122 = vmatpush3.bf16.msra.mxu0 %v799_v31  ;;  %1123 = vmatprep.mubr.msk.bf16.mxu0 %vm1191_vm0, %v1190_v1 }
 0x389   : > { %v1179_v32 = vpop.eup %1178 }
 0x38a   : > { %v791_v33 = vmul.f32 %v1179_v32, %v1171_v10 }
 0x38c   : > { %v792_v34 = vpack.c.bf16 %v791_v33, %v791_v33 }
 0x38e   : > { %1124 = vmatmul.mubr.msk.bf16.vlgmr.msra.gmra.mxu0 %vm403_vm2, %v792_v34 }
 0x417   : > { %v505_v35 = vpop.f32.mrf.mxu0 }
 0x419   : > { %v1089_v36 = vpop.f32.mrf.mxu0 }
 0x41b   : > { %v508_v37 = vpop.f32.mrf.mxu0 }
 0x41d   : > { %v1090_v38 = vpop.f32.mrf.mxu0 }
 0x41f   : > { %v615_v39 = vpop.f32.mrf.mxu0 }
 0x420   : > { %842 = vrot.lane.b32.xlu1 %v615_v39, %s1204_s12 }
 0x421   : > { %v1101_v40 = vpop.f32.mrf.mxu0 }
 0x423   : > { %v618_v41 = vpop.f32.mrf.mxu0 }
 0x425   : > { %v1102_v42 = vpop.f32.mrf.mxu0 }
 0x444   : > { %v725_v45 = vpop.f32.mrf.mxu0 }
 0x445   : > { %846 = vrot.lane.b32.xlu0 %v725_v45, %s1205_s17 }
 0x446   : > { %v1113_v46 = vpop.f32.mrf.mxu0 }
 0x448   : > { %v728_v47 = vpop.f32.mrf.mxu0 }
 0x44a   : > { %v1114_v48 = vpop.f32.mrf.mxu0 }
 0x44e   : > { %v835_v49 = vpop.f32.mrf.mxu0 }
 0x44f   : > { %850 = vrot.lane.b32.xlu1 %v835_v49, %s1206_s18 }
 0x450   : > { %v1125_v50 = vpop.f32.mrf.mxu0 }
 0x452   : > { %v838_v51 = vpop.f32.mrf.mxu0 }
 0x454   : > { %v1126_v52 = vpop.f32.mrf.mxu0 }
 0x492   : > { %v843_v53 = vpop.permute.xlu1 %842 }
 0x493   : > { %v853_v54 = vsel %vm403_vm2, %v505_v35, %v843_v53 }
 0x4b7   : > { %v847_v1 = vpop.permute.xlu0 %846 }
 0x4b8   : > { %v855_v55 = vsel %vm854_vm5, %v853_v54, %v847_v1 }
 0x4c1   : > { %v851_v56 = vpop.permute.xlu1 %850 }
 0x4c2   : > { %v857_v57 = vsel %vm856_vm6, %v855_v55, %v851_v56 }
 0x4c3   : > { %v858_v58 = vpack.c.bf16 %v857_v57, %v857_v57 }
 0x4c5   : > { %1132 = vmatmul.mubr.msk.bf16.vlgmr.msra.gmra.mxu1 %vm341_vm1, %v858_v58 }
 0x585   : > { %v919_v61 = vpop.f32.mrf.mxu1 }
 0x586   : > { %v920_v62 = vadd.f32 %v1041_v59, %v919_v61 }
 0x587   : > { %v1133_v63 = vpop.f32.mrf.mxu1 }
 0x588   : > { %v925_v0 = vadd.f32 %v920_v62, %v317_v60 }
 0x589   : > { %v922_v2 = vpop.f32.mrf.mxu1 }
 0x58a   : > { %v928_v4 = vsel %vm341_vm1, %v925_v0, 0.0 }
 0x58b   : > { %v1134_v5 = vpop.f32.mrf.mxu1  ;;  %929 = vadd.xlane.f32.xlu0 %v928_v4 }
 0x614   : > { %v930_v6 = vpop.xlane.xlu0 %929 }
 0x615   : > { %v932_v7 = vmul.f32 0.03125, %v930_v6 }
 0x617   : > { %v933_v9 = vsub.f32 %v925_v0, %v932_v7 }
 0x619   : > { %v934_v10 = vmul.f32 %v933_v9, %v933_v9 }
 0x61b   : > { %v935_v11 = vsel %vm341_vm1, %v934_v10, 0.0 }
 0x61c   : > { %936 = vadd.xlane.f32.xlu1 %v935_v11 }
 0x6a5   : > { %v937_v12 = vpop.xlane.xlu1 %936 }
 0x6a6   : > { %v938_v13 = vmul.f32 0.03125, %v937_v12 }
 0x6a8   : > { %v939_v3 = vadd.f32 1e-05, %v938_v13 }
 0x6aa   : > { %1180 = vrsqrt.f32 %v939_v3 }
 0x6b7   : > { %v1181_v14 = vpop.eup %1180 }
 0x6b8   : > { %v941_v16 = vmul.f32 %v1181_v14, %v933_v9 }
 0x6ba   : > { %v948_v18 = vmul.f32 %v1045_v15, %v941_v16 }
 0x6bc   : > { %v955_v19 = vadd.f32 %v1046_v17, %v948_v18 }
 0x6be   : > { %v956_v20 = vpack.c.bf16 %v955_v19, %v955_v19 }
 0x6c0   : > { %958 = vst.msk [vmem:[%s314_s29] sm:$0xf] %vm957_vm7, %v956_v20 }
 0x6c1 PF: > { %s18_s27 = sadd.s32 1, %s1188_s27  }
 0x6c2   : > { %p15_p4 = scmp.ge.s32.totalorder %s18_s27, 4  }
 0x6c4   :  { %17 = sbr.rel (!%p15_p4) target bundleno = 1 (0x1), region = 85 }

// kernel: pallas_transformer_forward.11
= control target key start
LH: loop header
LB: loop body
LE: loop exit
PB: predicated region body
PF: predicated region fallthrough
CT: control target
= control target key end

     0   :  { %s1243_s27 = smov 0   ;;  %s1374_s0 = inlined_call_operand.vmem [shape: bf16[2,8,32], index: 0, kind: input, shape index: {}]   ;;  %s1375_s1 = inlined_call_operand.vmem [shape: bf16[32,96], index: 1, kind: input, shape index: {}]   ;;  %s1376_s2 = inlined_call_operand.vmem [shape: f32[1,96], index: 2, kind: input, shape index: {}]   ;;  %s1377_s3 = inlined_call_operand.vmem [shape: bf16[32,32], index: 3, kind: input, shape index: {}]   ;;  %s1378_s4 = inlined_call_operand.vmem [shape: f32[1,32], index: 4, kind: input, shape index: {}]   ;;  %s1379_s5 = inlined_call_operand.vmem [shape: f32[2,1,8], index: 5, kind: input, shape index: {}]   ;;  %s1380_s6 = inlined_call_operand.vmem [shape: f32[1,32], index: 6, kind: input, shape index: {}]   ;;  %s1381_s7 = inlined_call_operand.vmem [shape: f32[1,32], index: 7, kind: input, shape index: {}]   ;;  %s1382_s8 = inlined_call_operand.vmem [shape: bf16[2,8,32], index: 8, kind: output, shape index: {}]  }
   0x1 LB: > { %s1014_s28 = sadd.s32 4294967295, %s1180_s27   ;;  %p1018_p0 = scmp.ge.s32.totalorder %s1180_s27, 1  ;;  %s1180_s27 = sphi %s1243_s27, %s18_s27  }
   0x2   : > { %p269_p1 = scmp.lt.s32.totalorder %s1180_s27, 3 }
   0x4   : > { %p270_p2 = pnand %p1018_p0, %p269_p1 }
   0x5   : > { %p304_p3 = scmp.lt.s32.totalorder (!%p270_p2), %s1014_s28, 1  ;;  %s1184_s17 = smov (!%p270_p2), 120  }
   0x6   : > { %273 = sbr.rel (%p270_p2) target bundleno = 1729 (0x6c1), region = 52  ;;  %s1185_s18 = smov (!%p270_p2), 96  }
   0x7   : > { %s1186_s19 = smov (!%p270_p2), 80   ;;  %s1187_s20 = smov (!%p270_p2), 88  }
   0x8   : > { %s1188_s21 = smov (!%p270_p2), 72   ;;  %s1189_s22 = smov (!%p270_p2), 112  }
   0x9   : > { %s1190_s23 = smov (!%p270_p2), 104   ;;  %s1191_s29 = smov (!%p270_p2), 56  }
   0xa   : > { %s1192_s30 = smov (!%p270_p2), 64   ;;  %s1193_s9 = smov (!%p270_p2), 40  }
   0xb   : > { %v1152_v0 = vld [vmem:[%s1375_s1 + $0x8] sm:$0xff]   ;;  %v1182_v1 = vmov 0.0   ;;  %v1153_v2 = vld [vmem:[%s1375_s1] sm:$0xff]   ;;  %vm1183_vm0 = vmmov 0   ;;  %s1384_s28 = smov (!%p304_p3, %s1014_s28), 1  ;;  %vm341_vm1 = vcmask 261120  }
   0xc   : > { %1064 = vmatprep.subr.bf16.mxu0 %v1182_v1  ;;  %1072 = vmatprep.subr.bf16.mxu1 %v1182_v1  ;;  %s1019_s11 = sshll.u32 %s1384_s28, 2  ;;  %v1021_v4 = vld [vmem:[%s1376_s2] ss:$0 sm:$0xff]  ;;  %vm396_vm2 = vcmask 64512   ;;  %s310_s26 = scalar_lea.vmem %s1379_s5, %s1384_s28  ;;  %vm460_vm3 = vcmask 1043456   ;;  %vm847_vm4 = vcmask 130048  }
   0xd   : > { %1065 = vmatpush3.bf16.msra.mxu0 %v1152_v0  ;;  %1068 = vmatprep.mubr.msk.bf16.mxu0 %vm1183_vm0, %v1182_v1  ;;  %s307_s14 = scalar_lea.vmem %s1374_s0, %s1019_s11  ;;  %v1025_v22 = vld [vmem:[%s310_s26] ss:$0 sm:$0xff]  ;;  %s1194_s10 = smov 48   ;;  %vm849_vm5 = vcmask 195584   ;;  %vm950_vm6 = vcmask 257024  }
   0xe   : > { %1066 = vmatprep.subr.bf16.mxu0 %v1182_v1  ;;  %1074 = vmatprep.mubr.msk.bf16.mxu1 %vm1183_vm0, %v1182_v1  ;;  %v1273_v3 = vld [vmem:[%s307_s14] sm:$0xf]  ;;  %s1195_s12 = smov 8  }
  0x11   : > { %1067 = vmatpush3.bf16.msra.mxu0 %v1153_v2 }
  0x12   : > { %1078 = vmatprep.subr.bf16.mxu0 %v1182_v1 }
  0x14   : > { %1069 = vmatmul.mubr.msk.bf16.vlgmr.msra.gmra.mxu0 %vm341_vm1, %v1273_v3 }
  0x15   : > { %1080 = vmatprep.mubr.msk.bf16.mxu0 %vm1183_vm0, %v1182_v1 }
  0xd4   : > { %v379_v5 = vpop.f32.mrf.mxu0 }
  0xd5   : > { %v380_v6 = vadd.f32 %v1021_v4, %v379_v5 }
  0xd6   : > { %v1070_v7 = vpop.f32.mrf.mxu0 }
  0xd7   : > { %v1282_v8 = vpack.c.bf16 %v380_v6, %v380_v6 }
  0xd8   : > { %v382_v9 = vpop.f32.mrf.mxu0 }
  0xd9   : > { %504 = vrot.lane.b32.xlu1 %v1282_v8, %s1184_s17  ;;  %394 = vrot.lane.b32.xlu0 %v1282_v8, %s1185_s18  ;;  %s1196_s17 = smov 16   ;;  %s1197_s18 = smov 24  }
  0xda   : > { %v1071_v10 = vpop.f32.mrf.mxu0 }
  0xdd   : > { %616 = vrot.lane.b32.xlu1 %v1282_v8, %s1186_s19  ;;  %506 = vrot.lane.b32.xlu0 %v1282_v8, %s1187_s20 }
  0xe1   : > { %726 = vrot.lane.b32.xlu1 %v1282_v8, %s1188_s21  ;;  %614 = vrot.lane.b32.xlu0 %v1282_v8, %s1189_s22 }
  0xe5   : > { %724 = vrot.lane.b32.xlu0 %v1282_v8, %s1190_s23 }
 0x14b   : > { %v395_v11 = vpop.permute.xlu0 %394  ;;  %v505_v14 = vpop.permute.xlu1 %504 }
 0x14c   : > { %v401_v12 = vsel %vm396_vm2, %v395_v11, 0 }
 0x14d   : > { %1073 = vmatpush3.bf16.xpose.msra.mxu1 %v401_v12 }
 0x14e   : > { %1084 = vmatprep.subr.bf16.mxu1 %v1182_v1 }
 0x14f   : > { %v507_v13 = vpop.permute.xlu0 %506  ;;  %v617_v16 = vpop.permute.xlu1 %616 }
 0x150   : > { %v512_v15 = vsel %vm396_vm2, %v507_v13, 0  ;;  %v622_v17 = vsel %vm396_vm2, %v617_v16, 0 }
 0x153   : > { %v727_v18 = vpop.permute.xlu1 %726  ;;  %v615_v19 = vpop.permute.xlu0 %614 }
 0x154   : > { %1075 = vmatmul.mubr.msk.bf16.vlgmr.msra.gmra.mxu1 %vm396_vm2, %v1282_v8  ;;  %v732_v20 = vsel %vm396_vm2, %v727_v18, 0 }
 0x155   : > { %1085 = vmatpush3.bf16.xpose.msra.mxu1 %v512_v15  ;;  %1086 = vmatprep.mubr.msk.bf16.mxu1 %vm1183_vm0, %v1182_v1 }
 0x156   : > { %1096 = vmatprep.subr.bf16.mxu1 %v1182_v1 }
 0x157   : > { %v725_v21 = vpop.permute.xlu0 %724 }
 0x15c   : > { %1087 = vmatmul.mubr.msk.bf16.vlgmr.msra.gmra.mxu1 %vm396_vm2, %v505_v14 }
 0x15d   : > { %1097 = vmatpush3.bf16.xpose.msra.mxu1 %v622_v17  ;;  %1098 = vmatprep.mubr.msk.bf16.mxu1 %vm1183_vm0, %v1182_v1 }
 0x15e   : > { %1108 = vmatprep.subr.bf16.mxu1 %v1182_v1 }
 0x164   : > { %1099 = vmatmul.mubr.msk.bf16.vlgmr.msra.gmra.mxu1 %vm396_vm2, %v615_v19 }
 0x165   : > { %1109 = vmatpush3.bf16.xpose.msra.mxu1 %v732_v20  ;;  %1110 = vmatprep.mubr.msk.bf16.mxu1 %vm1183_vm0, %v1182_v1 }
 0x166   : > { %1120 = vmatprep.subr.bf16.mxu1 %v1182_v1 }
 0x16c   : > { %1111 = vmatmul.mubr.msk.bf16.vlgmr.msra.gmra.mxu1 %vm396_vm2, %v725_v21 }
 0x16d   : > { %1124 = vmatprep.mubr.msk.bf16.mxu1 %vm1183_vm0, %v1182_v1 }
 0x214   : > { %v437_v23 = vpop.f32.mrf.mxu1 }
 0x215   : > { %v438_v24 = vadd.f32 %v1025_v22, %v437_v23 }
 0x216   : > { %v1076_v25 = vpop.f32.mrf.mxu1 }
 0x217   : > { %v443_v26 = vsel %vm396_vm2, %v438_v24, -inf }
 0x218   : > { %444 = vmax.xlane.f32.xlu1 %v443_v26  ;;  %v440_v27 = vpop.f32.mrf.mxu1 }
 0x21a   : > { %v1077_v28 = vpop.f32.mrf.mxu1 }
 0x21c   : > { %v548_v29 = vpop.f32.mrf.mxu1 }
 0x21d   : > { %v549_v30 = vadd.f32 %v1025_v22, %v548_v29 }
 0x21e   : > { %v1088_v31 = vpop.f32.mrf.mxu1 }
 0x21f   : > { %v554_v32 = vsel %vm396_vm2, %v549_v30, -inf }
 0x220   : > { %555 = vmax.xlane.f32.xlu0 %v554_v32  ;;  %v551_v33 = vpop.f32.mrf.mxu1 }
 0x222   : > { %v1089_v34 = vpop.f32.mrf.mxu1 }
 0x224   : > { %v658_v35 = vpop.f32.mrf.mxu1 }
 0x225   : > { %v659_v36 = vadd.f32 %v1025_v22, %v658_v35 }
 0x226   : > { %v1100_v37 = vpop.f32.mrf.mxu1 }
 0x227   : > { %v664_v38 = vsel %vm396_vm2, %v659_v36, -inf  ;;  %v1154_v37 = vld [vmem:[%s1377_s3 + $0x8] sm:$0xff]  }
 0x228   : > { %665 = vmax.xlane.f32.xlu0 %v664_v38  ;;  %v661_v39 = vpop.f32.mrf.mxu1  ;;  %1121 = vmatpush3.bf16.msra.mxu1 %v1154_v37  ;;  %v1155_v38 = vld [vmem:[%s1377_s3] sm:$0xff]  }
 0x229   : > { %1122 = vmatprep.subr.bf16.mxu1 %v1182_v1 }
 0x22a   : > { %v1101_v40 = vpop.f32.mrf.mxu1 }
 0x22c   : > { %v768_v41 = vpop.f32.mrf.mxu1  ;;  %1123 = vmatpush3.bf16.msra.mxu1 %v1155_v38 }
 0x22d   : > { %v769_v42 = vadd.f32 %v1025_v22, %v768_v41 }
 0x22e   : > { %v1112_v43 = vpop.f32.mrf.mxu1 }
 0x22f   : > { %v774_v44 = vsel %vm396_vm2, %v769_v42, -inf }
 0x230   : > { %775 = vmax.xlane.f32.xlu1 %v774_v44  ;;  %v771_v45 = vpop.f32.mrf.mxu1 }
 0x232   : > { %v1113_v46 = vpop.f32.mrf.mxu1 }
 0x2a1   : > { %v445_v47 = vpop.xlane.xlu1 %444 }
 0x2a2   : > { %v446_v48 = vsub.f32 %v438_v24, %v445_v47 }
 0x2a4   : > { %v447_v49 = vmul.f32 1.442695, %v446_v48 }
 0x2a6   : > { %1156 = vpow2.f32 %v447_v49 }
 0x2a9   : > { %v556_v50 = vpop.xlane.xlu0 %555 }
 0x2aa   : > { %v557_v51 = vsub.f32 %v549_v30, %v556_v50 }
 0x2ac   : > { %v558_v52 = vmul.f32 1.442695, %v557_v51 }
 0x2ae   : > { %1158 = vpow2.f32 %v558_v52 }
 0x2b1   : > { %v666_v53 = vpop.xlane.xlu0 %665 }
 0x2b2   : > { %v667_v54 = vsub.f32 %v659_v36, %v666_v53  ;;  %v1034_v53 = vld [vmem:[%s1378_s4] ss:$0 sm:$0xff] }
 0x2b3   : > { %v1157_v55 = vpop.eup %1156 }
 0x2b4   : > { %v668_v56 = vmul.f32 1.442695, %v667_v54  ;;  %v449_v57 = vsel %vm396_vm2, %v1157_v55, 0.0  ;;  %v317_v54 = vunpack.c.l.bf16 %v1273_v3 }
 0x2b5   : > { %450 = vadd.xlane.f32.xlu0 %v449_v57 }
 0x2b6   : > { %1160 = vpow2.f32 %v668_v56 }
 0x2b9   : > { %v776_v62 = vpop.xlane.xlu1 %775 }
 0x2ba   : > { %v777_v63 = vsub.f32 %v769_v42, %v776_v62 }
 0x2bb   : > { %v1159_v58 = vpop.eup %1158 }
 0x2bc   : > { %v560_v59 = vsel %vm396_vm2, %v1159_v58, 0.0  ;;  %v778_v0 = vmul.f32 1.442695, %v777_v63 }
 0x2bd   : > { %561 = vadd.xlane.f32.xlu1 %v560_v59 }
 0x2be   : > { %1162 = vpow2.f32 %v778_v0 }
 0x2c3   : > { %v1161_v60 = vpop.eup %1160 }
 0x2c4   : > { %v670_v61 = vsel %vm396_vm2, %v1161_v60, 0.0 }
 0x2c5   : > { %671 = vadd.xlane.f32.xlu0 %v670_v61 }
 0x2cb   : > { %v1163_v2 = vpop.eup %1162 }
 0x2cc   : > { %v780_v4 = vsel %vm396_vm2, %v1163_v2, 0.0 }
 0x2ce   : > { %566 = vrot.lane.b32.xlu1 %v1282_v8, %s1191_s29  ;;  %s314_s29 = scalar_lea.vmem %s1382_s8, %s1019_s11 }
 0x2db   : > { %455 = vrot.lane.b32.xlu0 %v1282_v8, %s1192_s30 }
 0x2df   : > { %786 = vrot.lane.b32.xlu0 %v1282_v8, %s1193_s9 }
 0x2f2   : > { %781 = vadd.xlane.f32.xlu1 %v780_v4 }
 0x303   : > { %676 = vrot.lane.b32.xlu1 %v1282_v8, %s1194_s10 }
 0x33e   : > { %v451_v5 = vpop.xlane.xlu0 %450 }
 0x33f   : > { %1164 = vrcp.f32 %v451_v5 }
 0x346   : > { %v562_v6 = vpop.xlane.xlu1 %561 }
 0x347   : > { %1166 = vrcp.f32 %v562_v6 }
 0x34a   : > { %v567_v13 = vpop.permute.xlu1 %566 }
 0x34b   : > { %v572_v16 = vsel %vm460_vm3, %v567_v13, 0 }
 0x34c   : > { %v1165_v7 = vpop.eup %1164 }
 0x34d   : > { %v453_v10 = vmul.f32 %v1165_v7, %v1157_v55 }
 0x34e   : > { %v672_v9 = vpop.xlane.xlu0 %671 }
 0x34f   : > { %v454_v14 = vpack.c.bf16 %v453_v10, %v453_v10  ;;  %1168 = vrcp.f32 %v672_v9  ;;  %v1038_v9 = vld [vmem:[%s1380_s6] ss:$0 sm:$0xff] }
 0x352   : > { %v456_v11 = vpop.permute.xlu0 %455 }
 0x353   : > { %v462_v12 = vsel %vm460_vm3, %v456_v11, 0  ;;  %v1039_v11 = vld [vmem:[%s1381_s7] ss:$0 sm:$0xff] }
 0x354   : > { %1079 = vmatpush3.bf16.msra.mxu0 %v462_v12  ;;  %v1167_v15 = vpop.eup %1166 }
 0x355   : > { %1090 = vmatprep.subr.bf16.mxu0 %v1182_v1  ;;  %v564_v8 = vmul.f32 %v1167_v15, %v1159_v58 }
 0x356   : > { %v787_v23 = vpop.permute.xlu0 %786 }
 0x357   : > { %1081 = vmatmul.mubr.msk.bf16.vlgmr.msra.gmra.mxu0 %vm396_vm2, %v454_v14  ;;  %v565_v17 = vpack.c.bf16 %v564_v8, %v564_v8  ;;  %v792_v25 = vsel %vm460_vm3, %v787_v23, 0 }
 0x358   : > { %1091 = vmatpush3.bf16.msra.mxu0 %v572_v16  ;;  %1092 = vmatprep.mubr.msk.bf16.mxu0 %vm1183_vm0, %v1182_v1 }
 0x359   : > { %1102 = vmatprep.subr.bf16.mxu0 %v1182_v1 }
 0x35c   : > { %v1169_v18 = vpop.eup %1168 }
 0x35d   : > { %v674_v20 = vmul.f32 %v1169_v18, %v1161_v60 }
 0x35f   : > { %1093 = vmatmul.mubr.msk.bf16.vlgmr.msra.gmra.mxu0 %vm396_vm2, %v565_v17  ;;  %v675_v24 = vpack.c.bf16 %v674_v20, %v674_v20 }
 0x360   : > { %1104 = vmatprep.mubr.msk.bf16.mxu0 %vm1183_vm0, %v1182_v1 }
 0x37b   : > { %v782_v19 = vpop.xlane.xlu1 %781 }
 0x37c   : > { %1170 = vrcp.f32 %v782_v19 }
 0x37f   : > { %v677_v21 = vpop.permute.xlu1 %676 }
 0x380   : > { %v682_v22 = vsel %vm460_vm3, %v677_v21, 0 }
 0x381   : > { %1103 = vmatpush3.bf16.msra.mxu0 %v682_v22 }
 0x382   : > { %1114 = vmatprep.subr.bf16.mxu0 %v1182_v1 }
 0x384   : > { %1105 = vmatmul.mubr.msk.bf16.vlgmr.msra.gmra.mxu0 %vm396_vm2, %v675_v24 }
 0x385   : > { %1115 = vmatpush3.bf16.msra.mxu0 %v792_v25  ;;  %1116 = vmatprep.mubr.msk.bf16.mxu0 %vm1183_vm0, %v1182_v1 }
 0x389   : > { %v1171_v26 = vpop.eup %1170 }
 0x38a   : > { %v784_v27 = vmul.f32 %v1171_v26, %v1163_v2 }
 0x38c   : > { %v785_v28 = vpack.c.bf16 %v784_v27, %v784_v27 }
 0x38e   : > { %1117 = vmatmul.mubr.msk.bf16.vlgmr.msra.gmra.mxu0 %vm396_vm2, %v785_v28 }
 0x417   : > { %v498_v29 = vpop.f32.mrf.mxu0 }
 0x419   : > { %v1082_v30 = vpop.f32.mrf.mxu0 }
 0x41b   : > { %v501_v31 = vpop.f32.mrf.mxu0 }
 0x41d   : > { %v1083_v32 = vpop.f32.mrf.mxu0 }
 0x41f   : > { %v608_v33 = vpop.f32.mrf.mxu0 }
 0x420   : > { %835 = vrot.lane.b32.xlu1 %v608_v33, %s1195_s12 }
 0x421   : > { %v1094_v34 = vpop.f32.mrf.mxu0 }
 0x423   : > { %v611_v35 = vpop.f32.mrf.mxu0 }
 0x425   : > { %v1095_v36 = vpop.f32.mrf.mxu0 }
 0x444   : > { %v718_v39 = vpop.f32.mrf.mxu0 }
 0x445   : > { %839 = vrot.lane.b32.xlu0 %v718_v39, %s1196_s17 }
 0x446   : > { %v1106_v40 = vpop.f32.mrf.mxu0 }
 0x448   : > { %v721_v41 = vpop.f32.mrf.mxu0 }
 0x44a   : > { %v1107_v42 = vpop.f32.mrf.mxu0 }
 0x44e   : > { %v828_v43 = vpop.f32.mrf.mxu0 }
 0x44f   : > { %843 = vrot.lane.b32.xlu1 %v828_v43, %s1197_s18 }
 0x450   : > { %v1118_v44 = vpop.f32.mrf.mxu0 }
 0x452   : > { %v831_v45 = vpop.f32.mrf.mxu0 }
 0x454   : > { %v1119_v46 = vpop.f32.mrf.mxu0 }
 0x492   : > { %v836_v47 = vpop.permute.xlu1 %835 }
 0x493   : > { %v846_v48 = vsel %vm396_vm2, %v498_v29, %v836_v47 }
 0x4b7   : > { %v840_v1 = vpop.permute.xlu0 %839 }
 0x4b8   : > { %v848_v49 = vsel %vm847_vm4, %v846_v48, %v840_v1 }
 0x4c1   : > { %v844_v50 = vpop.permute.xlu1 %843 }
 0x4c2   : > { %v850_v51 = vsel %vm849_vm5, %v848_v49, %v844_v50 }
 0x4c3   : > { %v851_v52 = vpack.c.bf16 %v850_v51, %v850_v51 }
 0x4c5   : > { %1125 = vmatmul.mubr.msk.bf16.vlgmr.msra.gmra.mxu1 %vm341_vm1, %v851_v52 }
 0x585   : > { %v912_v55 = vpop.f32.mrf.mxu1 }
 0x586   : > { %v913_v56 = vadd.f32 %v1034_v53, %v912_v55 }
 0x587   : > { %v1126_v57 = vpop.f32.mrf.mxu1 }
 0x588   : > { %v918_v58 = vadd.f32 %v913_v56, %v317_v54 }
 0x589   : > { %v915_v59 = vpop.f32.mrf.mxu1 }
 0x58a   : > { %v921_v60 = vsel %vm341_vm1, %v918_v58, 0.0 }
 0x58b   : > { %v1127_v61 = vpop.f32.mrf.mxu1  ;;  %922 = vadd.xlane.f32.xlu0 %v921_v60 }
 0x614   : > { %v923_v62 = vpop.xlane.xlu0 %922 }
 0x615   : > { %v925_v63 = vmul.f32 0.03125, %v923_v62 }
 0x617   : > { %v926_v0 = vsub.f32 %v918_v58, %v925_v63 }
 0x619   : > { %v927_v2 = vmul.f32 %v926_v0, %v926_v0 }
 0x61b   : > { %v928_v4 = vsel %vm341_vm1, %v927_v2, 0.0 }
 0x61c   : > { %929 = vadd.xlane.f32.xlu1 %v928_v4 }
 0x6a5   : > { %v930_v5 = vpop.xlane.xlu1 %929 }
 0x6a6   : > { %v931_v6 = vmul.f32 0.03125, %v930_v5 }
 0x6a8   : > { %v932_v3 = vadd.f32 1e-05, %v931_v6 }
 0x6aa   : > { %1172 = vrsqrt.f32 %v932_v3 }
 0x6b7   : > { %v1173_v7 = vpop.eup %1172 }
 0x6b8   : > { %v934_v10 = vmul.f32 %v1173_v7, %v926_v0 }
 0x6ba   : > { %v941_v12 = vmul.f32 %v1038_v9, %v934_v10 }
 0x6bc   : > { %v948_v13 = vadd.f32 %v1039_v11, %v941_v12 }
 0x6be   : > { %v949_v14 = vpack.c.bf16 %v948_v13, %v948_v13 }
 0x6c0   : > { %951 = vst.msk [vmem:[%s314_s29] sm:$0xf] %vm950_vm6, %v949_v14 }
 0x6c1 PF: > { %s18_s27 = sadd.s32 1, %s1180_s27  }
 0x6c2   : > { %p15_p4 = scmp.ge.s32.totalorder %s18_s27, 4  }
 0x6c4   :  { %17 = sbr.rel (!%p15_p4) target bundleno = 1 (0x1), region = 85 }

// kernel: pallas_transformer_forward.21
= control target key start
LH: loop header
LB: loop body
LE: loop exit
PB: predicated region body
PF: predicated region fallthrough
CT: control target
= control target key end

     0   :  { %v156_v1 = vmov 0.0   ;;  %vm157_vm0 = vmmov 0   ;;  %s196_s0 = inlined_call_operand.vmem [shape: bf16[16,32], index: 0, kind: input, shape index: {}]   ;;  %s197_s1 = inlined_call_operand.vmem [shape: bf16[32,48], index: 1, kind: input, shape index: {}]   ;;  %s198_s2 = inlined_call_operand.vmem [shape: f32[1,48], index: 2, kind: input, shape index: {}]   ;;  %s199_s3 = inlined_call_operand.hbm [shape: f32[16,48], index: 3, kind: output, shape index: {}]  }
   0x1   :  { %v131_v0 = vld [vmem:[%s197_s1 + $0x8] sm:$0xff]   ;;  %118 = vmatprep.subr.bf16.mxu0 %v156_v1  ;;  %v132_v2 = vld [vmem:[%s197_s1] sm:$0xff]   ;;  %122 = vmatprep.mubr.msk.bf16.mxu0 %vm157_vm0, %v156_v1 }
   0x2   :  { %119 = vmatpush3.bf16.msra.mxu0 %v131_v0 }
   0x3   :  { %120 = vmatprep.subr.bf16.mxu0 %v156_v1 }
   0x4   :  { %8 = vsyncpa [#allocation3], 0  ;;  %v133_v3 = vld [vmem:[%s196_s0] sm:$0xff]   ;;  %vm46_vm1 = vcmask 261120   ;;  %vm91_vm2 = vcmask 392192   ;;  %s158_s20 = smov [#allocation2]  }
   0x5   :  { %v110_v4 = vld [vmem:[%s198_s2] ss:$0 sm:$0xff]  ;;  %s99_s1 = sshll.u32 %s158_s20, 4  ;;  %s100_s1 = int_to_ptr.vmem [resolvable:$true] %s99_s1 }
   0x6   :  { %121 = vmatpush3.bf16.msra.mxu0 %v132_v2  ;;  %s134_s0 = scalar_lea.vmem %s100_s1, 256  ;;  %p139_p1 = scmp.lt.s32.totalorder %s100_s1, %s100_s1 }
   0x7   :  { %p135_p0 = scmp.ne.s32.totalorder %s100_s1, %s134_s0  ;;  %p140_p2 = scmp.lt.s32.totalorder %s134_s0, %s134_s0 }
   0x9   :  { %123 = vmatmul.mubr.msk.bf16.vlgmr.msra.gmra.mxu0 %vm46_vm1, %v133_v3  ;;  %p141_p3 = por %p140_p2, %p139_p1 }
   0xb   :  { %p142_p4 = pnand %p141_p3, %p135_p0 }
  0xc9   :  { %v84_v5 = vpop.f32.mrf.mxu0 }
  0xca   :  { %v85_v6 = vadd.f32 %v110_v4, %v84_v5 }
  0xcb   :  { %v124_v7 = vpop.f32.mrf.mxu0 }
  0xcc   :  { %92 = vst.msk [vmem:[#allocation2] sm:$0xff] %vm91_vm2, %v85_v6 }
  0xcd   :  { %v87_v8 = vpop.f32.mrf.mxu0 }
  0xce   :  { %v88_v9 = vadd.f32 %v110_v4, %v87_v8 }
  0xcf   :  { %v125_v10 = vpop.f32.mrf.mxu0 }
  0xd0   :  { %93 = vst.msk [vmem:[#allocation2 + $0x8] sm:$0xff] %vm91_vm2, %v88_v9 }
  0xd1   :  { %145 = shalt.err (!%p142_p4)
}
  0xd2   :  { %s159_s2 = smov 128   ;;  %s160_s21 = smov 8  }
  0xd3   :  { %105 = dma.vmem_to_hbm [thread:$0]  %s100_s1, 256, %s199_s3, [#allocation3], %s159_s2, %s159_s2, %s160_s21  }
  0xd4   :  { %154 = dma.done.wait [#allocation3], 256  }
  0xd5   :  { %155 = vsyncadd [#allocation3], 4294967040 }
  0xd6   :  { %109 = vsyncpa [#allocation3], 1 }

// kernel: pallas_transformer_forward.16
= control target key start
LH: loop header
LB: loop body
LE: loop exit
PB: predicated region body
PF: predicated region fallthrough
CT: control target
= control target key end

     0   :  { %s1446_s30 = smov 0   ;;  %s1448_s10 = smov 0   ;;  %s1602_s0 = inlined_call_operand.vmem [shape: bf16[2,8,32], index: 0, kind: input, shape index: {}]   ;;  %s1603_s1 = inlined_call_operand.vmem [shape: bf16[2,8,32], index: 1, kind: input, shape index: {}]   ;;  %s1604_s2 = inlined_call_operand.vmem [shape: bf16[32,96], index: 2, kind: input, shape index: {}]   ;;  %s1605_s3 = inlined_call_operand.vmem [shape: f32[1,96], index: 3, kind: input, shape index: {}]   ;;  %s1606_s4 = inlined_call_operand.vmem [shape: bf16[32,32], index: 4, kind: input, shape index: {}]   ;;  %s1607_s5 = inlined_call_operand.vmem [shape: f32[1,32], index: 5, kind: input, shape index: {}]   ;;  %s1608_s6 = inlined_call_operand.vmem [shape: f32[2,1,8], index: 6, kind: input, shape index: {}]   ;;  %s1609_s7 = inlined_call_operand.vmem [shape: f32[1,32], index: 7, kind: input, shape index: {}]   ;;  %s1610_s8 = inlined_call_operand.vmem [shape: f32[1,32], index: 8, kind: input, shape index: {}]   ;;  %s1611_s9 = inlined_call_operand.vmem [shape: bf16[2,8,32], index: 9, kind: output, shape index: {}]  }
   0x1   :  { %s1450_s11 = smov 0  }
   0x2 LB: > { %s31_s12 = sadd.s32 1, %s1378_s10  ;;  %p1179_p0 = scmp.ge.s32.totalorder %s1382_s11, 1  ;;  %s1382_s11 = sphi %s1450_s11, %s19_s11   ;;  %s1378_s10 = sphi %s1448_s10, %s1613_s10   ;;  %s1374_s30 = sphi %s1446_s30, %s1612_s30  }
   0x3   : > { %p33_p1 = scmp.ge.s32.totalorder %s31_s12, 2  ;;  %p322_p2 = scmp.lt.s32.totalorder %s1382_s11, 3 }
   0x5   : > { %s1615_s12 = smov (%p33_p1, %s31_s12), 0  ;;  %p323_p3 = pnand %p1179_p0, %p322_p2 }
   0x6   : > { %s1384_s15 = smov (!%p323_p3), 96   ;;  %p369_p4 = scmp.lt.s32.totalorder (!%p323_p3), %s1374_s30, 1 }
   0x7   : > { %326 = sbr.rel (%p323_p3) target bundleno = 1836 (0x72c), region = 56  ;;  %s1387_s27 = smov (!%p323_p3), 120  }
   0x8   : > { %s1388_s28 = smov (!%p323_p3), 112   ;;  %s1389_s29 = smov (!%p323_p3), 104  }
   0x9   : > { %s1391_s17 = smov (!%p323_p3), 72   ;;  %s1392_s18 = smov (!%p323_p3), 80  }
   0xa   : > { %s1394_s24 = smov (!%p323_p3), 16   ;;  %s1395_s25 = smov (!%p323_p3), 24  }
   0xc   : > { %v1338_v0 = vld [vmem:[%s1604_s2 + $0x8] sm:$0xff]   ;;  %v1339_v1 = vld [vmem:[%s1604_s2] sm:$0xff]   ;;  %v1385_v2 = vmov 0.0   ;;  %vm1386_vm0 = vmmov 0   ;;  %s1617_s30 = smov (!%p369_p4, %s1374_s30), 1  ;;  %vm417_vm1 = vcmask 261120  }
   0xd   : > { %464 = vrot.lane.b32.xlu0 %v1338_v0, %s1384_s15  ;;  %1230 = vmatprep.subr.bf16.mxu0 %v1385_v2  ;;  %v1183_v3 = vld [vmem:[%s1605_s3] ss:$0 sm:$0xff]  ;;  %s1486_s20 = sshll.u32 %s1617_s30, 2  ;;  %vm522_vm2 = vcmask 64512   ;;  %s382_s16 = scalar_lea.vmem %s1608_s6, %s1617_s30  ;;  %vm587_vm3 = vcmask 1043456   ;;  %vm975_vm4 = vcmask 130048  }
   0xe   : > { %1238 = vmatprep.subr.bf16.mxu1 %v1385_v2  ;;  %1231 = vmatpush3.bf16.msra.mxu0 %v1338_v0  ;;  %s375_s23 = scalar_lea.vmem %s1602_s0, %s1486_s20  ;;  %s379_s26 = scalar_lea.vmem %s1603_s1, %s1486_s20  ;;  %v1188_v31 = vld [vmem:[%s382_s16] ss:$0 sm:$0xff]  ;;  %vm977_vm5 = vcmask 195584   ;;  %vm1078_vm6 = vcmask 257024  }
   0xf   : > { %1232 = vmatprep.subr.bf16.mxu0 %v1385_v2  ;;  %1234 = vmatprep.mubr.msk.bf16.mxu0 %vm1386_vm0, %v1385_v2  ;;  %v1492_v4 = vld [vmem:[%s375_s23] sm:$0xf]  ;;  %s1390_s30 = smov 88  }
  0x10   : > { %1242 = vmatprep.mubr.msk.bf16.mxu1 %vm1386_vm0, %v1385_v2  ;;  %468 = vrot.lane.b32.xlu1 %v1183_v3, %s1384_s15  ;;  %v393_v7 = vld [vmem:[%s379_s26] sm:$0xf] }
  0x11   : > { %462 = vrot.lane.b32.xlu0 %v1339_v1, %s1384_s15 }
  0x12   : > { %1233 = vmatpush3.bf16.msra.mxu0 %v1339_v1 }
  0x13   : > { %1246 = vmatprep.subr.bf16.mxu0 %v1385_v2 }
  0x15   : > { %1235 = vmatmul.mubr.msk.bf16.vlgmr.msra.gmra.mxu0 %vm417_vm1, %v1492_v4 }
  0x16   : > { %1248 = vmatprep.mubr.msk.bf16.mxu0 %vm1386_vm0, %v1385_v2 }
  0x7f   : > { %v465_v5 = vpop.permute.xlu0 %464 }
  0x80   : > { %1239 = vmatpush3.bf16.msra.mxu1 %v465_v5 }
  0x81   : > { %1240 = vmatprep.subr.bf16.mxu1 %v1385_v2 }
  0x82   : > { %v469_v14 = vpop.permute.xlu1 %468 }
  0x83   : > { %v463_v6 = vpop.permute.xlu0 %462 }
  0x84   : > { %1241 = vmatpush3.bf16.msra.mxu1 %v463_v6 }
  0x85   : > { %1252 = vmatprep.subr.bf16.mxu1 %v1385_v2 }
  0x87   : > { %1243 = vmatmul.mubr.msk.bf16.vlgmr.msra.gmra.mxu1 %vm417_vm1, %v393_v7 }
  0x88   : > { %1254 = vmatprep.mubr.msk.bf16.mxu1 %vm1386_vm0, %v1385_v2 }
  0xd5   : > { %v455_v8 = vpop.f32.mrf.mxu0 }
  0xd6   : > { %v456_v9 = vadd.f32 %v1183_v3, %v455_v8 }
  0xd7   : > { %v1236_v10 = vpop.f32.mrf.mxu0 }
  0xd8   : > { %v461_v11 = vpack.c.bf16 %v456_v9, %v456_v9 }
  0xd9   : > { %v458_v12 = vpop.f32.mrf.mxu0 }
  0xda   : > { %632 = vrot.lane.b32.xlu0 %v461_v11, %s1387_s27 }
  0xdb   : > { %v1237_v13 = vpop.f32.mrf.mxu0 }
  0xde   : > { %742 = vrot.lane.b32.xlu0 %v461_v11, %s1388_s28 }
  0xe2   : > { %852 = vrot.lane.b32.xlu0 %v461_v11, %s1389_s29 }
 0x147   : > { %v508_v15 = vpop.f32.mrf.mxu1 }
 0x148   : > { %v509_v16 = vadd.f32 %v508_v15, %v469_v14 }
 0x149   : > { %v1244_v17 = vpop.f32.mrf.mxu1 }
 0x14a   : > { %v1508_v18 = vpack.c.bf16 %v509_v16, %v509_v16 }
 0x14b   : > { %v511_v19 = vpop.f32.mrf.mxu1 }
 0x14c   : > { %634 = vrot.lane.b32.xlu1 %v1508_v18, %s1387_s27  ;;  %v527_v20 = vsel %vm522_vm2, %v1508_v18, 0  ;;  %v633_v25 = vpop.permute.xlu0 %632 }
 0x14d   : > { %v1245_v21 = vpop.f32.mrf.mxu1  ;;  %1247 = vmatpush3.bf16.xpose.msra.mxu0 %v527_v20 }
 0x14e   : > { %1258 = vmatprep.subr.bf16.mxu0 %v1385_v2 }
 0x150   : > { %744 = vrot.lane.b32.xlu1 %v1508_v18, %s1388_s28  ;;  %v743_v28 = vpop.permute.xlu0 %742 }
 0x154   : > { %854 = vrot.lane.b32.xlu1 %v1508_v18, %s1389_s29  ;;  %1249 = vmatmul.mubr.msk.bf16.vlgmr.msra.gmra.mxu0 %vm522_vm2, %v461_v11  ;;  %v853_v30 = vpop.permute.xlu0 %852 }
 0x155   : > { %1260 = vmatprep.mubr.msk.bf16.mxu0 %vm1386_vm0, %v1385_v2 }
 0x1be   : > { %v635_v22 = vpop.permute.xlu1 %634 }
 0x1bf   : > { %v640_v23 = vsel %vm522_vm2, %v635_v22, 0 }
 0x1c0   : > { %1259 = vmatpush3.bf16.xpose.msra.mxu0 %v640_v23 }
 0x1c1   : > { %1270 = vmatprep.subr.bf16.mxu0 %v1385_v2 }
 0x1c2   : > { %v745_v24 = vpop.permute.xlu1 %744 }
 0x1c3   : > { %v750_v26 = vsel %vm522_vm2, %v745_v24, 0 }
 0x1c6   : > { %v855_v27 = vpop.permute.xlu1 %854 }
 0x1c7   : > { %1261 = vmatmul.mubr.msk.bf16.vlgmr.msra.gmra.mxu0 %vm522_vm2, %v633_v25  ;;  %v860_v29 = vsel %vm522_vm2, %v855_v27, 0 }
 0x1c8   : > { %1271 = vmatpush3.bf16.xpose.msra.mxu0 %v750_v26  ;;  %1272 = vmatprep.mubr.msk.bf16.mxu0 %vm1386_vm0, %v1385_v2 }
 0x1c9   : > { %1282 = vmatprep.subr.bf16.mxu0 %v1385_v2 }
 0x1cf   : > { %1273 = vmatmul.mubr.msk.bf16.vlgmr.msra.gmra.mxu0 %vm522_vm2, %v743_v28 }
 0x1d0   : > { %1283 = vmatpush3.bf16.xpose.msra.mxu0 %v860_v29  ;;  %1284 = vmatprep.mubr.msk.bf16.mxu0 %vm1386_vm0, %v1385_v2 }
 0x1d1   : > { %1294 = vmatprep.subr.bf16.mxu0 %v1385_v2 }
 0x1d7   : > { %1285 = vmatmul.mubr.msk.bf16.vlgmr.msra.gmra.mxu0 %vm522_vm2, %v853_v30 }
 0x1d8   : > { %1298 = vmatprep.mubr.msk.bf16.mxu0 %vm1386_vm0, %v1385_v2 }
 0x214   : > { %v563_v32 = vpop.f32.mrf.mxu0 }
 0x215   : > { %v564_v33 = vadd.f32 %v1188_v31, %v563_v32 }
 0x216   : > { %v1250_v34 = vpop.f32.mrf.mxu0 }
 0x217   : > { %v569_v35 = vsel %vm522_vm2, %v564_v33, -inf }
 0x218   : > { %570 = vmax.xlane.f32.xlu1 %v569_v35  ;;  %v566_v36 = vpop.f32.mrf.mxu0 }
 0x21a   : > { %v1251_v37 = vpop.f32.mrf.mxu0 }
 0x287   : > { %v676_v38 = vpop.f32.mrf.mxu0 }
 0x288   : > { %v677_v39 = vadd.f32 %v1188_v31, %v676_v38 }
 0x289   : > { %v1262_v40 = vpop.f32.mrf.mxu0 }
 0x28a   : > { %v682_v41 = vsel %vm522_vm2, %v677_v39, -inf }
 0x28b   : > { %683 = vmax.xlane.f32.xlu0 %v682_v41  ;;  %v679_v42 = vpop.f32.mrf.mxu0 }
 0x28d   : > { %v1263_v43 = vpop.f32.mrf.mxu0 }
 0x28f   : > { %v786_v44 = vpop.f32.mrf.mxu0 }
 0x290   : > { %v787_v45 = vadd.f32 %v1188_v31, %v786_v44 }
 0x291   : > { %v1274_v46 = vpop.f32.mrf.mxu0 }
 0x292   : > { %v792_v47 = vsel %vm522_vm2, %v787_v45, -inf  ;;  %v1340_v46 = vld [vmem:[%s1606_s4 + $0x8] sm:$0xff]  }
 0x293   : > { %793 = vmax.xlane.f32.xlu0 %v792_v47  ;;  %v789_v48 = vpop.f32.mrf.mxu0  ;;  %1295 = vmatpush3.bf16.msra.mxu0 %v1340_v46  ;;  %v1341_v47 = vld [vmem:[%s1606_s4] sm:$0xff]  }
 0x294   : > { %1296 = vmatprep.subr.bf16.mxu0 %v1385_v2 }
 0x295   : > { %v1275_v49 = vpop.f32.mrf.mxu0 }
 0x297   : > { %v896_v50 = vpop.f32.mrf.mxu0  ;;  %1297 = vmatpush3.bf16.msra.mxu0 %v1341_v47 }
 0x298   : > { %v897_v51 = vadd.f32 %v1188_v31, %v896_v50 }
 0x299   : > { %v1286_v52 = vpop.f32.mrf.mxu0 }
 0x29a   : > { %v902_v53 = vsel %vm522_vm2, %v897_v51, -inf }
 0x29b   : > { %903 = vmax.xlane.f32.xlu1 %v902_v53  ;;  %v899_v54 = vpop.f32.mrf.mxu0 }
 0x29d   : > { %v1287_v55 = vpop.f32.mrf.mxu0 }
 0x2a1   : > { %v571_v56 = vpop.xlane.xlu1 %570 }
 0x2a2   : > { %v572_v57 = vsub.f32 %v564_v33, %v571_v56 }
 0x2a4   : > { %v573_v58 = vmul.f32 1.442695, %v572_v57 }
 0x2a6   : > { %1342 = vpow2.f32 %v573_v58 }
 0x2b3   : > { %v1343_v59 = vpop.eup %1342 }
 0x2b4   : > { %v575_v60 = vsel %vm522_vm2, %v1343_v59, 0.0 }
 0x2b5   : > { %576 = vadd.xlane.f32.xlu0 %v575_v60 }
 0x314   : > { %v684_v61 = vpop.xlane.xlu0 %683 }
 0x315   : > { %v685_v62 = vsub.f32 %v677_v39, %v684_v61 }
 0x317   : > { %v686_v63 = vmul.f32 1.442695, %v685_v62  ;;  %v1197_v62 = vld [vmem:[%s1607_s5] ss:$0 sm:$0xff] }
 0x319   : > { %1344 = vpow2.f32 %v686_v63  ;;  %v392_v63 = vunpack.c.l.bf16 %v1492_v4 }
 0x31c   : > { %v794_v0 = vpop.xlane.xlu0 %793 }
 0x31d   : > { %v795_v1 = vsub.f32 %v787_v45, %v794_v0 }
 0x31f   : > { %v796_v3 = vmul.f32 1.442695, %v795_v1 }
 0x321   : > { %1346 = vpow2.f32 %v796_v3 }
 0x324   : > { %v904_v9 = vpop.xlane.xlu1 %903 }
 0x325   : > { %v905_v10 = vsub.f32 %v897_v51, %v904_v9 }
 0x326   : > { %v1345_v5 = vpop.eup %1344 }
 0x327   : > { %v688_v6 = vsel %vm522_vm2, %v1345_v5, 0.0  ;;  %v906_v11 = vmul.f32 1.442695, %v905_v10 }
 0x328   : > { %689 = vadd.xlane.f32.xlu1 %v688_v6 }
 0x329   : > { %1348 = vpow2.f32 %v906_v11 }
 0x32e   : > { %v1347_v7 = vpop.eup %1346 }
 0x32f   : > { %v798_v8 = vsel %vm522_vm2, %v1347_v7, 0.0 }
 0x330   : > { %799 = vadd.xlane.f32.xlu0 %v798_v8 }
 0x336   : > { %v1349_v12 = vpop.eup %1348 }
 0x337   : > { %v908_v13 = vsel %vm522_vm2, %v1349_v12, 0.0 }
 0x339   : > { %694 = vrot.lane.b32.xlu1 %v1508_v18, %s1390_s30 }
 0x33e   : > { %v577_v14 = vpop.xlane.xlu0 %576 }
 0x33f   : > { %1350 = vrcp.f32 %v577_v14 }
 0x346   : > { %582 = vrot.lane.b32.xlu0 %v1508_v18, %s1384_s15  ;;  %s1393_s15 = smov 8  }
 0x34a   : > { %914 = vrot.lane.b32.xlu0 %v1508_v18, %s1391_s17  ;;  %s389_s17 = scalar_lea.vmem %s1611_s9, %s1486_s20 }
 0x34c   : > { %v1351_v16 = vpop.eup %1350 }
 0x34d   : > { %v579_v19 = vmul.f32 %v1351_v16, %v1343_v59 }
 0x34f   : > { %v580_v23 = vpack.c.bf16 %v579_v19, %v579_v19 }
 0x35d   : > { %909 = vadd.xlane.f32.xlu1 %v908_v13 }
 0x36e   : > { %804 = vrot.lane.b32.xlu1 %v1508_v18, %s1392_s18 }
 0x3b1   : > { %v690_v15 = vpop.xlane.xlu1 %689 }
 0x3b2   : > { %1352 = vrcp.f32 %v690_v15 }
 0x3b5   : > { %v695_v22 = vpop.permute.xlu1 %694 }
 0x3b6   : > { %v700_v25 = vsel %vm587_vm3, %v695_v22, 0 }
 0x3b9   : > { %v800_v17 = vpop.xlane.xlu0 %799 }
 0x3ba   : > { %1354 = vrcp.f32 %v800_v17  ;;  %v1201_v17 = vld [vmem:[%s1609_s7] ss:$0 sm:$0xff] }
 0x3bd   : > { %v583_v20 = vpop.permute.xlu0 %582 }
 0x3be   : > { %v589_v21 = vsel %vm587_vm3, %v583_v20, 0  ;;  %v1202_v20 = vld [vmem:[%s1610_s8] ss:$0 sm:$0xff] }
 0x3bf   : > { %1253 = vmatpush3.bf16.msra.mxu1 %v589_v21  ;;  %v1353_v24 = vpop.eup %1352 }
 0x3c0   : > { %1264 = vmatprep.subr.bf16.mxu1 %v1385_v2  ;;  %v692_v18 = vmul.f32 %v1353_v24, %v1345_v5 }
 0x3c1   : > { %v915_v32 = vpop.permute.xlu0 %914 }
 0x3c2   : > { %1255 = vmatmul.mubr.msk.bf16.vlgmr.msra.gmra.mxu1 %vm522_vm2, %v580_v23  ;;  %v693_v26 = vpack.c.bf16 %v692_v18, %v692_v18  ;;  %v920_v34 = vsel %vm587_vm3, %v915_v32, 0 }
 0x3c3   : > { %1265 = vmatpush3.bf16.msra.mxu1 %v700_v25  ;;  %1266 = vmatprep.mubr.msk.bf16.mxu1 %vm1386_vm0, %v1385_v2 }
 0x3c4   : > { %1276 = vmatprep.subr.bf16.mxu1 %v1385_v2 }
 0x3c7   : > { %v1355_v27 = vpop.eup %1354 }
 0x3c8   : > { %v802_v29 = vmul.f32 %v1355_v27, %v1347_v7 }
 0x3ca   : > { %1267 = vmatmul.mubr.msk.bf16.vlgmr.msra.gmra.mxu1 %vm522_vm2, %v693_v26  ;;  %v803_v33 = vpack.c.bf16 %v802_v29, %v802_v29 }
 0x3cb   : > { %1278 = vmatprep.mubr.msk.bf16.mxu1 %vm1386_vm0, %v1385_v2 }
 0x3e6   : > { %v910_v28 = vpop.xlane.xlu1 %909 }
 0x3e7   : > { %1356 = vrcp.f32 %v910_v28 }
 0x3ea   : > { %v805_v30 = vpop.permute.xlu1 %804 }
 0x3eb   : > { %v810_v31 = vsel %vm587_vm3, %v805_v30, 0 }
 0x3ec   : > { %1277 = vmatpush3.bf16.msra.mxu1 %v810_v31 }
 0x3ed   : > { %1288 = vmatprep.subr.bf16.mxu1 %v1385_v2 }
 0x3ef   : > { %1279 = vmatmul.mubr.msk.bf16.vlgmr.msra.gmra.mxu1 %vm522_vm2, %v803_v33 }
 0x3f0   : > { %1289 = vmatpush3.bf16.msra.mxu1 %v920_v34  ;;  %1290 = vmatprep.mubr.msk.bf16.mxu1 %vm1386_vm0, %v1385_v2 }
 0x3f4   : > { %v1357_v35 = vpop.eup %1356 }
 0x3f5   : > { %v912_v36 = vmul.f32 %v1357_v35, %v1349_v12 }
 0x3f7   : > { %v913_v37 = vpack.c.bf16 %v912_v36, %v912_v36 }
 0x3f9   : > { %1291 = vmatmul.mubr.msk.bf16.vlgmr.msra.gmra.mxu1 %vm522_vm2, %v913_v37 }
 0x482   : > { %v625_v38 = vpop.f32.mrf.mxu1 }
 0x484   : > { %v1256_v39 = vpop.f32.mrf.mxu1 }
 0x486   : > { %v628_v40 = vpop.f32.mrf.mxu1 }
 0x488   : > { %v1257_v41 = vpop.f32.mrf.mxu1 }
 0x48a   : > { %v736_v42 = vpop.f32.mrf.mxu1 }
 0x48b   : > { %963 = vrot.lane.b32.xlu1 %v736_v42, %s1393_s15 }
 0x48c   : > { %v1268_v43 = vpop.f32.mrf.mxu1 }
 0x48e   : > { %v739_v44 = vpop.f32.mrf.mxu1 }
 0x490   : > { %v1269_v45 = vpop.f32.mrf.mxu1 }
 0x4af   : > { %v846_v48 = vpop.f32.mrf.mxu1 }
 0x4b0   : > { %967 = vrot.lane.b32.xlu0 %v846_v48, %s1394_s24 }
 0x4b1   : > { %v1280_v49 = vpop.f32.mrf.mxu1 }
 0x4b3   : > { %v849_v50 = vpop.f32.mrf.mxu1 }
 0x4b5   : > { %v1281_v51 = vpop.f32.mrf.mxu1 }
 0x4b9   : > { %v956_v52 = vpop.f32.mrf.mxu1 }
 0x4ba   : > { %971 = vrot.lane.b32.xlu1 %v956_v52, %s1395_s25 }
 0x4bb   : > { %v1292_v53 = vpop.f32.mrf.mxu1 }
 0x4bd   : > { %v959_v54 = vpop.f32.mrf.mxu1 }
 0x4bf   : > { %v1293_v55 = vpop.f32.mrf.mxu1 }
 0x4fd   : > { %v964_v56 = vpop.permute.xlu1 %963 }
 0x4fe   : > { %v974_v57 = vsel %vm522_vm2, %v625_v38, %v964_v56 }
 0x522   : > { %v968_v2 = vpop.permute.xlu0 %967 }
 0x523   : > { %v976_v58 = vsel %vm975_vm4, %v974_v57, %v968_v2 }
 0x52c   : > { %v972_v59 = vpop.permute.xlu1 %971 }
 0x52d   : > { %v978_v60 = vsel %vm977_vm5, %v976_v58, %v972_v59 }
 0x52e   : > { %v979_v61 = vpack.c.bf16 %v978_v60, %v978_v60 }
 0x530   : > { %1299 = vmatmul.mubr.msk.bf16.vlgmr.msra.gmra.mxu0 %vm417_vm1, %v979_v61 }
 0x5f0   : > { %v1040_v0 = vpop.f32.mrf.mxu0 }
 0x5f1   : > { %v1041_v1 = vadd.f32 %v1197_v62, %v1040_v0 }
 0x5f2   : > { %v1300_v3 = vpop.f32.mrf.mxu0 }
 0x5f3   : > { %v1046_v5 = vadd.f32 %v1041_v1, %v392_v63 }
 0x5f4   : > { %v1043_v6 = vpop.f32.mrf.mxu0 }
 0x5f5   : > { %v1049_v7 = vsel %vm417_vm1, %v1046_v5, 0.0 }
 0x5f6   : > { %v1301_v8 = vpop.f32.mrf.mxu0  ;;  %1050 = vadd.xlane.f32.xlu0 %v1049_v7 }
 0x67f   : > { %v1051_v9 = vpop.xlane.xlu0 %1050 }
 0x680   : > { %v1053_v10 = vmul.f32 0.03125, %v1051_v9 }
 0x682   : > { %v1054_v11 = vsub.f32 %v1046_v5, %v1053_v10 }
 0x684   : > { %v1055_v12 = vmul.f32 %v1054_v11, %v1054_v11 }
 0x686   : > { %v1056_v13 = vsel %vm417_vm1, %v1055_v12, 0.0 }
 0x687   : > { %1057 = vadd.xlane.f32.xlu1 %v1056_v13 }
 0x710   : > { %v1058_v14 = vpop.xlane.xlu1 %1057 }
 0x711   : > { %v1059_v15 = vmul.f32 0.03125, %v1058_v14 }
 0x713   : > { %v1060_v4 = vadd.f32 1e-05, %v1059_v15 }
 0x715   : > { %1358 = vrsqrt.f32 %v1060_v4 }
 0x722   : > { %v1359_v16 = vpop.eup %1358 }
 0x723   : > { %v1062_v19 = vmul.f32 %v1359_v16, %v1054_v11 }
 0x725   : > { %v1069_v21 = vmul.f32 %v1201_v17, %v1062_v19 }
 0x727   : > { %v1076_v22 = vadd.f32 %v1202_v20, %v1069_v21 }
 0x729   : > { %v1077_v23 = vpack.c.bf16 %v1076_v22, %v1076_v22 }
 0x72b   : > { %1079 = vst.msk [vmem:[%s389_s17] sm:$0xf] %vm1078_vm6, %v1077_v23 }
 0x72c PF: > { %s19_s11 = sadd.s32 1, %s1382_s11   ;;  %s1612_s30 = smov %s1378_s10 }
 0x72d   : > { %p16_p5 = scmp.ge.s32.totalorder %s19_s11, 4   ;;  %s1613_s10 = smov %s1615_s12 }
 0x72f   :  { %18 = sbr.rel (!%p16_p5) target bundleno = 2 (0x2), region = 92 }

</bundles_post_ra>
